<compile_context>
chip_gen: v5e
topology: v5e:2x2
jax: 0.10.0
libtpu: 0.0.40
codegen_flags: <defaults>
</compile_context>

<pallas_src>
import functools
import math

import jax
import jax.numpy as jnp
from jax.experimental import pallas as pl
from jax.experimental.pallas import tpu as pltpu

LN_EPS_EMB = 1e-5    # nn.LayerNorm default
LN_EPS_TRF = 1e-12   # xlnet layer_norm_eps

N_CLASSES = 2
OUT_PAD = 128        # lane-dense classifier output width (sliced to 2 outside)

_VMEM_SPEC = pl.BlockSpec(memory_space=pltpu.MemorySpace.VMEM)


# ----------------------------- helpers (traced inside the kernel) ------------

def _gelu_exact(x):
    # PyTorch nn.GELU() default (exact, erf-based)
    return 0.5 * x * (1.0 + jax.lax.erf(x / jnp.sqrt(2.0).astype(x.dtype)))


def _layer_norm(x, gamma, beta, eps):
    mu = jnp.mean(x, axis=-1, keepdims=True)
    var = jnp.mean((x - mu) ** 2, axis=-1, keepdims=True)
    return (x - mu) * jax.lax.rsqrt(var + eps) * gamma + beta


# ----------------------------- fused Pallas kernel ----------------------------

def fused_forward_kernel(B, S, D, H, L,
                         emb_ref, pos_ref, segm_ref, eg_ref, eb_ref,
                         wqkv_ref, bqkv_ref, wo_ref, bo_ref,
                         ln1g_ref, ln1b_ref, w1_ref, b1_ref, w2_ref, b2_ref,
                         ln2g_ref, ln2b_ref,
                         wp_ref, cw1_ref, cb1_ref, cw2_ref, cb2_ref,
                         out_ref):
    """Entire forward pass: embed-LN + pos, L encoder layers, pool + classify."""
    hd = D // H
    scale = 1.0 / math.sqrt(hd)

    # ---- per-feature (segmented) LayerNorm, lane-dense via block-diag matmul.
    # segm is (D, D) block-diagonal with 1/feature_dim entries, so e @ segm
    # broadcasts each feature-segment's mean to every lane of that segment.
    e = emb_ref[...]                                               # (B*S, D)
    segm = segm_ref[...]
    mu = jnp.dot(e, segm, preferred_element_type=jnp.float32)
    var = jnp.dot(e * e, segm, preferred_element_type=jnp.float32) - mu * mu
    h = (e - mu) * jax.lax.rsqrt(var + LN_EPS_EMB) * eg_ref[...] + eb_ref[...]
    h = h + pos_ref[...]                                           # pre-broadcast pos

    # ---- n_layers post-LN transformer encoder layers (static layer loop) ----
    for l in range(L):
        # packed Q/K/V projection: one lane-dense (D, 3D) matmul
        qkv = jnp.dot(h, wqkv_ref[l], preferred_element_type=jnp.float32) + bqkv_ref[l]
        q = qkv[:, 0 * D:1 * D].reshape(B, S, D)
        k = qkv[:, 1 * D:2 * D].reshape(B, S, D)
        v = qkv[:, 2 * D:3 * D].reshape(B, S, D)

        heads = []
        for hh in range(H):                                        # small static head loop
            sl = slice(hh * hd, (hh + 1) * hd)
            s = jnp.einsum('bqd,bkd->bqk', q[:, :, sl], k[:, :, sl],
                           preferred_element_type=jnp.float32) * scale
            p = jax.nn.softmax(s, axis=-1)                         # all-ones mask -> plain softmax
            heads.append(jnp.einsum('bqk,bkd->bqd', p, v[:, :, sl],
                                    preferred_element_type=jnp.float32))
        ctx = jnp.concatenate(heads, axis=-1).reshape(B * S, D)

        attn = jnp.dot(ctx, wo_ref[l], preferred_element_type=jnp.float32) + bo_ref[l]
        h1 = _layer_norm(h + attn, ln1g_ref[l], ln1b_ref[l], LN_EPS_TRF)

        f = _gelu_exact(jnp.dot(h1, w1_ref[l], preferred_element_type=jnp.float32) + b1_ref[l])
        f = jnp.dot(f, w2_ref[l], preferred_element_type=jnp.float32) + b2_ref[l]
        h = _layer_norm(h1 + f, ln2g_ref[l], ln2b_ref[l], LN_EPS_TRF)

    # ---- attention pooling (softmax over seq) + max pooling + classifier ----
    h3 = h.reshape(B, S, D)
    logit = jnp.sum(h3 * wp_ref[...], axis=-1, keepdims=True)      # (B, S, 1)
    # attention_pool bias omitted: softmax over dim=1 is shift-invariant.
    a = jax.nn.softmax(logit, axis=1)                              # (B, S, 1)
    ws = jnp.sum(a * h3, axis=1)                                   # (B, D)
    mp = jnp.max(h3, axis=1)                                       # (B, D)
    comb = jnp.concatenate([ws, mp], axis=-1)                      # (B, 2D)

    z = _gelu_exact(jnp.dot(comb, cw1_ref[...], preferred_element_type=jnp.float32) + cb1_ref[...])
    # cw2/cb2 are zero-padded to OUT_PAD lanes -> lane-dense store.
    out_ref[...] = jnp.dot(z, cw2_ref[...], preferred_element_type=jnp.float32) + cb2_ref[...]


# ----------------------------- parameters -------------------------------------

def init_params(key, *, vocab_size, n_features, d_model, n_layers, max_len):
    F = n_features
    fd = d_model // F
    D = d_model
    d_ff = 4 * D
    keys = iter(jax.random.split(key, 16 + 8 * n_layers))

    def nrm(shape, scale=0.02):
        return scale * jax.random.normal(next(keys), shape, dtype=jnp.float32)

    # block-diagonal segment-mean matrix for the per-feature LayerNorm
    seg = jnp.repeat(jnp.arange(F), fd)
    seg_mean = (seg[:, None] == seg[None, :]).astype(jnp.float32) / float(fd)

    params = {
        'emb_tables': nrm((F, vocab_size, fd), 1.0),
        'emb_gamma': jnp.ones((1, D), jnp.float32),       # per-feature gammas, concat order
        'emb_beta': jnp.zeros((1, D), jnp.float32),
        'seg_mean': seg_mean,                             # (D, D)
        'pos': nrm((1, max_len, D), 1.0),                 # torch.randn(1, max_len, d)
        # stacked / packed transformer layer weights
        'wqkv': jnp.stack([jnp.concatenate([nrm((D, D)), nrm((D, D)), nrm((D, D))], axis=1)
                           for _ in range(n_layers)], axis=0),            # (L, D, 3D)
        'bqkv': jnp.zeros((n_layers, 1, 3 * D), jnp.float32),
        'wo': jnp.stack([nrm((D, D)) for _ in range(n_layers)], axis=0),  # (L, D, D)
        'bo': jnp.zeros((n_layers, 1, D), jnp.float32),
        'ln1_g': jnp.ones((n_layers, 1, D), jnp.float32),
        'ln1_b': jnp.zeros((n_layers, 1, D), jnp.float32),
        'w1': jnp.stack([nrm((D, d_ff)) for _ in range(n_layers)], axis=0),
        'b1': jnp.zeros((n_layers, 1, d_ff), jnp.float32),
        'w2': jnp.stack([nrm((d_ff, D)) for _ in range(n_layers)], axis=0),
        'b2': jnp.zeros((n_layers, 1, D), jnp.float32),
        'ln2_g': jnp.ones((n_layers, 1, D), jnp.float32),
        'ln2_b': jnp.zeros((n_layers, 1, D), jnp.float32),
        # pooling + classifier
        'pool_w': nrm((1, 1, D)),                         # Linear(d_model, 1) weight as a row
        'cls_w1': nrm((2 * D, D)),
        'cls_b1': jnp.zeros((1, D), jnp.float32),
        'cls_w2': jnp.pad(nrm((D, N_CLASSES)), ((0, 0), (0, OUT_PAD - N_CLASSES))),
        'cls_b2': jnp.zeros((1, OUT_PAD), jnp.float32),
    }
    return params


# ----------------------------- forward ----------------------------------------

def forward(params, x_tokens, n_heads):
    """x_tokens: (B, S, F) int32 -> logits (B, 2)."""
    B, S, F = x_tokens.shape
    D = params['pos'].shape[-1]
    L = params['wqkv'].shape[0]

    # glue (XLA): per-feature embedding gather, concat along feature dim
    embs = [params['emb_tables'][i][x_tokens[:, :, i]] for i in range(F)]
    emb = jnp.concatenate(embs, axis=-1).reshape(B * S, D)
    # hoist the (1, S, D) -> (B, S, D) positional broadcast out of the kernel
    pos = jnp.broadcast_to(params['pos'][:, :S, :], (B, S, D)).reshape(B * S, D)

    kernel = functools.partial(fused_forward_kernel, B, S, D, n_heads, L)
    args = (emb, pos, params['seg_mean'], params['emb_gamma'], params['emb_beta'],
            params['wqkv'], params['bqkv'], params['wo'], params['bo'],
            params['ln1_g'], params['ln1_b'], params['w1'], params['b1'],
            params['w2'], params['b2'], params['ln2_g'], params['ln2_b'],
            params['pool_w'], params['cls_w1'], params['cls_b1'],
            params['cls_w2'], params['cls_b2'])

    out = pl.pallas_call(
        kernel,
        out_shape=jax.ShapeDtypeStruct((B, OUT_PAD), jnp.float32),
        in_specs=[_VMEM_SPEC] * len(args),
        out_specs=_VMEM_SPEC,
    )(*args)
    return out[:, :N_CLASSES]


# ----------------------------- main --------------------------------------------

if __name__ == "__main__":
    vocab_size = 50
    n_features = 4
    n_heads = 4
    n_layers = 2
    max_len = 64
    d_model = 32
    # same adjustment as the torch module __init__
    d_model = d_model // n_features // n_heads * n_features * n_heads

    B, S = 2, 8

    key = jax.random.PRNGKey(0)
    pkey, xkey = jax.random.split(key)
    params = init_params(pkey, vocab_size=vocab_size, n_features=n_features,
                         d_model=d_model, n_layers=n_layers, max_len=max_len)
    x = jax.random.randint(xkey, (B, S, n_features), 0, vocab_size,
                           dtype=jnp.int32)

    fwd = jax.jit(forward, static_argnums=(2,))
    logits = fwd(params, x, n_heads)
    logits = jax.block_until_ready(logits)

    assert logits.shape == (B, N_CLASSES) and logits.dtype == jnp.float32
    assert bool(jnp.all(jnp.isfinite(logits)))
    print("KERNEL_OK")
</pallas_src>

<mosaic_0001>
module attributes {stable_mosaic.version = 11 : i64} {
  func.func @fused_forward_kernel(%arg0: memref<16x32xf32, #tpu.memory_space<vmem>>, %arg1: memref<16x32xf32, #tpu.memory_space<vmem>>, %arg2: memref<32x32xf32, #tpu.memory_space<vmem>>, %arg3: memref<1x32xf32, #tpu.memory_space<vmem>>, %arg4: memref<1x32xf32, #tpu.memory_space<vmem>>, %arg5: memref<2x32x96xf32, #tpu.memory_space<vmem>>, %arg6: memref<2x1x96xf32, #tpu.memory_space<vmem>>, %arg7: memref<2x32x32xf32, #tpu.memory_space<vmem>>, %arg8: memref<2x1x32xf32, #tpu.memory_space<vmem>>, %arg9: memref<2x1x32xf32, #tpu.memory_space<vmem>>, %arg10: memref<2x1x32xf32, #tpu.memory_space<vmem>>, %arg11: memref<2x32x128xf32, #tpu.memory_space<vmem>>, %arg12: memref<2x1x128xf32, #tpu.memory_space<vmem>>, %arg13: memref<2x128x32xf32, #tpu.memory_space<vmem>>, %arg14: memref<2x1x32xf32, #tpu.memory_space<vmem>>, %arg15: memref<2x1x32xf32, #tpu.memory_space<vmem>>, %arg16: memref<2x1x32xf32, #tpu.memory_space<vmem>>, %arg17: memref<1x1x32xf32, #tpu.memory_space<vmem>>, %arg18: memref<64x32xf32, #tpu.memory_space<vmem>>, %arg19: memref<1x32xf32, #tpu.memory_space<vmem>>, %arg20: memref<32x128xf32, #tpu.memory_space<vmem>>, %arg21: memref<1x128xf32, #tpu.memory_space<vmem>>, %arg22: memref<2x128xf32, #tpu.memory_space<vmem>>) attributes {dimension_semantics = [], scalar_prefetch = 0 : i64, scratch_operands = 0 : i64, tpu.core_type = #tpu.core_type<tc>} {
    %c0 = arith.constant 0 : index
    %c0_0 = arith.constant 0 : index
    %0 = vector.load %arg0[%c0, %c0_0] : memref<16x32xf32, #tpu.memory_space<vmem>>, vector<16x32xf32>
    %c0_1 = arith.constant 0 : index
    %c0_2 = arith.constant 0 : index
    %1 = vector.load %arg2[%c0_1, %c0_2] : memref<32x32xf32, #tpu.memory_space<vmem>>, vector<32x32xf32>
    %cst = arith.constant dense<0.000000e+00> : vector<16x32xf32>
    %2 = tpu.matmul %0, %1, %cst {dimension_numbers = #tpu.dot_dimension_numbers<[1], [0], [0], [1], [0, 0, 1, 1], [], []>} : vector<16x32xf32>, vector<32x32xf32>, vector<16x32xf32> -> vector<16x32xf32>
    %3 = arith.mulf %0, %0 : vector<16x32xf32>
    %cst_3 = arith.constant dense<0.000000e+00> : vector<16x32xf32>
    %4 = tpu.matmul %3, %1, %cst_3 {dimension_numbers = #tpu.dot_dimension_numbers<[1], [0], [0], [1], [0, 0, 1, 1], [], []>} : vector<16x32xf32>, vector<32x32xf32>, vector<16x32xf32> -> vector<16x32xf32>
    %5 = arith.mulf %2, %2 : vector<16x32xf32>
    %6 = arith.subf %4, %5 : vector<16x32xf32>
    %7 = arith.subf %0, %2 : vector<16x32xf32>
    %cst_4 = arith.constant 9.99999974E-6 : f32
    %8 = vector.broadcast %cst_4 : f32 to vector<16x32xf32>
    %9 = arith.addf %6, %8 : vector<16x32xf32>
    %10 = math.rsqrt %9 : vector<16x32xf32>
    %11 = arith.mulf %7, %10 : vector<16x32xf32>
    %c0_5 = arith.constant 0 : index
    %c0_6 = arith.constant 0 : index
    %12 = vector.load %arg3[%c0_5, %c0_6] : memref<1x32xf32, #tpu.memory_space<vmem>>, vector<1x32xf32>
    %13 = vector.broadcast %12 : vector<1x32xf32> to vector<16x32xf32>
    %14 = arith.mulf %11, %13 : vector<16x32xf32>
    %c0_7 = arith.constant 0 : index
    %c0_8 = arith.constant 0 : index
    %15 = vector.load %arg4[%c0_7, %c0_8] : memref<1x32xf32, #tpu.memory_space<vmem>>, vector<1x32xf32>
    %16 = vector.broadcast %15 : vector<1x32xf32> to vector<16x32xf32>
    %17 = arith.addf %14, %16 : vector<16x32xf32>
    %c0_9 = arith.constant 0 : index
    %c0_10 = arith.constant 0 : index
    %18 = vector.load %arg1[%c0_9, %c0_10] : memref<16x32xf32, #tpu.memory_space<vmem>>, vector<16x32xf32>
    %19 = arith.addf %17, %18 : vector<16x32xf32>
    %c0_11 = arith.constant 0 : index
    %c0_12 = arith.constant 0 : index
    %c0_13 = arith.constant 0 : index
    %20 = vector.load %arg5[%c0_11, %c0_12, %c0_13] : memref<2x32x96xf32, #tpu.memory_space<vmem>>, vector<1x32x96xf32>
    %21 = vector.shape_cast %20 : vector<1x32x96xf32> to vector<32x96xf32>
    %cst_14 = arith.constant dense<0.000000e+00> : vector<16x96xf32>
    %22 = tpu.matmul %19, %21, %cst_14 {dimension_numbers = #tpu.dot_dimension_numbers<[1], [0], [0], [1], [0, 0, 1, 1], [], []>} : vector<16x32xf32>, vector<32x96xf32>, vector<16x96xf32> -> vector<16x96xf32>
    %c0_15 = arith.constant 0 : index
    %c0_16 = arith.constant 0 : index
    %c0_17 = arith.constant 0 : index
    %23 = vector.load %arg6[%c0_15, %c0_16, %c0_17] : memref<2x1x96xf32, #tpu.memory_space<vmem>>, vector<1x1x96xf32>
    %24 = vector.shape_cast %23 : vector<1x1x96xf32> to vector<1x96xf32>
    %25 = vector.broadcast %24 : vector<1x96xf32> to vector<16x96xf32>
    %26 = arith.addf %22, %25 : vector<16x96xf32>
    %27 = vector.extract_strided_slice %26 {offsets = [0, 0], sizes = [16, 32], strides = [1, 1]} : vector<16x96xf32> to vector<16x32xf32>
    %28 = vector.shape_cast %27 : vector<16x32xf32> to vector<2x8x32xf32>
    %29 = vector.extract_strided_slice %26 {offsets = [0, 32], sizes = [16, 32], strides = [1, 1]} : vector<16x96xf32> to vector<16x32xf32>
    %30 = vector.shape_cast %29 : vector<16x32xf32> to vector<2x8x32xf32>
    %31 = vector.extract_strided_slice %26 {offsets = [0, 64], sizes = [16, 32], strides = [1, 1]} : vector<16x96xf32> to vector<16x32xf32>
    %32 = vector.shape_cast %31 : vector<16x32xf32> to vector<2x8x32xf32>
    %33 = vector.extract_strided_slice %28 {offsets = [0, 0, 0], sizes = [2, 8, 8], strides = [1, 1, 1]} : vector<2x8x32xf32> to vector<2x8x8xf32>
    %34 = vector.extract_strided_slice %30 {offsets = [0, 0, 0], sizes = [2, 8, 8], strides = [1, 1, 1]} : vector<2x8x32xf32> to vector<2x8x8xf32>
    "tpu.trace_start"() <{level = 10 : i32, message = "bqd,bkd->bqk"}> : () -> ()
    %cst_18 = arith.constant dense<0.000000e+00> : vector<2x8x8xf32>
    %35 = tpu.matmul %33, %34, %cst_18 {dimension_numbers = #tpu.dot_dimension_numbers<[2], [2], [1], [1], [0, 0, 0, 1, 1, 1], [0], [0]>} : vector<2x8x8xf32>, vector<2x8x8xf32>, vector<2x8x8xf32> -> vector<2x8x8xf32>
    "tpu.trace_stop"() : () -> ()
    %cst_19 = arith.constant 0.353553385 : f32
    %36 = vector.broadcast %cst_19 : f32 to vector<2x8x8xf32>
    %37 = arith.mulf %35, %36 : vector<2x8x8xf32>
    %cst_20 = arith.constant dense<0xFF800000> : vector<2x8xf32>
    %38 = vector.multi_reduction <maximumf>, %37, %cst_20 [2] : vector<2x8x8xf32> to vector<2x8xf32>
    %cst_21 = arith.constant 0xFF800000 : f32
    %39 = vector.broadcast %cst_21 : f32 to vector<2x8xf32>
    %40 = arith.maximumf %39, %38 : vector<2x8xf32>
    %41 = vector.shape_cast %40 : vector<2x8xf32> to vector<2x8x1xf32>
    %42 = vector.broadcast %41 : vector<2x8x1xf32> to vector<2x8x8xf32>
    %43 = arith.subf %37, %42 : vector<2x8x8xf32>
    %44 = math.exp %43 : vector<2x8x8xf32>
    %cst_22 = arith.constant dense<0.000000e+00> : vector<2x8xf32>
    %45 = vector.multi_reduction <add>, %44, %cst_22 [2] : vector<2x8x8xf32> to vector<2x8xf32>
    %46 = vector.shape_cast %45 : vector<2x8xf32> to vector<2x8x1xf32>
    %47 = vector.broadcast %46 : vector<2x8x1xf32> to vector<2x8x8xf32>
    %48 = arith.divf %44, %47 : vector<2x8x8xf32>
    %49 = vector.extract_strided_slice %32 {offsets = [0, 0, 0], sizes = [2, 8, 8], strides = [1, 1, 1]} : vector<2x8x32xf32> to vector<2x8x8xf32>
    "tpu.trace_start"() <{level = 10 : i32, message = "bqk,bkd->bqd"}> : () -> ()
    %cst_23 = arith.constant dense<0.000000e+00> : vector<2x8x8xf32>
    %50 = tpu.matmul %48, %49, %cst_23 {dimension_numbers = #tpu.dot_dimension_numbers<[2], [1], [1], [2], [0, 0, 0, 1, 1, 2], [0], [0]>} : vector<2x8x8xf32>, vector<2x8x8xf32>, vector<2x8x8xf32> -> vector<2x8x8xf32>
    "tpu.trace_stop"() : () -> ()
    %51 = vector.extract_strided_slice %28 {offsets = [0, 0, 8], sizes = [2, 8, 8], strides = [1, 1, 1]} : vector<2x8x32xf32> to vector<2x8x8xf32>
    %52 = vector.extract_strided_slice %30 {offsets = [0, 0, 8], sizes = [2, 8, 8], strides = [1, 1, 1]} : vector<2x8x32xf32> to vector<2x8x8xf32>
    "tpu.trace_start"() <{level = 10 : i32, message = "bqd,bkd->bqk"}> : () -> ()
    %cst_24 = arith.constant dense<0.000000e+00> : vector<2x8x8xf32>
    %53 = tpu.matmul %51, %52, %cst_24 {dimension_numbers = #tpu.dot_dimension_numbers<[2], [2], [1], [1], [0, 0, 0, 1, 1, 1], [0], [0]>} : vector<2x8x8xf32>, vector<2x8x8xf32>, vector<2x8x8xf32> -> vector<2x8x8xf32>
    "tpu.trace_stop"() : () -> ()
    %cst_25 = arith.constant 0.353553385 : f32
    %54 = vector.broadcast %cst_25 : f32 to vector<2x8x8xf32>
    %55 = arith.mulf %53, %54 : vector<2x8x8xf32>
    %cst_26 = arith.constant dense<0xFF800000> : vector<2x8xf32>
    %56 = vector.multi_reduction <maximumf>, %55, %cst_26 [2] : vector<2x8x8xf32> to vector<2x8xf32>
    %cst_27 = arith.constant 0xFF800000 : f32
    %57 = vector.broadcast %cst_27 : f32 to vector<2x8xf32>
    %58 = arith.maximumf %57, %56 : vector<2x8xf32>
    %59 = vector.shape_cast %58 : vector<2x8xf32> to vector<2x8x1xf32>
    %60 = vector.broadcast %59 : vector<2x8x1xf32> to vector<2x8x8xf32>
    %61 = arith.subf %55, %60 : vector<2x8x8xf32>
    %62 = math.exp %61 : vector<2x8x8xf32>
    %cst_28 = arith.constant dense<0.000000e+00> : vector<2x8xf32>
    %63 = vector.multi_reduction <add>, %62, %cst_28 [2] : vector<2x8x8xf32> to vector<2x8xf32>
    %64 = vector.shape_cast %63 : vector<2x8xf32> to vector<2x8x1xf32>
    %65 = vector.broadcast %64 : vector<2x8x1xf32> to vector<2x8x8xf32>
    %66 = arith.divf %62, %65 : vector<2x8x8xf32>
    %67 = vector.extract_strided_slice %32 {offsets = [0, 0, 8], sizes = [2, 8, 8], strides = [1, 1, 1]} : vector<2x8x32xf32> to vector<2x8x8xf32>
    "tpu.trace_start"() <{level = 10 : i32, message = "bqk,bkd->bqd"}> : () -> ()
    %cst_29 = arith.constant dense<0.000000e+00> : vector<2x8x8xf32>
    %68 = tpu.matmul %66, %67, %cst_29 {dimension_numbers = #tpu.dot_dimension_numbers<[2], [1], [1], [2], [0, 0, 0, 1, 1, 2], [0], [0]>} : vector<2x8x8xf32>, vector<2x8x8xf32>, vector<2x8x8xf32> -> vector<2x8x8xf32>
    "tpu.trace_stop"() : () -> ()
    %69 = vector.extract_strided_slice %28 {offsets = [0, 0, 16], sizes = [2, 8, 8], strides = [1, 1, 1]} : vector<2x8x32xf32> to vector<2x8x8xf32>
    %70 = vector.extract_strided_slice %30 {offsets = [0, 0, 16], sizes = [2, 8, 8], strides = [1, 1, 1]} : vector<2x8x32xf32> to vector<2x8x8xf32>
    "tpu.trace_start"() <{level = 10 : i32, message = "bqd,bkd->bqk"}> : () -> ()
    %cst_30 = arith.constant dense<0.000000e+00> : vector<2x8x8xf32>
    %71 = tpu.matmul %69, %70, %cst_30 {dimension_numbers = #tpu.dot_dimension_numbers<[2], [2], [1], [1], [0, 0, 0, 1, 1, 1], [0], [0]>} : vector<2x8x8xf32>, vector<2x8x8xf32>, vector<2x8x8xf32> -> vector<2x8x8xf32>
    "tpu.trace_stop"() : () -> ()
    %cst_31 = arith.constant 0.353553385 : f32
    %72 = vector.broadcast %cst_31 : f32 to vector<2x8x8xf32>
    %73 = arith.mulf %71, %72 : vector<2x8x8xf32>
    %cst_32 = arith.constant dense<0xFF800000> : vector<2x8xf32>
    %74 = vector.multi_reduction <maximumf>, %73, %cst_32 [2] : vector<2x8x8xf32> to vector<2x8xf32>
    %cst_33 = arith.constant 0xFF800000 : f32
    %75 = vector.broadcast %cst_33 : f32 to vector<2x8xf32>
    %76 = arith.maximumf %75, %74 : vector<2x8xf32>
    %77 = vector.shape_cast %76 : vector<2x8xf32> to vector<2x8x1xf32>
    %78 = vector.broadcast %77 : vector<2x8x1xf32> to vector<2x8x8xf32>
    %79 = arith.subf %73, %78 : vector<2x8x8xf32>
    %80 = math.exp %79 : vector<2x8x8xf32>
    %cst_34 = arith.constant dense<0.000000e+00> : vector<2x8xf32>
    %81 = vector.multi_reduction <add>, %80, %cst_34 [2] : vector<2x8x8xf32> to vector<2x8xf32>
    %82 = vector.shape_cast %81 : vector<2x8xf32> to vector<2x8x1xf32>
    %83 = vector.broadcast %82 : vector<2x8x1xf32> to vector<2x8x8xf32>
    %84 = arith.divf %80, %83 : vector<2x8x8xf32>
    %85 = vector.extract_strided_slice %32 {offsets = [0, 0, 16], sizes = [2, 8, 8], strides = [1, 1, 1]} : vector<2x8x32xf32> to vector<2x8x8xf32>
    "tpu.trace_start"() <{level = 10 : i32, message = "bqk,bkd->bqd"}> : () -> ()
    %cst_35 = arith.constant dense<0.000000e+00> : vector<2x8x8xf32>
    %86 = tpu.matmul %84, %85, %cst_35 {dimension_numbers = #tpu.dot_dimension_numbers<[2], [1], [1], [2], [0, 0, 0, 1, 1, 2], [0], [0]>} : vector<2x8x8xf32>, vector<2x8x8xf32>, vector<2x8x8xf32> -> vector<2x8x8xf32>
    "tpu.trace_stop"() : () -> ()
    %87 = vector.extract_strided_slice %28 {offsets = [0, 0, 24], sizes = [2, 8, 8], strides = [1, 1, 1]} : vector<2x8x32xf32> to vector<2x8x8xf32>
    %88 = vector.extract_strided_slice %30 {offsets = [0, 0, 24], sizes = [2, 8, 8], strides = [1, 1, 1]} : vector<2x8x32xf32> to vector<2x8x8xf32>
    "tpu.trace_start"() <{level = 10 : i32, message = "bqd,bkd->bqk"}> : () -> ()
    %cst_36 = arith.constant dense<0.000000e+00> : vector<2x8x8xf32>
    %89 = tpu.matmul %87, %88, %cst_36 {dimension_numbers = #tpu.dot_dimension_numbers<[2], [2], [1], [1], [0, 0, 0, 1, 1, 1], [0], [0]>} : vector<2x8x8xf32>, vector<2x8x8xf32>, vector<2x8x8xf32> -> vector<2x8x8xf32>
    "tpu.trace_stop"() : () -> ()
    %cst_37 = arith.constant 0.353553385 : f32
    %90 = vector.broadcast %cst_37 : f32 to vector<2x8x8xf32>
    %91 = arith.mulf %89, %90 : vector<2x8x8xf32>
    %cst_38 = arith.constant dense<0xFF800000> : vector<2x8xf32>
    %92 = vector.multi_reduction <maximumf>, %91, %cst_38 [2] : vector<2x8x8xf32> to vector<2x8xf32>
    %cst_39 = arith.constant 0xFF800000 : f32
    %93 = vector.broadcast %cst_39 : f32 to vector<2x8xf32>
    %94 = arith.maximumf %93, %92 : vector<2x8xf32>
    %95 = vector.shape_cast %94 : vector<2x8xf32> to vector<2x8x1xf32>
    %96 = vector.broadcast %95 : vector<2x8x1xf32> to vector<2x8x8xf32>
    %97 = arith.subf %91, %96 : vector<2x8x8xf32>
    %98 = math.exp %97 : vector<2x8x8xf32>
    %cst_40 = arith.constant dense<0.000000e+00> : vector<2x8xf32>
    %99 = vector.multi_reduction <add>, %98, %cst_40 [2] : vector<2x8x8xf32> to vector<2x8xf32>
    %100 = vector.shape_cast %99 : vector<2x8xf32> to vector<2x8x1xf32>
    %101 = vector.broadcast %100 : vector<2x8x1xf32> to vector<2x8x8xf32>
    %102 = arith.divf %98, %101 : vector<2x8x8xf32>
    %103 = vector.extract_strided_slice %32 {offsets = [0, 0, 24], sizes = [2, 8, 8], strides = [1, 1, 1]} : vector<2x8x32xf32> to vector<2x8x8xf32>
    "tpu.trace_start"() <{level = 10 : i32, message = "bqk,bkd->bqd"}> : () -> ()
    %cst_41 = arith.constant dense<0.000000e+00> : vector<2x8x8xf32>
    %104 = tpu.matmul %102, %103, %cst_41 {dimension_numbers = #tpu.dot_dimension_numbers<[2], [1], [1], [2], [0, 0, 0, 1, 1, 2], [0], [0]>} : vector<2x8x8xf32>, vector<2x8x8xf32>, vector<2x8x8xf32> -> vector<2x8x8xf32>
    "tpu.trace_stop"() : () -> ()
    %105 = tpu.concatenate %50, %68, %86, %104 in 2 : vector<2x8x8xf32>, vector<2x8x8xf32>, vector<2x8x8xf32>, vector<2x8x8xf32> -> vector<2x8x32xf32>
    %106 = vector.shape_cast %105 : vector<2x8x32xf32> to vector<16x32xf32>
    %c0_42 = arith.constant 0 : index
    %c0_43 = arith.constant 0 : index
    %c0_44 = arith.constant 0 : index
    %107 = vector.load %arg7[%c0_42, %c0_43, %c0_44] : memref<2x32x32xf32, #tpu.memory_space<vmem>>, vector<1x32x32xf32>
    %108 = vector.shape_cast %107 : vector<1x32x32xf32> to vector<32x32xf32>
    %cst_45 = arith.constant dense<0.000000e+00> : vector<16x32xf32>
    %109 = tpu.matmul %106, %108, %cst_45 {dimension_numbers = #tpu.dot_dimension_numbers<[1], [0], [0], [1], [0, 0, 1, 1], [], []>} : vector<16x32xf32>, vector<32x32xf32>, vector<16x32xf32> -> vector<16x32xf32>
    %c0_46 = arith.constant 0 : index
    %c0_47 = arith.constant 0 : index
    %c0_48 = arith.constant 0 : index
    %110 = vector.load %arg8[%c0_46, %c0_47, %c0_48] : memref<2x1x32xf32, #tpu.memory_space<vmem>>, vector<1x1x32xf32>
    %111 = vector.shape_cast %110 : vector<1x1x32xf32> to vector<1x32xf32>
    %112 = vector.broadcast %111 : vector<1x32xf32> to vector<16x32xf32>
    %113 = arith.addf %109, %112 : vector<16x32xf32>
    %114 = arith.addf %19, %113 : vector<16x32xf32>
    %c0_49 = arith.constant 0 : index
    %c0_50 = arith.constant 0 : index
    %c0_51 = arith.constant 0 : index
    %115 = vector.load %arg9[%c0_49, %c0_50, %c0_51] : memref<2x1x32xf32, #tpu.memory_space<vmem>>, vector<1x1x32xf32>
    %116 = vector.shape_cast %115 : vector<1x1x32xf32> to vector<1x32xf32>
    %c0_52 = arith.constant 0 : index
    %c0_53 = arith.constant 0 : index
    %c0_54 = arith.constant 0 : index
    %117 = vector.load %arg10[%c0_52, %c0_53, %c0_54] : memref<2x1x32xf32, #tpu.memory_space<vmem>>, vector<1x1x32xf32>
    %118 = vector.shape_cast %117 : vector<1x1x32xf32> to vector<1x32xf32>
    %cst_55 = arith.constant dense<0.000000e+00> : vector<16xf32>
    %119 = vector.multi_reduction <add>, %114, %cst_55 [1] : vector<16x32xf32> to vector<16xf32>
    %120 = vector.shape_cast %119 : vector<16xf32> to vector<16x1xf32>
    %cst_56 = arith.constant 3.200000e+01 : f32
    %121 = vector.broadcast %cst_56 : f32 to vector<16x1xf32>
    %122 = arith.divf %120, %121 : vector<16x1xf32>
    %123 = vector.broadcast %122 : vector<16x1xf32> to vector<16x32xf32>
    %124 = arith.subf %114, %123 : vector<16x32xf32>
    %125 = arith.mulf %124, %124 : vector<16x32xf32>
    %cst_57 = arith.constant dense<0.000000e+00> : vector<16xf32>
    %126 = vector.multi_reduction <add>, %125, %cst_57 [1] : vector<16x32xf32> to vector<16xf32>
    %127 = vector.shape_cast %126 : vector<16xf32> to vector<16x1xf32>
    %cst_58 = arith.constant 3.200000e+01 : f32
    %128 = vector.broadcast %cst_58 : f32 to vector<16x1xf32>
    %129 = arith.divf %127, %128 : vector<16x1xf32>
    %130 = vector.broadcast %122 : vector<16x1xf32> to vector<16x32xf32>
    %131 = arith.subf %114, %130 : vector<16x32xf32>
    %cst_59 = arith.constant 9.99999996E-13 : f32
    %132 = vector.broadcast %cst_59 : f32 to vector<16x1xf32>
    %133 = arith.addf %129, %132 : vector<16x1xf32>
    %134 = math.rsqrt %133 : vector<16x1xf32>
    %135 = vector.broadcast %134 : vector<16x1xf32> to vector<16x32xf32>
    %136 = arith.mulf %131, %135 : vector<16x32xf32>
    %137 = vector.broadcast %116 : vector<1x32xf32> to vector<16x32xf32>
    %138 = arith.mulf %136, %137 : vector<16x32xf32>
    %139 = vector.broadcast %118 : vector<1x32xf32> to vector<16x32xf32>
    %140 = arith.addf %138, %139 : vector<16x32xf32>
    %c0_60 = arith.constant 0 : index
    %c0_61 = arith.constant 0 : index
    %c0_62 = arith.constant 0 : index
    %141 = vector.load %arg11[%c0_60, %c0_61, %c0_62] : memref<2x32x128xf32, #tpu.memory_space<vmem>>, vector<1x32x128xf32>
    %142 = vector.shape_cast %141 : vector<1x32x128xf32> to vector<32x128xf32>
    %cst_63 = arith.constant dense<0.000000e+00> : vector<16x128xf32>
    %143 = tpu.matmul %140, %142, %cst_63 {dimension_numbers = #tpu.dot_dimension_numbers<[1], [0], [0], [1], [0, 0, 1, 1], [], []>} : vector<16x32xf32>, vector<32x128xf32>, vector<16x128xf32> -> vector<16x128xf32>
    %c0_64 = arith.constant 0 : index
    %c0_65 = arith.constant 0 : index
    %c0_66 = arith.constant 0 : index
    %144 = vector.load %arg12[%c0_64, %c0_65, %c0_66] : memref<2x1x128xf32, #tpu.memory_space<vmem>>, vector<1x1x128xf32>
    %145 = vector.shape_cast %144 : vector<1x1x128xf32> to vector<1x128xf32>
    %146 = vector.broadcast %145 : vector<1x128xf32> to vector<16x128xf32>
    %147 = arith.addf %143, %146 : vector<16x128xf32>
    %cst_67 = arith.constant 5.000000e-01 : f32
    %148 = vector.broadcast %cst_67 : f32 to vector<16x128xf32>
    %149 = arith.mulf %148, %147 : vector<16x128xf32>
    %cst_68 = arith.constant 2.000000e+00 : f32
    %150 = math.sqrt %cst_68 : f32
    %151 = vector.broadcast %150 : f32 to vector<16x128xf32>
    %152 = arith.divf %147, %151 : vector<16x128xf32>
    %153 = math.erf %152 : vector<16x128xf32>
    %cst_69 = arith.constant 1.000000e+00 : f32
    %154 = vector.broadcast %cst_69 : f32 to vector<16x128xf32>
    %155 = arith.addf %154, %153 : vector<16x128xf32>
    %156 = arith.mulf %149, %155 : vector<16x128xf32>
    %c0_70 = arith.constant 0 : index
    %c0_71 = arith.constant 0 : index
    %c0_72 = arith.constant 0 : index
    %157 = vector.load %arg13[%c0_70, %c0_71, %c0_72] : memref<2x128x32xf32, #tpu.memory_space<vmem>>, vector<1x128x32xf32>
    %158 = vector.shape_cast %157 : vector<1x128x32xf32> to vector<128x32xf32>
    %cst_73 = arith.constant dense<0.000000e+00> : vector<16x32xf32>
    %159 = tpu.matmul %156, %158, %cst_73 {dimension_numbers = #tpu.dot_dimension_numbers<[1], [0], [0], [1], [0, 0, 1, 1], [], []>} : vector<16x128xf32>, vector<128x32xf32>, vector<16x32xf32> -> vector<16x32xf32>
    %c0_74 = arith.constant 0 : index
    %c0_75 = arith.constant 0 : index
    %c0_76 = arith.constant 0 : index
    %160 = vector.load %arg14[%c0_74, %c0_75, %c0_76] : memref<2x1x32xf32, #tpu.memory_space<vmem>>, vector<1x1x32xf32>
    %161 = vector.shape_cast %160 : vector<1x1x32xf32> to vector<1x32xf32>
    %162 = vector.broadcast %161 : vector<1x32xf32> to vector<16x32xf32>
    %163 = arith.addf %159, %162 : vector<16x32xf32>
    %164 = arith.addf %140, %163 : vector<16x32xf32>
    %c0_77 = arith.constant 0 : index
    %c0_78 = arith.constant 0 : index
    %c0_79 = arith.constant 0 : index
    %165 = vector.load %arg15[%c0_77, %c0_78, %c0_79] : memref<2x1x32xf32, #tpu.memory_space<vmem>>, vector<1x1x32xf32>
    %166 = vector.shape_cast %165 : vector<1x1x32xf32> to vector<1x32xf32>
    %c0_80 = arith.constant 0 : index
    %c0_81 = arith.constant 0 : index
    %c0_82 = arith.constant 0 : index
    %167 = vector.load %arg16[%c0_80, %c0_81, %c0_82] : memref<2x1x32xf32, #tpu.memory_space<vmem>>, vector<1x1x32xf32>
    %168 = vector.shape_cast %167 : vector<1x1x32xf32> to vector<1x32xf32>
    %cst_83 = arith.constant dense<0.000000e+00> : vector<16xf32>
    %169 = vector.multi_reduction <add>, %164, %cst_83 [1] : vector<16x32xf32> to vector<16xf32>
    %170 = vector.shape_cast %169 : vector<16xf32> to vector<16x1xf32>
    %cst_84 = arith.constant 3.200000e+01 : f32
    %171 = vector.broadcast %cst_84 : f32 to vector<16x1xf32>
    %172 = arith.divf %170, %171 : vector<16x1xf32>
    %173 = vector.broadcast %172 : vector<16x1xf32> to vector<16x32xf32>
    %174 = arith.subf %164, %173 : vector<16x32xf32>
    %175 = arith.mulf %174, %174 : vector<16x32xf32>
    %cst_85 = arith.constant dense<0.000000e+00> : vector<16xf32>
    %176 = vector.multi_reduction <add>, %175, %cst_85 [1] : vector<16x32xf32> to vector<16xf32>
    %177 = vector.shape_cast %176 : vector<16xf32> to vector<16x1xf32>
    %cst_86 = arith.constant 3.200000e+01 : f32
    %178 = vector.broadcast %cst_86 : f32 to vector<16x1xf32>
    %179 = arith.divf %177, %178 : vector<16x1xf32>
    %180 = vector.broadcast %172 : vector<16x1xf32> to vector<16x32xf32>
    %181 = arith.subf %164, %180 : vector<16x32xf32>
    %cst_87 = arith.constant 9.99999996E-13 : f32
    %182 = vector.broadcast %cst_87 : f32 to vector<16x1xf32>
    %183 = arith.addf %179, %182 : vector<16x1xf32>
    %184 = math.rsqrt %183 : vector<16x1xf32>
    %185 = vector.broadcast %184 : vector<16x1xf32> to vector<16x32xf32>
    %186 = arith.mulf %181, %185 : vector<16x32xf32>
    %187 = vector.broadcast %166 : vector<1x32xf32> to vector<16x32xf32>
    %188 = arith.mulf %186, %187 : vector<16x32xf32>
    %189 = vector.broadcast %168 : vector<1x32xf32> to vector<16x32xf32>
    %190 = arith.addf %188, %189 : vector<16x32xf32>
    %c1 = arith.constant 1 : index
    %c0_88 = arith.constant 0 : index
    %c0_89 = arith.constant 0 : index
    %191 = vector.load %arg5[%c1, %c0_88, %c0_89] : memref<2x32x96xf32, #tpu.memory_space<vmem>>, vector<1x32x96xf32>
    %192 = vector.shape_cast %191 : vector<1x32x96xf32> to vector<32x96xf32>
    %cst_90 = arith.constant dense<0.000000e+00> : vector<16x96xf32>
    %193 = tpu.matmul %190, %192, %cst_90 {dimension_numbers = #tpu.dot_dimension_numbers<[1], [0], [0], [1], [0, 0, 1, 1], [], []>} : vector<16x32xf32>, vector<32x96xf32>, vector<16x96xf32> -> vector<16x96xf32>
    %c1_91 = arith.constant 1 : index
    %c0_92 = arith.constant 0 : index
    %c0_93 = arith.constant 0 : index
    %194 = vector.load %arg6[%c1_91, %c0_92, %c0_93] : memref<2x1x96xf32, #tpu.memory_space<vmem>>, vector<1x1x96xf32>
    %195 = vector.shape_cast %194 : vector<1x1x96xf32> to vector<1x96xf32>
    %196 = vector.broadcast %195 : vector<1x96xf32> to vector<16x96xf32>
    %197 = arith.addf %193, %196 : vector<16x96xf32>
    %198 = vector.extract_strided_slice %197 {offsets = [0, 0], sizes = [16, 32], strides = [1, 1]} : vector<16x96xf32> to vector<16x32xf32>
    %199 = vector.shape_cast %198 : vector<16x32xf32> to vector<2x8x32xf32>
    %200 = vector.extract_strided_slice %197 {offsets = [0, 32], sizes = [16, 32], strides = [1, 1]} : vector<16x96xf32> to vector<16x32xf32>
    %201 = vector.shape_cast %200 : vector<16x32xf32> to vector<2x8x32xf32>
    %202 = vector.extract_strided_slice %197 {offsets = [0, 64], sizes = [16, 32], strides = [1, 1]} : vector<16x96xf32> to vector<16x32xf32>
    %203 = vector.shape_cast %202 : vector<16x32xf32> to vector<2x8x32xf32>
    %204 = vector.extract_strided_slice %199 {offsets = [0, 0, 0], sizes = [2, 8, 8], strides = [1, 1, 1]} : vector<2x8x32xf32> to vector<2x8x8xf32>
    %205 = vector.extract_strided_slice %201 {offsets = [0, 0, 0], sizes = [2, 8, 8], strides = [1, 1, 1]} : vector<2x8x32xf32> to vector<2x8x8xf32>
    "tpu.trace_start"() <{level = 10 : i32, message = "bqd,bkd->bqk"}> : () -> ()
    %cst_94 = arith.constant dense<0.000000e+00> : vector<2x8x8xf32>
    %206 = tpu.matmul %204, %205, %cst_94 {dimension_numbers = #tpu.dot_dimension_numbers<[2], [2], [1], [1], [0, 0, 0, 1, 1, 1], [0], [0]>} : vector<2x8x8xf32>, vector<2x8x8xf32>, vector<2x8x8xf32> -> vector<2x8x8xf32>
    "tpu.trace_stop"() : () -> ()
    %cst_95 = arith.constant 0.353553385 : f32
    %207 = vector.broadcast %cst_95 : f32 to vector<2x8x8xf32>
    %208 = arith.mulf %206, %207 : vector<2x8x8xf32>
    %cst_96 = arith.constant dense<0xFF800000> : vector<2x8xf32>
    %209 = vector.multi_reduction <maximumf>, %208, %cst_96 [2] : vector<2x8x8xf32> to vector<2x8xf32>
    %cst_97 = arith.constant 0xFF800000 : f32
    %210 = vector.broadcast %cst_97 : f32 to vector<2x8xf32>
    %211 = arith.maximumf %210, %209 : vector<2x8xf32>
    %212 = vector.shape_cast %211 : vector<2x8xf32> to vector<2x8x1xf32>
    %213 = vector.broadcast %212 : vector<2x8x1xf32> to vector<2x8x8xf32>
    %214 = arith.subf %208, %213 : vector<2x8x8xf32>
    %215 = math.exp %214 : vector<2x8x8xf32>
    %cst_98 = arith.constant dense<0.000000e+00> : vector<2x8xf32>
    %216 = vector.multi_reduction <add>, %215, %cst_98 [2] : vector<2x8x8xf32> to vector<2x8xf32>
    %217 = vector.shape_cast %216 : vector<2x8xf32> to vector<2x8x1xf32>
    %218 = vector.broadcast %217 : vector<2x8x1xf32> to vector<2x8x8xf32>
    %219 = arith.divf %215, %218 : vector<2x8x8xf32>
    %220 = vector.extract_strided_slice %203 {offsets = [0, 0, 0], sizes = [2, 8, 8], strides = [1, 1, 1]} : vector<2x8x32xf32> to vector<2x8x8xf32>
    "tpu.trace_start"() <{level = 10 : i32, message = "bqk,bkd->bqd"}> : () -> ()
    %cst_99 = arith.constant dense<0.000000e+00> : vector<2x8x8xf32>
    %221 = tpu.matmul %219, %220, %cst_99 {dimension_numbers = #tpu.dot_dimension_numbers<[2], [1], [1], [2], [0, 0, 0, 1, 1, 2], [0], [0]>} : vector<2x8x8xf32>, vector<2x8x8xf32>, vector<2x8x8xf32> -> vector<2x8x8xf32>
    "tpu.trace_stop"() : () -> ()
    %222 = vector.extract_strided_slice %199 {offsets = [0, 0, 8], sizes = [2, 8, 8], strides = [1, 1, 1]} : vector<2x8x32xf32> to vector<2x8x8xf32>
    %223 = vector.extract_strided_slice %201 {offsets = [0, 0, 8], sizes = [2, 8, 8], strides = [1, 1, 1]} : vector<2x8x32xf32> to vector<2x8x8xf32>
    "tpu.trace_start"() <{level = 10 : i32, message = "bqd,bkd->bqk"}> : () -> ()
    %cst_100 = arith.constant dense<0.000000e+00> : vector<2x8x8xf32>
    %224 = tpu.matmul %222, %223, %cst_100 {dimension_numbers = #tpu.dot_dimension_numbers<[2], [2], [1], [1], [0, 0, 0, 1, 1, 1], [0], [0]>} : vector<2x8x8xf32>, vector<2x8x8xf32>, vector<2x8x8xf32> -> vector<2x8x8xf32>
    "tpu.trace_stop"() : () -> ()
    %cst_101 = arith.constant 0.353553385 : f32
    %225 = vector.broadcast %cst_101 : f32 to vector<2x8x8xf32>
    %226 = arith.mulf %224, %225 : vector<2x8x8xf32>
    %cst_102 = arith.constant dense<0xFF800000> : vector<2x8xf32>
    %227 = vector.multi_reduction <maximumf>, %226, %cst_102 [2] : vector<2x8x8xf32> to vector<2x8xf32>
    %cst_103 = arith.constant 0xFF800000 : f32
    %228 = vector.broadcast %cst_103 : f32 to vector<2x8xf32>
    %229 = arith.maximumf %228, %227 : vector<2x8xf32>
    %230 = vector.shape_cast %229 : vector<2x8xf32> to vector<2x8x1xf32>
    %231 = vector.broadcast %230 : vector<2x8x1xf32> to vector<2x8x8xf32>
    %232 = arith.subf %226, %231 : vector<2x8x8xf32>
    %233 = math.exp %232 : vector<2x8x8xf32>
    %cst_104 = arith.constant dense<0.000000e+00> : vector<2x8xf32>
    %234 = vector.multi_reduction <add>, %233, %cst_104 [2] : vector<2x8x8xf32> to vector<2x8xf32>
    %235 = vector.shape_cast %234 : vector<2x8xf32> to vector<2x8x1xf32>
    %236 = vector.broadcast %235 : vector<2x8x1xf32> to vector<2x8x8xf32>
    %237 = arith.divf %233, %236 : vector<2x8x8xf32>
    %238 = vector.extract_strided_slice %203 {offsets = [0, 0, 8], sizes = [2, 8, 8], strides = [1, 1, 1]} : vector<2x8x32xf32> to vector<2x8x8xf32>
    "tpu.trace_start"() <{level = 10 : i32, message = "bqk,bkd->bqd"}> : () -> ()
    %cst_105 = arith.constant dense<0.000000e+00> : vector<2x8x8xf32>
    %239 = tpu.matmul %237, %238, %cst_105 {dimension_numbers = #tpu.dot_dimension_numbers<[2], [1], [1], [2], [0, 0, 0, 1, 1, 2], [0], [0]>} : vector<2x8x8xf32>, vector<2x8x8xf32>, vector<2x8x8xf32> -> vector<2x8x8xf32>
    "tpu.trace_stop"() : () -> ()
    %240 = vector.extract_strided_slice %199 {offsets = [0, 0, 16], sizes = [2, 8, 8], strides = [1, 1, 1]} : vector<2x8x32xf32> to vector<2x8x8xf32>
    %241 = vector.extract_strided_slice %201 {offsets = [0, 0, 16], sizes = [2, 8, 8], strides = [1, 1, 1]} : vector<2x8x32xf32> to vector<2x8x8xf32>
    "tpu.trace_start"() <{level = 10 : i32, message = "bqd,bkd->bqk"}> : () -> ()
    %cst_106 = arith.constant dense<0.000000e+00> : vector<2x8x8xf32>
    %242 = tpu.matmul %240, %241, %cst_106 {dimension_numbers = #tpu.dot_dimension_numbers<[2], [2], [1], [1], [0, 0, 0, 1, 1, 1], [0], [0]>} : vector<2x8x8xf32>, vector<2x8x8xf32>, vector<2x8x8xf32> -> vector<2x8x8xf32>
    "tpu.trace_stop"() : () -> ()
    %cst_107 = arith.constant 0.353553385 : f32
    %243 = vector.broadcast %cst_107 : f32 to vector<2x8x8xf32>
    %244 = arith.mulf %242, %243 : vector<2x8x8xf32>
    %cst_108 = arith.constant dense<0xFF800000> : vector<2x8xf32>
    %245 = vector.multi_reduction <maximumf>, %244, %cst_108 [2] : vector<2x8x8xf32> to vector<2x8xf32>
    %cst_109 = arith.constant 0xFF800000 : f32
    %246 = vector.broadcast %cst_109 : f32 to vector<2x8xf32>
    %247 = arith.maximumf %246, %245 : vector<2x8xf32>
    %248 = vector.shape_cast %247 : vector<2x8xf32> to vector<2x8x1xf32>
    %249 = vector.broadcast %248 : vector<2x8x1xf32> to vector<2x8x8xf32>
    %250 = arith.subf %244, %249 : vector<2x8x8xf32>
    %251 = math.exp %250 : vector<2x8x8xf32>
    %cst_110 = arith.constant dense<0.000000e+00> : vector<2x8xf32>
    %252 = vector.multi_reduction <add>, %251, %cst_110 [2] : vector<2x8x8xf32> to vector<2x8xf32>
    %253 = vector.shape_cast %252 : vector<2x8xf32> to vector<2x8x1xf32>
    %254 = vector.broadcast %253 : vector<2x8x1xf32> to vector<2x8x8xf32>
    %255 = arith.divf %251, %254 : vector<2x8x8xf32>
    %256 = vector.extract_strided_slice %203 {offsets = [0, 0, 16], sizes = [2, 8, 8], strides = [1, 1, 1]} : vector<2x8x32xf32> to vector<2x8x8xf32>
    "tpu.trace_start"() <{level = 10 : i32, message = "bqk,bkd->bqd"}> : () -> ()
    %cst_111 = arith.constant dense<0.000000e+00> : vector<2x8x8xf32>
    %257 = tpu.matmul %255, %256, %cst_111 {dimension_numbers = #tpu.dot_dimension_numbers<[2], [1], [1], [2], [0, 0, 0, 1, 1, 2], [0], [0]>} : vector<2x8x8xf32>, vector<2x8x8xf32>, vector<2x8x8xf32> -> vector<2x8x8xf32>
    "tpu.trace_stop"() : () -> ()
    %258 = vector.extract_strided_slice %199 {offsets = [0, 0, 24], sizes = [2, 8, 8], strides = [1, 1, 1]} : vector<2x8x32xf32> to vector<2x8x8xf32>
    %259 = vector.extract_strided_slice %201 {offsets = [0, 0, 24], sizes = [2, 8, 8], strides = [1, 1, 1]} : vector<2x8x32xf32> to vector<2x8x8xf32>
    "tpu.trace_start"() <{level = 10 : i32, message = "bqd,bkd->bqk"}> : () -> ()
    %cst_112 = arith.constant dense<0.000000e+00> : vector<2x8x8xf32>
    %260 = tpu.matmul %258, %259, %cst_112 {dimension_numbers = #tpu.dot_dimension_numbers<[2], [2], [1], [1], [0, 0, 0, 1, 1, 1], [0], [0]>} : vector<2x8x8xf32>, vector<2x8x8xf32>, vector<2x8x8xf32> -> vector<2x8x8xf32>
    "tpu.trace_stop"() : () -> ()
    %cst_113 = arith.constant 0.353553385 : f32
    %261 = vector.broadcast %cst_113 : f32 to vector<2x8x8xf32>
    %262 = arith.mulf %260, %261 : vector<2x8x8xf32>
    %cst_114 = arith.constant dense<0xFF800000> : vector<2x8xf32>
    %263 = vector.multi_reduction <maximumf>, %262, %cst_114 [2] : vector<2x8x8xf32> to vector<2x8xf32>
    %cst_115 = arith.constant 0xFF800000 : f32
    %264 = vector.broadcast %cst_115 : f32 to vector<2x8xf32>
    %265 = arith.maximumf %264, %263 : vector<2x8xf32>
    %266 = vector.shape_cast %265 : vector<2x8xf32> to vector<2x8x1xf32>
    %267 = vector.broadcast %266 : vector<2x8x1xf32> to vector<2x8x8xf32>
    %268 = arith.subf %262, %267 : vector<2x8x8xf32>
    %269 = math.exp %268 : vector<2x8x8xf32>
    %cst_116 = arith.constant dense<0.000000e+00> : vector<2x8xf32>
    %270 = vector.multi_reduction <add>, %269, %cst_116 [2] : vector<2x8x8xf32> to vector<2x8xf32>
    %271 = vector.shape_cast %270 : vector<2x8xf32> to vector<2x8x1xf32>
    %272 = vector.broadcast %271 : vector<2x8x1xf32> to vector<2x8x8xf32>
    %273 = arith.divf %269, %272 : vector<2x8x8xf32>
    %274 = vector.extract_strided_slice %203 {offsets = [0, 0, 24], sizes = [2, 8, 8], strides = [1, 1, 1]} : vector<2x8x32xf32> to vector<2x8x8xf32>
    "tpu.trace_start"() <{level = 10 : i32, message = "bqk,bkd->bqd"}> : () -> ()
    %cst_117 = arith.constant dense<0.000000e+00> : vector<2x8x8xf32>
    %275 = tpu.matmul %273, %274, %cst_117 {dimension_numbers = #tpu.dot_dimension_numbers<[2], [1], [1], [2], [0, 0, 0, 1, 1, 2], [0], [0]>} : vector<2x8x8xf32>, vector<2x8x8xf32>, vector<2x8x8xf32> -> vector<2x8x8xf32>
    "tpu.trace_stop"() : () -> ()
    %276 = tpu.concatenate %221, %239, %257, %275 in 2 : vector<2x8x8xf32>, vector<2x8x8xf32>, vector<2x8x8xf32>, vector<2x8x8xf32> -> vector<2x8x32xf32>
    %277 = vector.shape_cast %276 : vector<2x8x32xf32> to vector<16x32xf32>
    %c1_118 = arith.constant 1 : index
    %c0_119 = arith.constant 0 : index
    %c0_120 = arith.constant 0 : index
    %278 = vector.load %arg7[%c1_118, %c0_119, %c0_120] : memref<2x32x32xf32, #tpu.memory_space<vmem>>, vector<1x32x32xf32>
    %279 = vector.shape_cast %278 : vector<1x32x32xf32> to vector<32x32xf32>
    %cst_121 = arith.constant dense<0.000000e+00> : vector<16x32xf32>
    %280 = tpu.matmul %277, %279, %cst_121 {dimension_numbers = #tpu.dot_dimension_numbers<[1], [0], [0], [1], [0, 0, 1, 1], [], []>} : vector<16x32xf32>, vector<32x32xf32>, vector<16x32xf32> -> vector<16x32xf32>
    %c1_122 = arith.constant 1 : index
    %c0_123 = arith.constant 0 : index
    %c0_124 = arith.constant 0 : index
    %281 = vector.load %arg8[%c1_122, %c0_123, %c0_124] : memref<2x1x32xf32, #tpu.memory_space<vmem>>, vector<1x1x32xf32>
    %282 = vector.shape_cast %281 : vector<1x1x32xf32> to vector<1x32xf32>
    %283 = vector.broadcast %282 : vector<1x32xf32> to vector<16x32xf32>
    %284 = arith.addf %280, %283 : vector<16x32xf32>
    %285 = arith.addf %190, %284 : vector<16x32xf32>
    %c1_125 = arith.constant 1 : index
    %c0_126 = arith.constant 0 : index
    %c0_127 = arith.constant 0 : index
    %286 = vector.load %arg9[%c1_125, %c0_126, %c0_127] : memref<2x1x32xf32, #tpu.memory_space<vmem>>, vector<1x1x32xf32>
    %287 = vector.shape_cast %286 : vector<1x1x32xf32> to vector<1x32xf32>
    %c1_128 = arith.constant 1 : index
    %c0_129 = arith.constant 0 : index
    %c0_130 = arith.constant 0 : index
    %288 = vector.load %arg10[%c1_128, %c0_129, %c0_130] : memref<2x1x32xf32, #tpu.memory_space<vmem>>, vector<1x1x32xf32>
    %289 = vector.shape_cast %288 : vector<1x1x32xf32> to vector<1x32xf32>
    %cst_131 = arith.constant dense<0.000000e+00> : vector<16xf32>
    %290 = vector.multi_reduction <add>, %285, %cst_131 [1] : vector<16x32xf32> to vector<16xf32>
    %291 = vector.shape_cast %290 : vector<16xf32> to vector<16x1xf32>
    %cst_132 = arith.constant 3.200000e+01 : f32
    %292 = vector.broadcast %cst_132 : f32 to vector<16x1xf32>
    %293 = arith.divf %291, %292 : vector<16x1xf32>
    %294 = vector.broadcast %293 : vector<16x1xf32> to vector<16x32xf32>
    %295 = arith.subf %285, %294 : vector<16x32xf32>
    %296 = arith.mulf %295, %295 : vector<16x32xf32>
    %cst_133 = arith.constant dense<0.000000e+00> : vector<16xf32>
    %297 = vector.multi_reduction <add>, %296, %cst_133 [1] : vector<16x32xf32> to vector<16xf32>
    %298 = vector.shape_cast %297 : vector<16xf32> to vector<16x1xf32>
    %cst_134 = arith.constant 3.200000e+01 : f32
    %299 = vector.broadcast %cst_134 : f32 to vector<16x1xf32>
    %300 = arith.divf %298, %299 : vector<16x1xf32>
    %301 = vector.broadcast %293 : vector<16x1xf32> to vector<16x32xf32>
    %302 = arith.subf %285, %301 : vector<16x32xf32>
    %cst_135 = arith.constant 9.99999996E-13 : f32
    %303 = vector.broadcast %cst_135 : f32 to vector<16x1xf32>
    %304 = arith.addf %300, %303 : vector<16x1xf32>
    %305 = math.rsqrt %304 : vector<16x1xf32>
    %306 = vector.broadcast %305 : vector<16x1xf32> to vector<16x32xf32>
    %307 = arith.mulf %302, %306 : vector<16x32xf32>
    %308 = vector.broadcast %287 : vector<1x32xf32> to vector<16x32xf32>
    %309 = arith.mulf %307, %308 : vector<16x32xf32>
    %310 = vector.broadcast %289 : vector<1x32xf32> to vector<16x32xf32>
    %311 = arith.addf %309, %310 : vector<16x32xf32>
    %c1_136 = arith.constant 1 : index
    %c0_137 = arith.constant 0 : index
    %c0_138 = arith.constant 0 : index
    %312 = vector.load %arg11[%c1_136, %c0_137, %c0_138] : memref<2x32x128xf32, #tpu.memory_space<vmem>>, vector<1x32x128xf32>
    %313 = vector.shape_cast %312 : vector<1x32x128xf32> to vector<32x128xf32>
    %cst_139 = arith.constant dense<0.000000e+00> : vector<16x128xf32>
    %314 = tpu.matmul %311, %313, %cst_139 {dimension_numbers = #tpu.dot_dimension_numbers<[1], [0], [0], [1], [0, 0, 1, 1], [], []>} : vector<16x32xf32>, vector<32x128xf32>, vector<16x128xf32> -> vector<16x128xf32>
    %c1_140 = arith.constant 1 : index
    %c0_141 = arith.constant 0 : index
    %c0_142 = arith.constant 0 : index
    %315 = vector.load %arg12[%c1_140, %c0_141, %c0_142] : memref<2x1x128xf32, #tpu.memory_space<vmem>>, vector<1x1x128xf32>
    %316 = vector.shape_cast %315 : vector<1x1x128xf32> to vector<1x128xf32>
    %317 = vector.broadcast %316 : vector<1x128xf32> to vector<16x128xf32>
    %318 = arith.addf %314, %317 : vector<16x128xf32>
    %cst_143 = arith.constant 5.000000e-01 : f32
    %319 = vector.broadcast %cst_143 : f32 to vector<16x128xf32>
    %320 = arith.mulf %319, %318 : vector<16x128xf32>
    %cst_144 = arith.constant 2.000000e+00 : f32
    %321 = math.sqrt %cst_144 : f32
    %322 = vector.broadcast %321 : f32 to vector<16x128xf32>
    %323 = arith.divf %318, %322 : vector<16x128xf32>
    %324 = math.erf %323 : vector<16x128xf32>
    %cst_145 = arith.constant 1.000000e+00 : f32
    %325 = vector.broadcast %cst_145 : f32 to vector<16x128xf32>
    %326 = arith.addf %325, %324 : vector<16x128xf32>
    %327 = arith.mulf %320, %326 : vector<16x128xf32>
    %c1_146 = arith.constant 1 : index
    %c0_147 = arith.constant 0 : index
    %c0_148 = arith.constant 0 : index
    %328 = vector.load %arg13[%c1_146, %c0_147, %c0_148] : memref<2x128x32xf32, #tpu.memory_space<vmem>>, vector<1x128x32xf32>
    %329 = vector.shape_cast %328 : vector<1x128x32xf32> to vector<128x32xf32>
    %cst_149 = arith.constant dense<0.000000e+00> : vector<16x32xf32>
    %330 = tpu.matmul %327, %329, %cst_149 {dimension_numbers = #tpu.dot_dimension_numbers<[1], [0], [0], [1], [0, 0, 1, 1], [], []>} : vector<16x128xf32>, vector<128x32xf32>, vector<16x32xf32> -> vector<16x32xf32>
    %c1_150 = arith.constant 1 : index
    %c0_151 = arith.constant 0 : index
    %c0_152 = arith.constant 0 : index
    %331 = vector.load %arg14[%c1_150, %c0_151, %c0_152] : memref<2x1x32xf32, #tpu.memory_space<vmem>>, vector<1x1x32xf32>
    %332 = vector.shape_cast %331 : vector<1x1x32xf32> to vector<1x32xf32>
    %333 = vector.broadcast %332 : vector<1x32xf32> to vector<16x32xf32>
    %334 = arith.addf %330, %333 : vector<16x32xf32>
    %335 = arith.addf %311, %334 : vector<16x32xf32>
    %c1_153 = arith.constant 1 : index
    %c0_154 = arith.constant 0 : index
    %c0_155 = arith.constant 0 : index
    %336 = vector.load %arg15[%c1_153, %c0_154, %c0_155] : memref<2x1x32xf32, #tpu.memory_space<vmem>>, vector<1x1x32xf32>
    %337 = vector.shape_cast %336 : vector<1x1x32xf32> to vector<1x32xf32>
    %c1_156 = arith.constant 1 : index
    %c0_157 = arith.constant 0 : index
    %c0_158 = arith.constant 0 : index
    %338 = vector.load %arg16[%c1_156, %c0_157, %c0_158] : memref<2x1x32xf32, #tpu.memory_space<vmem>>, vector<1x1x32xf32>
    %339 = vector.shape_cast %338 : vector<1x1x32xf32> to vector<1x32xf32>
    %cst_159 = arith.constant dense<0.000000e+00> : vector<16xf32>
    %340 = vector.multi_reduction <add>, %335, %cst_159 [1] : vector<16x32xf32> to vector<16xf32>
    %341 = vector.shape_cast %340 : vector<16xf32> to vector<16x1xf32>
    %cst_160 = arith.constant 3.200000e+01 : f32
    %342 = vector.broadcast %cst_160 : f32 to vector<16x1xf32>
    %343 = arith.divf %341, %342 : vector<16x1xf32>
    %344 = vector.broadcast %343 : vector<16x1xf32> to vector<16x32xf32>
    %345 = arith.subf %335, %344 : vector<16x32xf32>
    %346 = arith.mulf %345, %345 : vector<16x32xf32>
    %cst_161 = arith.constant dense<0.000000e+00> : vector<16xf32>
    %347 = vector.multi_reduction <add>, %346, %cst_161 [1] : vector<16x32xf32> to vector<16xf32>
    %348 = vector.shape_cast %347 : vector<16xf32> to vector<16x1xf32>
    %cst_162 = arith.constant 3.200000e+01 : f32
    %349 = vector.broadcast %cst_162 : f32 to vector<16x1xf32>
    %350 = arith.divf %348, %349 : vector<16x1xf32>
    %351 = vector.broadcast %343 : vector<16x1xf32> to vector<16x32xf32>
    %352 = arith.subf %335, %351 : vector<16x32xf32>
    %cst_163 = arith.constant 9.99999996E-13 : f32
    %353 = vector.broadcast %cst_163 : f32 to vector<16x1xf32>
    %354 = arith.addf %350, %353 : vector<16x1xf32>
    %355 = math.rsqrt %354 : vector<16x1xf32>
    %356 = vector.broadcast %355 : vector<16x1xf32> to vector<16x32xf32>
    %357 = arith.mulf %352, %356 : vector<16x32xf32>
    %358 = vector.broadcast %337 : vector<1x32xf32> to vector<16x32xf32>
    %359 = arith.mulf %357, %358 : vector<16x32xf32>
    %360 = vector.broadcast %339 : vector<1x32xf32> to vector<16x32xf32>
    %361 = arith.addf %359, %360 : vector<16x32xf32>
    %362 = vector.shape_cast %361 : vector<16x32xf32> to vector<2x8x32xf32>
    %c0_164 = arith.constant 0 : index
    %c0_165 = arith.constant 0 : index
    %c0_166 = arith.constant 0 : index
    %363 = vector.load %arg17[%c0_164, %c0_165, %c0_166] : memref<1x1x32xf32, #tpu.memory_space<vmem>>, vector<1x1x32xf32>
    %364 = vector.broadcast %363 : vector<1x1x32xf32> to vector<2x8x32xf32>
    %365 = arith.mulf %362, %364 : vector<2x8x32xf32>
    %cst_167 = arith.constant dense<0.000000e+00> : vector<2x8xf32>
    %366 = vector.multi_reduction <add>, %365, %cst_167 [2] : vector<2x8x32xf32> to vector<2x8xf32>
    %367 = vector.shape_cast %366 : vector<2x8xf32> to vector<2x8x1xf32>
    %cst_168 = arith.constant dense<0xFF800000> : vector<2x1xf32>
    %368 = vector.multi_reduction <maximumf>, %367, %cst_168 [1] : vector<2x8x1xf32> to vector<2x1xf32>
    %cst_169 = arith.constant 0xFF800000 : f32
    %369 = vector.broadcast %cst_169 : f32 to vector<2x1xf32>
    %370 = arith.maximumf %369, %368 : vector<2x1xf32>
    %371 = vector.shape_cast %370 : vector<2x1xf32> to vector<2x1x1xf32>
    %372 = vector.broadcast %371 : vector<2x1x1xf32> to vector<2x8x1xf32>
    %373 = arith.subf %367, %372 : vector<2x8x1xf32>
    %374 = math.exp %373 : vector<2x8x1xf32>
    %cst_170 = arith.constant dense<0.000000e+00> : vector<2x1xf32>
    %375 = vector.multi_reduction <add>, %374, %cst_170 [1] : vector<2x8x1xf32> to vector<2x1xf32>
    %376 = vector.shape_cast %375 : vector<2x1xf32> to vector<2x1x1xf32>
    %377 = vector.broadcast %376 : vector<2x1x1xf32> to vector<2x8x1xf32>
    %378 = arith.divf %374, %377 : vector<2x8x1xf32>
    %379 = vector.broadcast %378 : vector<2x8x1xf32> to vector<2x8x32xf32>
    %380 = arith.mulf %379, %362 : vector<2x8x32xf32>
    %cst_171 = arith.constant dense<0.000000e+00> : vector<2x32xf32>
    %381 = vector.multi_reduction <add>, %380, %cst_171 [1] : vector<2x8x32xf32> to vector<2x32xf32>
    %cst_172 = arith.constant dense<0xFF800000> : vector<2x32xf32>
    %382 = vector.multi_reduction <maximumf>, %362, %cst_172 [1] : vector<2x8x32xf32> to vector<2x32xf32>
    %383 = tpu.concatenate %381, %382 in 1 : vector<2x32xf32>, vector<2x32xf32> -> vector<2x64xf32>
    %c0_173 = arith.constant 0 : index
    %c0_174 = arith.constant 0 : index
    %384 = vector.load %arg18[%c0_173, %c0_174] : memref<64x32xf32, #tpu.memory_space<vmem>>, vector<64x32xf32>
    %cst_175 = arith.constant dense<0.000000e+00> : vector<2x32xf32>
    %385 = tpu.matmul %383, %384, %cst_175 {dimension_numbers = #tpu.dot_dimension_numbers<[1], [0], [0], [1], [0, 0, 1, 1], [], []>} : vector<2x64xf32>, vector<64x32xf32>, vector<2x32xf32> -> vector<2x32xf32>
    %c0_176 = arith.constant 0 : index
    %c0_177 = arith.constant 0 : index
    %386 = vector.load %arg19[%c0_176, %c0_177] : memref<1x32xf32, #tpu.memory_space<vmem>>, vector<1x32xf32>
    %387 = vector.broadcast %386 : vector<1x32xf32> to vector<2x32xf32>
    %388 = arith.addf %385, %387 : vector<2x32xf32>
    %cst_178 = arith.constant 5.000000e-01 : f32
    %389 = vector.broadcast %cst_178 : f32 to vector<2x32xf32>
    %390 = arith.mulf %389, %388 : vector<2x32xf32>
    %cst_179 = arith.constant 2.000000e+00 : f32
    %391 = math.sqrt %cst_179 : f32
    %392 = vector.broadcast %391 : f32 to vector<2x32xf32>
    %393 = arith.divf %388, %392 : vector<2x32xf32>
    %394 = math.erf %393 : vector<2x32xf32>
    %cst_180 = arith.constant 1.000000e+00 : f32
    %395 = vector.broadcast %cst_180 : f32 to vector<2x32xf32>
    %396 = arith.addf %395, %394 : vector<2x32xf32>
    %397 = arith.mulf %390, %396 : vector<2x32xf32>
    %c0_181 = arith.constant 0 : index
    %c0_182 = arith.constant 0 : index
    %398 = vector.load %arg20[%c0_181, %c0_182] : memref<32x128xf32, #tpu.memory_space<vmem>>, vector<32x128xf32>
    %cst_183 = arith.constant dense<0.000000e+00> : vector<2x128xf32>
    %399 = tpu.matmul %397, %398, %cst_183 {dimension_numbers = #tpu.dot_dimension_numbers<[1], [0], [0], [1], [0, 0, 1, 1], [], []>} : vector<2x32xf32>, vector<32x128xf32>, vector<2x128xf32> -> vector<2x128xf32>
    %c0_184 = arith.constant 0 : index
    %c0_185 = arith.constant 0 : index
    %400 = vector.load %arg21[%c0_184, %c0_185] : memref<1x128xf32, #tpu.memory_space<vmem>>, vector<1x128xf32>
    %401 = vector.broadcast %400 : vector<1x128xf32> to vector<2x128xf32>
    %402 = arith.addf %399, %401 : vector<2x128xf32>
    %c0_186 = arith.constant 0 : index
    %c0_187 = arith.constant 0 : index
    %403 = vector.load %arg22[%c0_186, %c0_187] : memref<2x128xf32, #tpu.memory_space<vmem>>, vector<2x128xf32>
    tpu.vector_store %arg22[%c0_186, %c0_187], %402 {strides = array<i32>} : memref<2x128xf32, #tpu.memory_space<vmem>>, vector<2x128xf32>,
    return
  }
}

</mosaic_0001>

<bundles_post_ra>
// kernel: forward.1
= control target key start
LH: loop header
LB: loop body
LE: loop exit
PB: predicated region body
PF: predicated region fallthrough
CT: control target
= control target key end

     0   :  { %s3699_s0 = inlined_call_operand.vmem [shape: f32[16,32], index: 0, kind: input, shape index: {}]   ;;  %s3700_s1 = inlined_call_operand.vmem [shape: f32[16,32], index: 1, kind: input, shape index: {}]   ;;  %s3701_s2 = inlined_call_operand.vmem [shape: f32[32,32], index: 2, kind: input, shape index: {}]   ;;  %s3702_s3 = inlined_call_operand.vmem [shape: f32[1,32], index: 3, kind: input, shape index: {}]   ;;  %s3703_s4 = inlined_call_operand.vmem [shape: f32[1,32], index: 4, kind: input, shape index: {}]   ;;  %s3704_s5 = inlined_call_operand.vmem [shape: f32[2,32,96], index: 5, kind: input, shape index: {}]   ;;  %s3705_s6 = inlined_call_operand.vmem [shape: f32[2,1,96], index: 6, kind: input, shape index: {}]   ;;  %s3706_s7 = inlined_call_operand.vmem [shape: f32[2,32,32], index: 7, kind: input, shape index: {}]   ;;  %s3707_s8 = inlined_call_operand.vmem [shape: f32[2,1,32], index: 8, kind: input, shape index: {}]   ;;  %s3708_s9 = inlined_call_operand.vmem [shape: f32[2,1,32], index: 9, kind: input, shape index: {}]   ;;  %s3709_s10 = inlined_call_operand.vmem [shape: f32[2,1,32], index: 10, kind: input, shape index: {}]   ;;  %s3710_s11 = inlined_call_operand.vmem [shape: f32[2,32,128], index: 11, kind: input, shape index: {}]   ;;  %s3711_s12 = inlined_call_operand.vmem [shape: f32[2,1,128], index: 12, kind: input, shape index: {}]   ;;  %s3712_s13 = inlined_call_operand.vmem [shape: f32[2,128,32], index: 13, kind: input, shape index: {}]   ;;  %s3713_s14 = inlined_call_operand.vmem [shape: f32[2,1,32], index: 14, kind: input, shape index: {}]   ;;  %s3714_s15 = inlined_call_operand.vmem [shape: f32[2,1,32], index: 15, kind: input, shape index: {}]   ;;  %s3715_s16 = inlined_call_operand.vmem [shape: f32[2,1,32], index: 16, kind: input, shape index: {}]   ;;  %s3716_s17 = inlined_call_operand.vmem [shape: f32[1,1,32], index: 17, kind: input, shape index: {}]   ;;  %s3717_s18 = inlined_call_operand.vmem [shape: f32[64,32], index: 18, kind: input, shape index: {}]   ;;  %s3718_s19 = inlined_call_operand.vmem [shape: f32[1,32], index: 19, kind: input, shape index: {}]   ;;  %s3719_s20 = inlined_call_operand.vmem [shape: f32[32,128], index: 20, kind: input, shape index: {}]   ;;  %s3720_s21 = inlined_call_operand.vmem [shape: f32[1,128], index: 21, kind: input, shape index: {}]   ;;  %s3721_s22 = inlined_call_operand.hbm [shape: f32[2,128], index: 22, kind: output, shape index: {}]  }
   0x1   :  { %3746 = sst [smem:[#allocation5_spill]] %s3699_s0 }
   0x2   :  { %3747 = sst [smem:[#allocation6_spill]] %s3700_s1 }
   0x3   :  { %3748 = sst [smem:[#allocation7_spill]] %s3701_s2 }
   0x4   :  { %3749 = sst [smem:[#allocation8_spill]] %s3702_s3 }
   0x5   :  { %3750 = sst [smem:[#allocation9_spill]] %s3703_s4 }
   0x6   :  { %3751 = sst [smem:[#allocation10_spill]] %s3704_s5 }
   0x7   :  { %3752 = sst [smem:[#allocation11_spill]] %s3705_s6 }
   0x8   :  { %s3753_s29 = sld [smem:[#allocation7_spill]]  ;;  %vm78_vm0 = vcmask 261120  }
   0x9   :  { %s3754_s24 = sld [smem:[#allocation5_spill]] }
   0xe   :  { %v77_v0 = vld [vmem:[%s3753_s29 + $0x18] sm:$0xff]  ;;  %v76_v1 = vld [vmem:[%s3753_s29 + $0x10] sm:$0xff]  ;;  %v75_v2 = vld [vmem:[%s3753_s29 + $0x8] sm:$0xff] }
   0xf   :  { %97 = vmatpush.msra.mxu0 %v77_v0  ;;  %128 = vmatpush.msra.mxu1 %v77_v0  ;;  %v72_v3 = vld [vmem:[%s3754_s24] sm:$0xff]  ;;  %v73_v6 = vld [vmem:[%s3754_s24 + $0x8] sm:$0xff] }
  0x10   :  { %v74_v4 = vld [vmem:[%s3753_s29] sm:$0xff]  ;;  %v108_v5 = vmul.f32 %v72_v3, %v72_v3 }
  0x11   :  { %98 = vmatpush.msra.mxu0 %v76_v1  ;;  %129 = vmatpush.msra.mxu1 %v76_v1 }
  0x13   :  { %99 = vmatpush.msra.mxu0 %v75_v2  ;;  %130 = vmatpush.msra.mxu1 %v75_v2 }
  0x15   :  { %100 = vmatpush.msra.mxu0 %v74_v4  ;;  %131 = vmatpush.msra.mxu1 %v74_v4 }
  0x16   :  { %2492 = vmatmul.msk.f32.vlgmr.msra.gmra.mxu0 %vm78_vm0, %v72_v3  ;;  %2494 = vmatmul.msk.f32.vlgmr.msra.gmra.mxu1 %vm78_vm0, %v108_v5 }
  0x17   :  { %27 = vsyncpa [#allocation3], 0  ;;  %v109_v7 = vmul.f32 %v73_v6, %v73_v6  ;;  %s3755_s28 = sld [smem:[#allocation10_spill]]  ;;  %s2780_s5 = smov 80   ;;  %vm225_vm7 = vcmask 64512  }
  0x18   :  { %s3756_s6 = sld [smem:[#allocation8_spill]]  ;;  %s2781_s24 = smov 120  }
  0x19   :  { %s3757_s2 = sld [smem:[#allocation9_spill]]  ;;  %s2783_s25 = smov 88  }
  0x1a   :  { %s3758_s29 = sld [smem:[#allocation6_spill]]  ;;  %s3739_s26 = smov 112  }
  0x1b   :  { %s3759_s1 = sld [smem:[#allocation11_spill]]  ;;  %s3733_s27 = smov 72  }
  0x1c   :  { %s3737_s3 = smov 56   ;;  %s3729_s30 = smov 48  }
  0x1d   :  { %v188_v8 = vld [vmem:[%s3755_s28 + $0x18] sm:$0xff]  ;;  %v187_v9 = vld [vmem:[%s3755_s28 + $0x10] sm:$0xff]  ;;  %v186_v10 = vld [vmem:[%s3755_s28 + $0x8] sm:$0xff]  ;;  %s3727_s4 = smov 40   ;;  %s3735_s0 = smov 8  }
  0x1e   :  { %2493 = vmatmul.msk.f32.gmra.mxu0 %vm78_vm0, %v73_v6  ;;  %2495 = vmatmul.msk.f32.gmra.mxu1 %vm78_vm0, %v109_v7  ;;  %v185_v11 = vld [vmem:[%s3755_s28] sm:$0xff]  ;;  %s3741_s23 = smov 16  }
  0x1f   :  { %211 = vmatpush.msrb.mxu1 %v188_v8  ;;  %v2627_v31 = vld [vmem:[%s3756_s6] ss:$0 sm:$0xff]  ;;  %s2782_s6 = smov 96  }
  0x20   :  { %v2628_v35 = vld [vmem:[%s3757_s2] ss:$0 sm:$0xff]  ;;  %v182_v47 = vld [vmem:[%s3758_s29 + $0x8] sm:$0xff]  ;;  %s3731_s2 = smov 104  }
  0x21   :  { %212 = vmatpush.msrb.mxu1 %v187_v9  ;;  %v181_v39 = vld [vmem:[%s3758_s29] sm:$0xff]  ;;  %s3743_s29 = smov 64  }
  0x22   :  { %v2629_v50 = vld [vmem:[%s3759_s1] ss:$0 sm:$0xff] }
  0x23   :  { %213 = vmatpush.msrb.mxu1 %v186_v10 }
  0x25   :  { %214 = vmatpush.msrb.mxu1 %v185_v11 }
  0x93   :  { %v102_v12 = vpop.f32.mrf.mxu0  ;;  %v133_v13 = vpop.f32.mrf.mxu1 }
  0x94   :  { %v139_v14 = vmul.f32 %v102_v12, %v102_v12  ;;  %v143_v30 = vsub.f32 %v72_v3, %v102_v12 }
  0x96   :  { %v141_v15 = vsub.f32 %v133_v13, %v139_v14 }
  0x98   :  { %v145_v16 = vadd.f32 1e-05, %v141_v15 }
  0x9a   :  { %2648 = vrsqrt.f32 %v145_v16  ;;  %vm153_vm2 = vweird.f32 %v145_v16 }
  0x9b   :  { %v105_v17 = vpop.f32.mrf.mxu0  ;;  %v136_v18 = vpop.f32.mrf.mxu1 }
  0x9c   :  { %v140_v19 = vmul.f32 %v105_v17, %v105_v17  ;;  %v144_v42 = vsub.f32 %v73_v6, %v105_v17 }
  0x9e   :  { %v142_v20 = vsub.f32 %v136_v18, %v140_v19 }
  0xa0   :  { %v2649_v21 = vpop.eup %2648  ;;  %v146_v22 = vadd.f32 1e-05, %v142_v20 }
  0xa1   :  { %v148_v23 = vmul.f32 %v2649_v21, %v145_v16  ;;  %vm154_vm1 = vweird.f32 %v2649_v21 }
  0xa2   :  { %2650 = vrsqrt.f32 %v146_v22  ;;  %vm155_vm3 = vmor %vm153_vm2, %vm154_vm1  ;;  %vm163_vm5 = vweird.f32 %v146_v22 }
  0xa3   :  { %v149_v24 = vmul.f32 %v2649_v21, %v148_v23 }
  0xa5   :  { %v150_v25 = vmul.f32 0.5, %v149_v24 }
  0xa7   :  { %v151_v26 = vsub.f32 1.5, %v150_v25 }
  0xa8   :  { %v2651_v27 = vpop.eup %2650 }
  0xa9   :  { %v152_v28 = vmul.f32 %v2649_v21, %v151_v26  ;;  %v158_v29 = vmul.f32 %v2651_v27, %v146_v22  ;;  %vm164_vm4 = vweird.f32 %v2651_v27 }
  0xaa   :  { %vm165_vm6 = vmor %vm163_vm5, %vm164_vm4 }
  0xab   :  { %v156_v32 = vsel %vm155_vm3, %v2649_v21, %v152_v28  ;;  %v159_v33 = vmul.f32 %v2651_v27, %v158_v29 }
  0xac   :  { %v167_v34 = vmul.f32 %v156_v32, %v143_v30 }
  0xad   :  { %v160_v36 = vmul.f32 0.5, %v159_v33 }
  0xae   :  { %v173_v37 = vmul.f32 %v2627_v31, %v167_v34 }
  0xaf   :  { %v161_v38 = vsub.f32 1.5, %v160_v36 }
  0xb0   :  { %v179_v40 = vadd.f32 %v2628_v35, %v173_v37 }
  0xb1   :  { %v162_v41 = vmul.f32 %v2651_v27, %v161_v38 }
  0xb2   :  { %v2956_v43 = vadd.f32 %v181_v39, %v179_v40 }
  0xb3   :  { %v166_v44 = vsel %vm165_vm6, %v2651_v27, %v162_v41 }
  0xb4   :  { %v168_v45 = vmul.f32 %v166_v44, %v144_v42  ;;  %2496 = vmatmul.msk.f32.vlgmr.msrb.gmra.mxu1 %vm78_vm0, %v2956_v43 }
  0xb6   :  { %v174_v46 = vmul.f32 %v2627_v31, %v168_v45 }
  0xb8   :  { %v180_v48 = vadd.f32 %v2628_v35, %v174_v46 }
  0xba   :  { %v2963_v49 = vadd.f32 %v182_v47, %v180_v48 }
  0xbc   :  { %2497 = vmatmul.msk.f32.gmra.mxu1 %vm78_vm0, %v2963_v49 }
 0x131   :  { %v216_v51 = vpop.f32.mrf.mxu1 }
 0x132   :  { %v2970_v52 = vadd.f32 %v2629_v50, %v216_v51 }
 0x134   :  { %539 = vrot.lane.b32.xlu2 %v2970_v52, %s2780_s5  ;;  %379 = vrot.lane.b32.xlu1 %v2970_v52, %s2781_s24 }
 0x135   :  { %223 = vrot.lane.b32.xlu0 %v2970_v52, %s2782_s6 }
 0x139   :  { %v219_v53 = vpop.f32.mrf.mxu1 }
 0x13a   :  { %v2978_v54 = vadd.f32 %v2629_v50, %v219_v53 }
 0x13c   :  { %409 = vrot.lane.b32.xlu2 %v2978_v54, %s2783_s25  ;;  %251 = vrot.lane.b32.xlu1 %v2978_v54, %s2782_s6 }
 0x13d   :  { %381 = vrot.lane.b32.xlu0 %v2970_v52, %s2783_s25 }
 0x144   :  { %567 = vrot.lane.b32.xlu2 %v2978_v54, %s2780_s5  ;;  %537 = vrot.lane.b32.xlu1 %v2970_v52, %s3739_s26 }
 0x145   :  { %407 = vrot.lane.b32.xlu0 %v2978_v54, %s2781_s24 }
 0x14c   :  { %695 = vrot.lane.b32.xlu2 %v2970_v52, %s3731_s2  ;;  %565 = vrot.lane.b32.xlu1 %v2978_v54, %s3739_s26  ;;  %s2483_s26 = sshll.u32 %s3721_s22, 4  ;;  %s2484_s26 = int_to_ptr.hbm [resolvable:$true] %s2483_s26 }
 0x14d   :  { %697 = vrot.lane.b32.xlu0 %v2970_v52, %s3733_s27 }
 0x154   :  { %723 = vrot.lane.b32.xlu1 %v2978_v54, %s3731_s2 }
 0x155   :  { %725 = vrot.lane.b32.xlu0 %v2978_v54, %s3733_s27  ;;  %s3768_s27 = smov 104  }
 0x18e   :  { %v540_v55 = vpop.permute.xlu2 %539 }
 0x18f   :  { %2510 = vmatpush.xpose.msk.msra.mxu1 %vm225_vm7, %v540_v55 }
 0x196   :  { %v410_v58 = vpop.permute.xlu2 %409 }
 0x19e   :  { %v568_v61 = vpop.permute.xlu2 %567 }
 0x1a6   :  { %v380_v56 = vpop.permute.xlu1 %379  ;;  %v696_v2 = vpop.permute.xlu2 %695 }
 0x1a7   :  { %v224_v57 = vpop.permute.xlu0 %223 }
 0x1a8   :  { %2498 = vmatpush.xpose.msk.msra.mxu3 %vm225_vm7, %v224_v57 }
 0x1ab   :  { %2499 = vmatmul.msk.f32.vlgmr.msra.gmra.mxu3 %vm225_vm7, %v2970_v52 }
 0x1ae   :  { %v252_v59 = vpop.permute.xlu1 %251 }
 0x1af   :  { %v382_v60 = vpop.permute.xlu0 %381  ;;  %2500 = vmatpush.xpose.msk.msrb.mxu3 %vm225_vm7, %v252_v59 }
 0x1b0   :  { %2504 = vmatpush.xpose.msk.msra.mxu2 %vm225_vm7, %v382_v60 }
 0x1b3   :  { %2501 = vmatmul.msk.f32.vlgmr.msrb.gmra.mxu3 %vm225_vm7, %v2978_v54  ;;  %2505 = vmatmul.msk.f32.vlgmr.msra.gmra.mxu2 %vm225_vm7, %v380_v56 }
 0x1b4   :  { %2506 = vmatpush.xpose.msk.msrb.mxu2 %vm225_vm7, %v410_v58  ;;  %v2617_v58 = vpack.i.bf16 %v2978_v54, %v2970_v52 }
 0x1b6   :  { %v538_v62 = vpop.permute.xlu1 %537 }
 0x1b7   :  { %v408_v63 = vpop.permute.xlu0 %407  ;;  %2511 = vmatmul.msk.f32.vlgmr.msra.gmra.mxu1 %vm225_vm7, %v538_v62 }
 0x1b8   :  { %2512 = vmatpush.xpose.msk.msra.mxu2 %vm225_vm7, %v568_v61 }
 0x1bb   :  { %2507 = vmatmul.msk.f32.vlgmr.msrb.gmra.mxu2 %vm225_vm7, %v408_v63 }
 0x1be   :  { %v566_v1 = vpop.permute.xlu1 %565 }
 0x1bf   :  { %v698_v0 = vpop.permute.xlu0 %697 }
 0x1c0   :  { %2516 = vmatpush.xpose.msk.msrb.mxu1 %vm225_vm7, %v698_v0 }
 0x1c3   :  { %2513 = vmatmul.msk.f32.vlgmr.msra.gmra.mxu2 %vm225_vm7, %v566_v1  ;;  %2517 = vmatmul.msk.f32.vlgmr.msrb.gmra.mxu1 %vm225_vm7, %v696_v2 }
 0x1c6   :  { %v724_v4 = vpop.permute.xlu1 %723 }
 0x1c7   :  { %v726_v3 = vpop.permute.xlu0 %725 }
 0x1c8   :  { %2518 = vmatpush.xpose.msk.msrb.mxu2 %vm225_vm7, %v726_v3 }
 0x1cb   :  { %2519 = vmatmul.msk.f32.vlgmr.msrb.gmra.mxu2 %vm225_vm7, %v724_v4 }
 0x22e   :  { %v247_v5 = vpop.f32.mrf.mxu3 }
 0x22f   :  { %v277_v15 = vmul.f32 0.35355338, %v247_v5 }
 0x231   :  { %v279_v17 = vsel %vm225_vm7, %v277_v15, -inf }
 0x234   :  { %v562_v6 = vpop.f32.mrf.mxu1 }
 0x235   :  { %v593_v7 = vmul.f32 0.35355338, %v562_v6 }
 0x236   :  { %v274_v8 = vpop.f32.mrf.mxu3  ;;  %v404_v9 = vpop.f32.mrf.mxu2 }
 0x237   :  { %v278_v10 = vmul.f32 0.35355338, %v274_v8  ;;  %v435_v11 = vmul.f32 0.35355338, %v404_v9  ;;  %v595_v12 = vsel %vm225_vm7, %v593_v7, -inf }
 0x238   :  { %596 = vmax.xlane.f32.xlu2 %v595_v12 }
 0x239   :  { %v437_v13 = vsel %vm225_vm7, %v435_v11, -inf  ;;  %v282_v14 = vsel %vm225_vm7, %v278_v10, -inf }
 0x23a   :  { %438 = vmax.xlane.f32.xlu0 %v437_v13  ;;  %283 = vmax.xlane.f32.xlu1 %v282_v14 }
 0x23e   :  { %v432_v16 = vpop.f32.mrf.mxu2 }
 0x23f   :  { %v436_v20 = vmul.f32 0.35355338, %v432_v16 }
 0x240   :  { %v720_v18 = vpop.f32.mrf.mxu1  ;;  %280 = vmax.xlane.f32.xlu2 %v279_v17 }
 0x241   :  { %v3024_v19 = vmul.f32 0.35355338, %v720_v18  ;;  %v440_v24 = vsel %vm225_vm7, %v436_v20, -inf }
 0x243   :  { %v753_v21 = vsel %vm225_vm7, %v3024_v19, -inf }
 0x244   :  { %754 = vmax.xlane.f32.xlu0 %v753_v21 }
 0x246   :  { %v590_v22 = vpop.f32.mrf.mxu2 }
 0x247   :  { %v3028_v23 = vmul.f32 0.35355338, %v590_v22 }
 0x248   :  { %441 = vmax.xlane.f32.xlu2 %v440_v24 }
 0x249   :  { %v598_v25 = vsel %vm225_vm7, %v3028_v23, -inf }
 0x24a   :  { %599 = vmax.xlane.f32.xlu1 %v598_v25 }
 0x24e   :  { %v748_v26 = vpop.f32.mrf.mxu2 }
 0x24f   :  { %v752_v27 = vmul.f32 0.35355338, %v748_v26 }
 0x251   :  { %v756_v28 = vsel %vm225_vm7, %v752_v27, -inf }
 0x252   :  { %757 = vmax.xlane.f32.xlu2 %v756_v28 }
 0x26a   :  { %485 = vrot.lane.b32.xlu2 %v2970_v52, %s3737_s3 }
 0x2ab   :  { %v597_v29 = vpop.xlane.xlu2 %596 }
 0x2ac   :  { %v601_v30 = vsub.f32 %v593_v7, %v597_v29 }
 0x2ad   :  { %v439_v31 = vpop.xlane.xlu0 %438  ;;  %v284_v32 = vpop.xlane.xlu1 %283 }
 0x2ae   :  { %v603_v33 = vmul.f32 1.442695, %v601_v30  ;;  %v443_v34 = vsub.f32 %v435_v11, %v439_v31  ;;  %v286_v35 = vsub.f32 %v278_v10, %v284_v32 }
 0x2b0   :  { %2652 = vpow2.f32 %v603_v33  ;;  %v445_v36 = vmul.f32 1.442695, %v443_v34  ;;  %v289_v37 = vmul.f32 1.442695, %v286_v35 }
 0x2b2   :  { %2654 = vpow2.f32 %v445_v36 }
 0x2b3   :  { %2656 = vpow2.f32 %v289_v37  ;;  %v281_v38 = vpop.xlane.xlu2 %280 }
 0x2b4   :  { %v285_v39 = vsub.f32 %v277_v15, %v281_v38 }
 0x2b6   :  { %v3036_v40 = vpop.eup %2652  ;;  %v287_v41 = vmul.f32 1.442695, %v285_v39 }
 0x2b7   :  { %v607_v42 = vsel %vm225_vm7, %v3036_v40, 0.0  ;;  %v755_v60 = vpop.xlane.xlu0 %754 }
 0x2b8   :  { %v3040_v44 = vpop.eup %2654  ;;  %2658 = vpow2.f32 %v287_v41  ;;  %608 = vadd.xlane.f32.xlu0 %v607_v42  ;;  %v759_v62 = vsub.f32 %v3024_v19, %v755_v60 }
 0x2b9   :  { %v3042_v45 = vpop.eup %2656  ;;  %v449_v46 = vsel %vm225_vm7, %v3040_v44, 0.0 }
 0x2ba   :  { %450 = vadd.xlane.f32.xlu1 %v449_v46  ;;  %v294_v47 = vsel %vm225_vm7, %v3042_v45, 0.0  ;;  %v761_v0 = vmul.f32 1.442695, %v759_v62 }
 0x2bb   :  { %295 = vadd.xlane.f32.xlu2 %v294_v47  ;;  %v442_v48 = vpop.xlane.xlu2 %441 }
 0x2bc   :  { %v444_v50 = vsub.f32 %v436_v20, %v442_v48 }
 0x2bd   :  { %v600_v1 = vpop.xlane.xlu1 %599 }
 0x2be   :  { %v3048_v51 = vpop.eup %2658  ;;  %v447_v53 = vmul.f32 1.442695, %v444_v50  ;;  %v602_v2 = vsub.f32 %v3028_v23, %v600_v1 }
 0x2bf   :  { %v291_v55 = vsel %vm225_vm7, %v3048_v51, 0.0 }
 0x2c0   :  { %2660 = vpow2.f32 %v447_v53  ;;  %292 = vadd.xlane.f32.xlu0 %v291_v55  ;;  %v605_v3 = vmul.f32 1.442695, %v602_v2 }
 0x2c5   :  { %v758_v59 = vpop.xlane.xlu2 %757 }
 0x2c6   :  { %v3052_v56 = vpop.eup %2660  ;;  %v760_v61 = vsub.f32 %v752_v27, %v758_v59 }
 0x2c7   :  { %v452_v57 = vsel %vm225_vm7, %v3052_v56, 0.0 }
 0x2c8   :  { %453 = vadd.xlane.f32.xlu2 %v452_v57  ;;  %v763_v63 = vmul.f32 1.442695, %v760_v61 }
 0x2ca   :  { %2662 = vpow2.f32 %v763_v63 }
 0x2cb   :  { %2664 = vpow2.f32 %v761_v0 }
 0x2cc   :  { %2666 = vpow2.f32 %v605_v3 }
 0x2cd   :  { %v3083_v10 = vpop.permute.xlu2 %485 }
 0x2d0   :  { %v3067_v4 = vpop.eup %2662 }
 0x2d1   :  { %v3069_v5 = vpop.eup %2664  ;;  %v768_v6 = vsel %vm225_vm7, %v3067_v4, 0.0 }
 0x2d2   :  { %v765_v7 = vsel %vm225_vm7, %v3069_v5, 0.0  ;;  %v3075_v8 = vpop.eup %2666 }
 0x2d3   :  { %2618 = vrot.lane.b32.xlu1 %v2617_v58, %s3743_s29  ;;  %v610_v9 = vsel %vm225_vm7, %v3075_v8, 0.0  ;;  %s3772_s29 = smov 16  }
 0x2d4   :  { %643 = vrot.lane.b32.xlu0 %v2970_v52, %s3729_s30 }
 0x2e0   :  { %511 = vrot.lane.b32.xlu2 %v2978_v54, %s3737_s3  ;;  %s3771_s3 = smov 8  }
 0x2e8   :  { %669 = vrot.lane.b32.xlu2 %v2978_v54, %s3729_s30  ;;  %s3773_s30 = smov 24  }
 0x2fd   :  { %769 = vadd.xlane.f32.xlu1 %v768_v6 }
 0x2fe   :  { %766 = vadd.xlane.f32.xlu0 %v765_v7 }
 0x306   :  { %611 = vadd.xlane.f32.xlu0 %v610_v9 }
 0x31a   :  { %801 = vrot.lane.b32.xlu0 %v2970_v52, %s3727_s4 }
 0x322   :  { %827 = vrot.lane.b32.xlu0 %v2978_v54, %s3727_s4  ;;  %s3744_s4 = smov 24  }
 0x32b   :  { %v3085_v11 = vpop.xlane.xlu0 %608 }
 0x32d   :  { %v3087_v12 = vpop.xlane.xlu1 %450 }
 0x32e   :  { %v296_v13 = vpop.xlane.xlu2 %295  ;;  %vm460_vm13 = vweird.f32 %v3087_v12  ;;  %v464_v47 = vand.u32 2147483647, %v3087_v12  ;;  %v466_v59 = vand.u32 2147483648, %v3087_v12 }
 0x32f   :  { %2668 = vrcp.f32 %v296_v13  ;;  %vm317_vm9 = vweird.f32 %v296_v13  ;;  %v323_v26 = vand.u32 2147483648, %v296_v13  ;;  %v321_v28 = vand.u32 2147483647, %v296_v13 }
 0x330   :  { %2670 = vrcp.f32 %v3087_v12 }
 0x331   :  { %v324_v37 = vor.u32 1.1754944e-38, %v323_v26  ;;  %vm322_vm15 = vcmp.eq.f32.partialorder %v321_v28, 8.507059e+37 }
 0x333   :  { %v293_v14 = vpop.xlane.xlu0 %292 }
 0x334   :  { %2672 = vrcp.f32 %v293_v14  ;;  %v308_v27 = vand.u32 2147483648, %v293_v14  ;;  %v306_v30 = vand.u32 2147483647, %v293_v14  ;;  %vm302_vm12 = vweird.f32 %v293_v14 }
 0x335   :  { %v2669_v15 = vpop.eup %2668  ;;  %2674 = vrcp.f32 %v3085_v11 }
 0x336   :  { %v3090_v16 = vpop.eup %2670  ;;  %v313_v17 = vmul.f32 %v2669_v15, %v296_v13  ;;  %vm318_vm8 = vweird.f32 %v2669_v15  ;;  %v309_v38 = vor.u32 1.1754944e-38, %v308_v27  ;;  %vm307_vm1 = vcmp.eq.f32.partialorder %v306_v30, 8.507059e+37 }
 0x337   :  { %v456_v54 = vmul.f32 %v3090_v16, %v3087_v12  ;;  %vm3102_vm11 = vmor %vm317_vm9, %vm318_vm8  ;;  %vm461_vm2 = vweird.f32 %v3090_v16  ;;  %vm465_vm8 = vcmp.eq.f32.partialorder %v464_v47, 8.507059e+37 }
 0x338   :  { %v314_v52 = vsub.f32 1.0, %v313_v17  ;;  %vm3121_vm4 = vmor %vm460_vm13, %vm461_vm2 }
 0x339   :  { %v457_v24 = vsub.f32 1.0, %v456_v54 }
 0x33a   :  { %v2673_v18 = vpop.eup %2672  ;;  %v315_v19 = vmul.f32 %v2669_v15, %v314_v52  ;;  %v624_v52 = vand.u32 2147483648, %v3085_v11 }
 0x33b   :  { %v298_v20 = vmul.f32 %v2673_v18, %v293_v14  ;;  %v3095_v21 = vpop.xlane.xlu2 %453  ;;  %v3098_v22 = vpop.eup %2674  ;;  %vm303_vm10 = vweird.f32 %v2673_v18  ;;  %v458_v33 = vmul.f32 %v3090_v16, %v457_v24 }
 0x33c   :  { %2676 = vrcp.f32 %v3095_v21  ;;  %v316_v23 = vadd.f32 %v2669_v15, %v315_v19  ;;  %v614_v31 = vmul.f32 %v3098_v22, %v3085_v11  ;;  %vm304_vm14 = vmor %vm302_vm12, %vm303_vm10  ;;  %v481_v60 = vand.u32 2147483648, %v3095_v21 }
 0x33d   :  { %v299_v25 = vsub.f32 1.0, %v298_v20  ;;  %v459_v53 = vadd.f32 %v3090_v16, %v458_v33  ;;  %v479_v0 = vand.u32 2147483647, %v3095_v21  ;;  %vm475_vm5 = vweird.f32 %v3095_v21 }
 0x33e   :  { %v320_v35 = vsel %vm3102_vm11, %v2669_v15, %v316_v23  ;;  %v615_v46 = vsub.f32 1.0, %v614_v31  ;;  %v482_v7 = vor.u32 1.1754944e-38, %v481_v60  ;;  %vm619_vm10 = vweird.f32 %v3098_v22 }
 0x33f   :  { %v300_v29 = vmul.f32 %v2673_v18, %v299_v25  ;;  %v325_v50 = vsel %vm322_vm15, %v324_v37, %v320_v35  ;;  %v463_v3 = vsel %vm3121_vm4, %v3090_v16, %v459_v53  ;;  %vm480_vm9 = vcmp.eq.f32.partialorder %v479_v0, 8.507059e+37 }
 0x340   :  { %v326_v1 = vmul.f32 %v3042_v45, %v325_v50  ;;  %v467_v45 = vor.u32 1.1754944e-38, %v466_v59  ;;  %vm618_vm11 = vweird.f32 %v3085_v11  ;;  %v625_v19 = vor.u32 1.1754944e-38, %v624_v52 }
 0x341   :  { %v301_v34 = vadd.f32 %v2673_v18, %v300_v29  ;;  %vm620_vm12 = vmor %vm618_vm11, %vm619_vm10 }
 0x342   :  { %v2677_v36 = vpop.eup %2676  ;;  %v468_v14 = vsel %vm465_vm8, %v467_v45, %v463_v3  ;;  %v888_v45 = vld [vmem:[%s3706_s7 + $0x18] sm:$0xff] }
 0x343   :  { %v305_v39 = vsel %vm304_vm14, %v2673_v18, %v301_v34  ;;  %v471_v41 = vmul.f32 %v2677_v36, %v3095_v21  ;;  %v512_v42 = vpop.permute.xlu2 %511  ;;  %vm476_vm3 = vweird.f32 %v2677_v36  ;;  %v469_v54 = vmul.f32 %v3040_v44, %v468_v14  ;;  %911 = vmatpush.msra.mxu1 %v888_v45 }
 0x344   :  { %v310_v48 = vsel %vm307_vm1, %v309_v38, %v305_v39  ;;  %vm477_vm6 = vmor %vm475_vm5, %vm476_vm3 }
 0x345   :  { %v472_v55 = vsub.f32 1.0, %v471_v41  ;;  %v2619_v57 = vpop.permute.xlu1 %2618  ;;  %v311_v58 = vmul.f32 %v3048_v51, %v310_v48  ;;  %v616_v51 = vmul.f32 %v3098_v22, %v615_v46 }
 0x346   :  { %v2620_v61 = vunpack.i.l.bf16 %v2619_v57  ;;  %v2621_v62 = vunpack.i.h.bf16 %v2619_v57  ;;  %v644_v9 = vpop.permute.xlu0 %643 }
 0x347   :  { %v473_v63 = vmul.f32 %v2677_v36, %v472_v55  ;;  %v617_v16 = vadd.f32 %v3098_v22, %v616_v51 }
 0x348   :  { %348 = vmatpush.msra.mxu3 %v2620_v61  ;;  %374 = vmatpush.msrb.mxu0 %v2621_v62 }
 0x349   :  { %v474_v6 = vadd.f32 %v2677_v36, %v473_v63  ;;  %2502 = vmatmul.msk.f32.vlgmr.msra.gmra.mxu3 %vm225_vm7, %v311_v58  ;;  %2503 = vmatmul.msk.f32.vlgmr.msrb.gmra.mxu0 %vm225_vm7, %v326_v1  ;;  %v621_v18 = vsel %vm620_vm12, %v3098_v22, %v617_v16  ;;  %vm879_vm12 = vcmask 130048  }
 0x34a   :  { %506 = vmatpush.msrb.mxu3 %v3083_v10  ;;  %532 = vmatpush.msra.mxu0 %v512_v42  ;;  %v622_v10 = vand.u32 2147483647, %v3085_v11 }
 0x34b   :  { %v478_v12 = vsel %vm477_vm6, %v2677_v36, %v474_v6  ;;  %v670_v13 = vpop.permute.xlu2 %669 }
 0x34c   :  { %664 = vmatpush.msra.mxu3 %v644_v9  ;;  %v483_v15 = vsel %vm480_vm9, %v482_v7, %v478_v12  ;;  %690 = vmatpush.msrb.mxu0 %v670_v13  ;;  %vm623_vm13 = vcmp.eq.f32.partialorder %v622_v10, 8.507059e+37  ;;  %v887_v7 = vld [vmem:[%s3706_s7 + $0x10] sm:$0xff]  ;;  %v886_v9 = vld [vmem:[%s3706_s7 + $0x8] sm:$0xff]  ;;  %v885_v12 = vld [vmem:[%s3706_s7] sm:$0xff] }
 0x34d   :  { %v484_v17 = vmul.f32 %v3052_v56, %v483_v15  ;;  %v626_v20 = vsel %vm623_vm13, %v625_v19, %v621_v18  ;;  %912 = vmatpush.msra.mxu1 %v887_v7  ;;  %vm882_vm13 = vcmask 195584  }
 0x34e   :  { %v627_v56 = vmul.f32 %v3036_v40, %v626_v20 }
 0x34f   :  { %913 = vmatpush.msra.mxu1 %v886_v9 }
 0x351   :  { %2508 = vmatmul.msk.f32.vlgmr.msrb.gmra.mxu3 %vm225_vm7, %v469_v54  ;;  %2509 = vmatmul.msk.f32.vlgmr.msra.gmra.mxu0 %vm225_vm7, %v484_v17 }
 0x352   :  { %914 = vmatpush.msra.mxu1 %v885_v12 }
 0x359   :  { %2514 = vmatmul.msk.f32.vlgmr.msra.gmra.mxu3 %vm225_vm7, %v627_v56 }
 0x370   :  { %v770_v23 = vpop.xlane.xlu1 %769 }
 0x371   :  { %v767_v21 = vpop.xlane.xlu0 %766  ;;  %v797_v53 = vand.u32 2147483648, %v770_v23  ;;  %vm791_vm9 = vweird.f32 %v770_v23  ;;  %v795_v57 = vand.u32 2147483647, %v770_v23 }
 0x372   :  { %2678 = vrcp.f32 %v767_v21  ;;  %v782_v40 = vand.u32 2147483648, %v767_v21  ;;  %vm776_vm15 = vweird.f32 %v767_v21  ;;  %v780_v33 = vand.u32 2147483647, %v767_v21 }
 0x373   :  { %2680 = vrcp.f32 %v770_v23  ;;  %v798_v61 = vor.u32 1.1754944e-38, %v797_v53  ;;  %vm796_vm11 = vcmp.eq.f32.partialorder %v795_v57, 8.507059e+37 }
 0x374   :  { %v783_v39 = vor.u32 1.1754944e-38, %v782_v40  ;;  %vm781_vm4 = vcmp.eq.f32.partialorder %v780_v33, 8.507059e+37 }
 0x378   :  { %v2679_v11 = vpop.eup %2678 }
 0x379   :  { %v772_v44 = vmul.f32 %v2679_v11, %v767_v21  ;;  %v612_v24 = vpop.xlane.xlu0 %611  ;;  %v2681_v22 = vpop.eup %2680  ;;  %vm777_vm14 = vweird.f32 %v2679_v11  ;;  %v2630_v21 = vld [vmem:[%s3707_s8] ss:$0 sm:$0xff] }
 0x37a   :  { %2682 = vrcp.f32 %v612_v24  ;;  %v787_v26 = vmul.f32 %v2681_v22, %v770_v23  ;;  %v639_v34 = vand.u32 2147483648, %v612_v24  ;;  %vm778_vm1 = vmor %vm776_vm15, %vm777_vm14  ;;  %v637_v36 = vand.u32 2147483647, %v612_v24 }
 0x37b   :  { %v773_v25 = vsub.f32 1.0, %v772_v44  ;;  %vm633_vm3 = vweird.f32 %v612_v24  ;;  %vm792_vm8 = vweird.f32 %v2681_v22 }
 0x37c   :  { %v788_v30 = vsub.f32 1.0, %v787_v26  ;;  %v640_v42 = vor.u32 1.1754944e-38, %v639_v34  ;;  %vm638_vm6 = vcmp.eq.f32.partialorder %v637_v36, 8.507059e+37  ;;  %vm793_vm10 = vmor %vm791_vm9, %vm792_vm8 }
 0x37d   :  { %v774_v27 = vmul.f32 %v2679_v11, %v773_v25 }
 0x37e   :  { %v789_v37 = vmul.f32 %v2681_v22, %v788_v30 }
 0x37f   :  { %v775_v31 = vadd.f32 %v2679_v11, %v774_v27 }
 0x380   :  { %v2683_v28 = vpop.eup %2682  ;;  %v790_v48 = vadd.f32 %v2681_v22, %v789_v37 }
 0x381   :  { %v629_v29 = vmul.f32 %v2683_v28, %v612_v24  ;;  %vm634_vm2 = vweird.f32 %v2683_v28  ;;  %v779_v38 = vsel %vm778_vm1, %v2679_v11, %v775_v31 }
 0x382   :  { %vm635_vm5 = vmor %vm633_vm3, %vm634_vm2  ;;  %v784_v46 = vsel %vm781_vm4, %v783_v39, %v779_v38  ;;  %v794_v60 = vsel %vm793_vm10, %v2681_v22, %v790_v48  ;;  %v988_v48 = vld [vmem:[%s3710_s11 + $0x8] sm:$0xff] }
 0x383   :  { %v630_v32 = vsub.f32 1.0, %v629_v29  ;;  %v785_v59 = vmul.f32 %v3069_v5, %v784_v46  ;;  %v799_v62 = vsel %vm796_vm11, %v798_v61, %v794_v60  ;;  %v990_v46 = vld [vmem:[%s3710_s11 + $0x18] sm:$0xff] }
 0x384   :  { %v800_v0 = vmul.f32 %v3067_v4, %v799_v62  ;;  %1013 = vmatpush.msra.mxu2 %v990_v46 }
 0x385   :  { %v631_v35 = vmul.f32 %v2683_v28, %v630_v32 }
 0x387   :  { %v632_v41 = vadd.f32 %v2683_v28, %v631_v35 }
 0x389   :  { %v636_v47 = vsel %vm635_vm5, %v2683_v28, %v632_v41  ;;  %v2794_v28 = vmov 32.0  }
 0x38a   :  { %v641_v50 = vsel %vm638_vm6, %v640_v42, %v636_v47  ;;  %2684 = vrcp.f32 %v2794_v28  ;;  %v989_v47 = vld [vmem:[%s3710_s11 + $0x10] sm:$0xff] }
 0x38b   :  { %v642_v55 = vmul.f32 %v3075_v8, %v641_v50  ;;  %1014 = vmatpush.msra.mxu2 %v989_v47  ;;  %v987_v50 = vld [vmem:[%s3710_s11] sm:$0xff] }
 0x38c   :  { %v802_v58 = vpop.permute.xlu0 %801  ;;  %v1123_v47 = vld [vmem:[%s3712_s13 + $0x20] sm:$0xff] }
 0x38d   :  { %2515 = vmatmul.msk.f32.vlgmr.msrb.gmra.mxu0 %vm225_vm7, %v642_v55  ;;  %822 = vmatpush.msrb.mxu3 %v802_v58 }
 0x38e   :  { %2520 = vmatmul.msk.f32.vlgmr.msrb.gmra.mxu3 %vm225_vm7, %v785_v59  ;;  %1015 = vmatpush.msra.mxu2 %v988_v48 }
 0x390   :  { %v2685_v29 = vpop.eup %2684  ;;  %1016 = vmatpush.msra.mxu2 %v987_v50  ;;  %v1122_v50 = vld [vmem:[%s3712_s13 + $0x18] sm:$0xff] }
 0x391   :  { %v933_v30 = vmul.f32 32.0, %v2685_v29  ;;  %vm937_vm14 = vweird.f32 %v2685_v29 }
 0x393   :  { %v934_v31 = vsub.f32 1.0, %v933_v30 }
 0x394   :  { %v828_v63 = vpop.permute.xlu0 %827 }
 0x395   :  { %848 = vmatpush.msra.mxu0 %v828_v63  ;;  %v935_v40 = vmul.f32 %v2685_v29, %v934_v31  ;;  %v1128_v31 = vld [vmem:[%s3712_s13 + $0x48] sm:$0xff] }
 0x396   :  { %2521 = vmatmul.msk.f32.vlgmr.msra.gmra.mxu0 %vm225_vm7, %v800_v0 }
 0x397   :  { %v936_v32 = vadd.f32 %v2685_v29, %v935_v40 }
 0x399   :  { %v3184_v33 = vsel %vm937_vm14, %v2685_v29, %v936_v32  ;;  %v1129_v29 = vld [vmem:[%s3712_s13 + $0x50] sm:$0xff]  ;;  %v1127_v32 = vld [vmem:[%s3712_s13 + $0x40] sm:$0xff] }
 0x3c6   :  { %v376_v8 = vpop.f32.mrf.mxu0 }
 0x3cc   :  { %v350_v1 = vpop.f32.mrf.mxu3 }
 0x3ce   :  { %v534_v2 = vpop.f32.mrf.mxu0 }
 0x3cf   :  { %857 = vrot.lane.b32.xlu1 %v534_v2, %s3735_s0 }
 0x3d4   :  { %v508_v5 = vpop.f32.mrf.mxu3 }
 0x3d5   :  { %855 = vrot.lane.b32.xlu2 %v508_v5, %s3735_s0 }
 0x3dc   :  { %v666_v51 = vpop.f32.mrf.mxu3 }
 0x3dd   :  { %863 = vrot.lane.b32.xlu0 %v666_v51, %s3741_s23 }
 0x40a   :  { %v692_v3 = vpop.f32.mrf.mxu0 }
 0x40b   :  { %865 = vrot.lane.b32.xlu0 %v692_v3, %s3741_s23  ;;  %v2632_v3 = vld [vmem:[%s3709_s10] ss:$0 sm:$0xff] }
 0x411   :  { %v824_v4 = vpop.f32.mrf.mxu3 }
 0x412   :  { %871 = vrot.lane.b32.xlu2 %v824_v4, %s3744_s4 }
 0x413   :  { %v850_v6 = vpop.f32.mrf.mxu0 }
 0x41a   :  { %873 = vrot.lane.b32.xlu2 %v850_v6, %s3744_s4  ;;  %s3770_s4 = smov 40  }
 0x42f   :  { %v856_v13 = vpop.permute.xlu2 %855 }
 0x430   :  { %v877_v15 = vsel %vm225_vm7, %v350_v1, %v856_v13  ;;  %v2631_v1 = vld [vmem:[%s3708_s9] ss:$0 sm:$0xff] }
 0x441   :  { %v858_v10 = vpop.permute.xlu1 %857 }
 0x442   :  { %v878_v54 = vsel %vm225_vm7, %v376_v8, %v858_v10  ;;  %v2795_v10 = vmov 1.4142135  }
 0x44f   :  { %v864_v14 = vpop.permute.xlu0 %863 }
 0x450   :  { %v880_v16 = vsel %vm879_vm12, %v877_v15, %v864_v14 }
 0x46c   :  { %v872_v17 = vpop.permute.xlu2 %871 }
 0x46d   :  { %v883_v52 = vsel %vm882_vm13, %v880_v16, %v872_v17 }
 0x46e   :  { %2522 = vmatmul.msk.f32.vlgmr.msra.gmra.mxu1 %vm78_vm0, %v883_v52 }
 0x474   :  { %v874_v19 = vpop.permute.xlu2 %873 }
 0x47d   :  { %v866_v18 = vpop.permute.xlu0 %865 }
 0x47e   :  { %v881_v20 = vsel %vm879_vm12, %v878_v54, %v866_v18 }
 0x47f   :  { %v884_v56 = vsel %vm882_vm13, %v881_v20, %v874_v19 }
 0x480   :  { %2523 = vmatmul.msk.f32.gmra.mxu1 %vm78_vm0, %v884_v56  ;;  %v1134_v56 = vld [vmem:[%s3712_s13 + $0x78] sm:$0xff] }
 0x481   :  { %1139 = vmatpush.msra.mxu3 %v1134_v56 }
 0x4eb   :  { %v916_v23 = vpop.f32.mrf.mxu1 }
 0x4ec   :  { %v917_v11 = vadd.f32 %v2630_v21, %v916_v23 }
 0x4ee   :  { %v922_v44 = vadd.f32 %v917_v11, %v2956_v43  ;;  %v2633_v11 = vld [vmem:[%s3711_s12] ss:$0 sm:$0xff] }
 0x4f0   :  { %v926_v24 = vsel %vm78_vm0, %v922_v44, 0.0 }
 0x4f1   :  { %927 = vadd.xlane.f32.xlu0 %v926_v24  ;;  %v1131_v24 = vld [vmem:[%s3712_s13 + $0x60] sm:$0xff] }
 0x4fd   :  { %v919_v22 = vpop.f32.mrf.mxu1 }
 0x4fe   :  { %v920_v25 = vadd.f32 %v2630_v21, %v919_v22  ;;  %v1133_v21 = vld [vmem:[%s3712_s13 + $0x70] sm:$0xff] }
 0x4ff   :  { %1140 = vmatpush.msra.mxu3 %v1133_v21 }
 0x500   :  { %v923_v26 = vadd.f32 %v920_v25, %v2963_v49 }
 0x502   :  { %v929_v27 = vsel %vm78_vm0, %v923_v26, 0.0 }
 0x503   :  { %930 = vadd.xlane.f32.xlu2 %v929_v27  ;;  %v1130_v27 = vld [vmem:[%s3712_s13 + $0x58] sm:$0xff] }
 0x564   :  { %v928_v43 = vpop.xlane.xlu0 %927 }
 0x565   :  { %v939_v34 = vmul.f32 %v3184_v33, %v928_v43 }
 0x567   :  { %v941_v35 = vsub.f32 %v922_v44, %v939_v34  ;;  %v1132_v44 = vld [vmem:[%s3712_s13 + $0x68] sm:$0xff] }
 0x568   :  { %1141 = vmatpush.msra.mxu3 %v1132_v44 }
 0x569   :  { %v943_v36 = vmul.f32 %v941_v35, %v941_v35 }
 0x56a   :  { %1142 = vmatpush.msra.mxu3 %v1131_v24 }
 0x56b   :  { %v945_v49 = vsel %vm78_vm0, %v943_v36, 0.0 }
 0x56c   :  { %946 = vadd.xlane.f32.xlu1 %v945_v49  ;;  %1143 = vmatpush.msra.mxu3 %v1130_v27 }
 0x56e   :  { %1144 = vmatpush.msra.mxu3 %v1129_v29 }
 0x570   :  { %1145 = vmatpush.msra.mxu3 %v1128_v31 }
 0x572   :  { %1146 = vmatpush.msra.mxu3 %v1127_v32 }
 0x576   :  { %v931_v37 = vpop.xlane.xlu2 %930 }
 0x577   :  { %v940_v38 = vmul.f32 %v3184_v33, %v931_v37  ;;  %v1125_v37 = vld [vmem:[%s3712_s13 + $0x30] sm:$0xff] }
 0x579   :  { %v942_v39 = vsub.f32 %v923_v26, %v940_v38 }
 0x57b   :  { %v944_v41 = vmul.f32 %v942_v39, %v942_v39 }
 0x57d   :  { %v948_v42 = vsel %vm78_vm0, %v944_v41, 0.0  ;;  %v1124_v41 = vld [vmem:[%s3712_s13 + $0x28] sm:$0xff] }
 0x57e   :  { %949 = vadd.xlane.f32.xlu0 %v948_v42 }
 0x5df   :  { %v947_v53 = vpop.xlane.xlu1 %946 }
 0x5e0   :  { %v951_v55 = vmul.f32 %v947_v53, %v3184_v33 }
 0x5e2   :  { %v953_v57 = vadd.f32 1e-12, %v951_v55 }
 0x5e4   :  { %2686 = vrsqrt.f32 %v953_v57  ;;  %vm961_vm1 = vweird.f32 %v953_v57 }
 0x5ea   :  { %v2687_v58 = vpop.eup %2686 }
 0x5eb   :  { %v956_v59 = vmul.f32 %v2687_v58, %v953_v57  ;;  %vm962_vm15 = vweird.f32 %v2687_v58 }
 0x5ec   :  { %vm963_vm2 = vmor %vm961_vm1, %vm962_vm15 }
 0x5ed   :  { %v957_v60 = vmul.f32 %v2687_v58, %v956_v59  ;;  %v1121_v59 = vld [vmem:[%s3712_s13 + $0x10] sm:$0xff] }
 0x5ef   :  { %v958_v61 = vmul.f32 0.5, %v957_v60  ;;  %v1120_v60 = vld [vmem:[%s3712_s13 + $0x8] sm:$0xff] }
 0x5f1   :  { %v959_v62 = vsub.f32 1.5, %v958_v61  ;;  %v950_v63 = vpop.xlane.xlu0 %949 }
 0x5f2   :  { %v952_v0 = vmul.f32 %v950_v63, %v3184_v33  ;;  %v1119_v63 = vld [vmem:[%s3712_s13] sm:$0xff] }
 0x5f3   :  { %v960_v8 = vmul.f32 %v2687_v58, %v959_v62 }
 0x5f4   :  { %v954_v2 = vadd.f32 1e-12, %v952_v0 }
 0x5f5   :  { %v964_v5 = vsel %vm963_vm2, %v2687_v58, %v960_v8 }
 0x5f6   :  { %v975_v51 = vmul.f32 %v964_v5, %v941_v35  ;;  %2688 = vrsqrt.f32 %v954_v2  ;;  %vm971_vm4 = vweird.f32 %v954_v2  ;;  %v1126_v35 = vld [vmem:[%s3712_s13 + $0x38] sm:$0xff] }
 0x5f7   :  { %2690 = vrcp.f32 %v2795_v10  ;;  %1147 = vmatpush.msra.mxu3 %v1126_v35 }
 0x5f8   :  { %v980_v4 = vmul.f32 %v2631_v1, %v975_v51 }
 0x5f9   :  { %1148 = vmatpush.msra.mxu3 %v1125_v37 }
 0x5fa   :  { %v3210_v6 = vadd.f32 %v2632_v3, %v980_v4 }
 0x5fb   :  { %1149 = vmatpush.msra.mxu3 %v1124_v41 }
 0x5fc   :  { %v2689_v45 = vpop.eup %2688  ;;  %2524 = vmatmul.msk.f32.vlgmr.msra.gmra.mxu2 %vm78_vm0, %v3210_v6 }
 0x5fd   :  { %v966_v7 = vmul.f32 %v2689_v45, %v954_v2  ;;  %vm972_vm3 = vweird.f32 %v2689_v45  ;;  %v2691_v54 = vpop.eup %2690  ;;  %1150 = vmatpush.msra.mxu3 %v1123_v47 }
 0x5fe   :  { %vm973_vm5 = vmor %vm971_vm4, %vm972_vm3  ;;  %v1027_v18 = vmul.f32 1.4142135, %v2691_v54  ;;  %vm1031_vm6 = vweird.f32 %v2691_v54 }
 0x5ff   :  { %v967_v9 = vmul.f32 %v2689_v45, %v966_v7  ;;  %1151 = vmatpush.msra.mxu3 %v1122_v50 }
 0x600   :  { %v1028_v19 = vsub.f32 1.0, %v1027_v18 }
 0x601   :  { %v968_v12 = vmul.f32 0.5, %v967_v9  ;;  %1152 = vmatpush.msra.mxu3 %v1121_v59 }
 0x602   :  { %v1029_v20 = vmul.f32 %v2691_v54, %v1028_v19 }
 0x603   :  { %v969_v13 = vsub.f32 1.5, %v968_v12  ;;  %1153 = vmatpush.msra.mxu3 %v1120_v60 }
 0x604   :  { %v1030_v23 = vadd.f32 %v2691_v54, %v1029_v20 }
 0x605   :  { %v970_v14 = vmul.f32 %v2689_v45, %v969_v13  ;;  %1154 = vmatpush.msra.mxu3 %v1119_v63 }
 0x606   :  { %v3233_v25 = vsel %vm1031_vm6, %v2691_v54, %v1030_v23 }
 0x607   :  { %v974_v15 = vsel %vm973_vm5, %v2689_v45, %v970_v14 }
 0x608   :  { %v976_v16 = vmul.f32 %v974_v15, %v942_v39 }
 0x60a   :  { %v981_v17 = vmul.f32 %v2631_v1, %v976_v16 }
 0x60c   :  { %v3214_v52 = vadd.f32 %v2632_v3, %v981_v17 }
 0x60e   :  { %2525 = vmatmul.msk.f32.gmra.mxu2 %vm78_vm0, %v3214_v52 }
 0x67f   :  { %v1018_v22 = vpop.f32.mrf.mxu2 }
 0x680   :  { %v3235_v26 = vadd.f32 %v2633_v11, %v1018_v22 }
 0x682   :  { %v3242_v28 = vmul.f32 %v3233_v25, %v3235_v26  ;;  %v1024_v37 = vmul.f32 0.5, %v3235_v26 }
 0x684   :  { %v1035_v30 = vmul.f32 %v3242_v28, %v3242_v28 }
 0x686   :  { %v1036_v40 = vmin.f32 %v1035_v30, 16.0 }
 0x688   :  { %v1037_v43 = vmul.f32 2.1237322e-06, %v1036_v40  ;;  %v1048_v34 = vmul.f32 3.8918573e-05, %v1036_v40 }
 0x68a   :  { %v1038_v36 = vadd.f32 0.00028619796, %v1037_v43  ;;  %v1049_v49 = vadd.f32 0.001143296, %v1048_v34 }
 0x68c   :  { %v1039_v38 = vmul.f32 %v1038_v36, %v1036_v40  ;;  %v1050_v39 = vmul.f32 %v1049_v49, %v1036_v40 }
 0x68e   :  { %v1040_v42 = vadd.f32 0.0036580483, %v1039_v38  ;;  %v1051_v46 = vadd.f32 0.014752088, %v1050_v39 }
 0x690   :  { %v1052_v48 = vmul.f32 %v1051_v46, %v1036_v40  ;;  %v1041_v55 = vmul.f32 %v1040_v42, %v1036_v40 }
 0x691   :  { %v1021_v53 = vpop.f32.mrf.mxu2 }
 0x692   :  { %v1053_v57 = vadd.f32 0.112945676, %v1052_v48  ;;  %v3270_v58 = vadd.f32 %v2633_v11, %v1021_v53  ;;  %v1042_v0 = vadd.f32 0.05243302, %v1041_v55 }
 0x694   :  { %v1054_v61 = vmul.f32 %v1053_v57, %v1036_v40  ;;  %v3280_v62 = vmul.f32 %v3233_v25, %v3270_v58  ;;  %v1043_v51 = vmul.f32 %v1042_v0, %v1036_v40 }
 0x696   :  { %v1055_v8 = vadd.f32 0.4994258, %v1054_v61  ;;  %v1075_v1 = vmul.f32 %v3280_v62, %v3280_v62  ;;  %v1044_v12 = vadd.f32 0.18741608, %v1043_v51 }
 0x698   :  { %v1056_v2 = vmul.f32 %v1055_v8, %v1036_v40  ;;  %v1076_v5 = vmin.f32 %v1075_v1, 16.0  ;;  %v1045_v17 = vmul.f32 %v1044_v12, %v1036_v40  ;;  %v1025_v8 = vmul.f32 0.5, %v3270_v58 }
 0x69a   :  { %v1057_v3 = vadd.f32 1.0, %v1056_v2  ;;  %v1077_v4 = vmul.f32 2.1237322e-06, %v1076_v5  ;;  %v1088_v45 = vmul.f32 3.8918573e-05, %v1076_v5 }
 0x69b   :  { %v1046_v56 = vadd.f32 1.1283791, %v1045_v17 }
 0x69c   :  { %2692 = vrcp.f32 %v1057_v3  ;;  %v1078_v7 = vadd.f32 0.00028619796, %v1077_v4  ;;  %v1089_v9 = vadd.f32 0.001143296, %v1088_v45  ;;  %v1069_v21 = vand.u32 2147483648, %v1057_v3 }
 0x69d   :  { %v1067_v44 = vand.u32 2147483647, %v1057_v3  ;;  %vm1063_vm9 = vweird.f32 %v1057_v3  ;;  %v1047_v31 = vmul.f32 %v1046_v56, %v3242_v28  ;;  %v2528_v56 = vld [vmem:[%s3755_s28 + $0x20] sm:$0xff] }
 0x69e   :  { %v1079_v13 = vmul.f32 %v1078_v7, %v1076_v5  ;;  %v1090_v14 = vmul.f32 %v1089_v9, %v1076_v5  ;;  %v1070_v29 = vor.u32 1.1754944e-38, %v1069_v21 }
 0x69f   :  { %vm1068_vm11 = vcmp.eq.f32.partialorder %v1067_v44, 8.507059e+37 }
 0x6a0   :  { %v1091_v15 = vadd.f32 0.014752088, %v1090_v14  ;;  %v1080_v10 = vadd.f32 0.0036580483, %v1079_v13 }
 0x6a2   :  { %v2693_v16 = vpop.eup %2692  ;;  %v1092_v18 = vmul.f32 %v1091_v15, %v1076_v5  ;;  %v1081_v23 = vmul.f32 %v1080_v10, %v1076_v5 }
 0x6a3   :  { %v1059_v54 = vmul.f32 %v2693_v16, %v1057_v3  ;;  %vm1064_vm8 = vweird.f32 %v2693_v16 }
 0x6a4   :  { %v1093_v20 = vadd.f32 0.112945676, %v1092_v18  ;;  %vm1065_vm10 = vmor %vm1063_vm9, %vm1064_vm8  ;;  %v1082_v30 = vadd.f32 0.05243302, %v1081_v23 }
 0x6a5   :  { %v1060_v19 = vsub.f32 1.0, %v1059_v54 }
 0x6a6   :  { %v1094_v24 = vmul.f32 %v1093_v20, %v1076_v5  ;;  %v1083_v36 = vmul.f32 %v1082_v30, %v1076_v5  ;;  %v2529_v20 = vld [vmem:[%s3755_s28 + $0x28] sm:$0xff] }
 0x6a7   :  { %v1061_v11 = vmul.f32 %v2693_v16, %v1060_v19  ;;  %v2530_v19 = vld [vmem:[%s3755_s28 + $0x30] sm:$0xff] }
 0x6a8   :  { %v1095_v27 = vadd.f32 0.4994258, %v1094_v24  ;;  %v1084_v39 = vadd.f32 0.18741608, %v1083_v36  ;;  %v2636_v36 = vld [vmem:[%s3715_s16] ss:$0 sm:$0xff] }
 0x6a9   :  { %v1062_v22 = vadd.f32 %v2693_v16, %v1061_v11 }
 0x6aa   :  { %v1096_v32 = vmul.f32 %v1095_v27, %v1076_v5  ;;  %v1085_v46 = vmul.f32 %v1084_v39, %v1076_v5  ;;  %v2634_v5 = vld [vmem:[%s3713_s14] ss:$0 sm:$0xff] }
 0x6ab   :  { %v1066_v40 = vsel %vm1065_vm10, %v2693_v16, %v1062_v22 }
 0x6ac   :  { %v1071_v43 = vsel %vm1068_vm11, %v1070_v29, %v1066_v40  ;;  %v1097_v35 = vadd.f32 1.0, %v1096_v32  ;;  %v1086_v50 = vadd.f32 1.1283791, %v1085_v46  ;;  %v2635_v32 = vld [vmem:[%s3714_s15] ss:$0 sm:$0xff] }
 0x6ad   :  { %v1072_v34 = vmul.f32 %v1071_v43, %v1047_v31 }
 0x6ae   :  { %2694 = vrcp.f32 %v1097_v35  ;;  %v1109_v28 = vand.u32 2147483648, %v1097_v35  ;;  %v1107_v55 = vand.u32 2147483647, %v1097_v35  ;;  %vm1103_vm15 = vweird.f32 %v1097_v35 }
 0x6af   :  { %v2526_v49 = vclamps-f32 %v1072_v34, 1.0  ;;  %v1087_v60 = vmul.f32 %v1086_v50, %v3280_v62 }
 0x6b0   :  { %v1110_v59 = vor.u32 1.1754944e-38, %v1109_v28  ;;  %vm1108_vm2 = vcmp.eq.f32.partialorder %v1107_v55, 8.507059e+37  ;;  %v2637_v55 = vld [vmem:[%s3759_s1 + $0x1] ss:$0 sm:$0xff]  ;;  %s3764_s1 = smov 64  }
 0x6b1   :  { %v1115_v38 = vadd.f32 1.0, %v2526_v49 }
 0x6b3   :  { %v1117_v41 = vmul.f32 %v1115_v38, %v1024_v37 }
 0x6b4   :  { %v2695_v42 = vpop.eup %2694 }
 0x6b5   :  { %1155 = vmatmul.f32.vlgmr.msra.gmra.mxu3 %v1117_v41  ;;  %v1099_v47 = vmul.f32 %v2695_v42, %v1097_v35  ;;  %vm1104_vm14 = vweird.f32 %v2695_v42 }
 0x6b6   :  { %vm1105_vm1 = vmor %vm1103_vm15, %vm1104_vm14 }
 0x6b7   :  { %v1100_v48 = vsub.f32 1.0, %v1099_v47 }
 0x6b9   :  { %v1101_v53 = vmul.f32 %v2695_v42, %v1100_v48 }
 0x6bb   :  { %v1102_v57 = vadd.f32 %v2695_v42, %v1101_v53 }
 0x6bd   :  { %v1106_v26 = vsel %vm1105_vm1, %v2695_v42, %v1102_v57 }
 0x6be   :  { %v1111_v61 = vsel %vm1108_vm2, %v1110_v59, %v1106_v26 }
 0x6bf   :  { %v1112_v63 = vmul.f32 %v1111_v61, %v1087_v60 }
 0x6c1   :  { %v2527_v0 = vclamps-f32 %v1112_v63, 1.0 }
 0x6c3   :  { %v1116_v1 = vadd.f32 1.0, %v2527_v0 }
 0x6c5   :  { %v1118_v2 = vmul.f32 %v1116_v1, %v1025_v8 }
 0x6c7   :  { %1158 = vmatmul.f32.gmra.mxu3 %v1118_v2 }
 0x738   :  { %v1156_v51 = vpop.f32.mrf.mxu3 }
 0x739   :  { %v1157_v3 = vadd.f32 %v2634_v5, %v1156_v51 }
 0x73b   :  { %v1162_v4 = vadd.f32 %v1157_v3, %v3210_v6 }
 0x73d   :  { %v1166_v62 = vsel %vm78_vm0, %v1162_v4, 0.0 }
 0x73e   :  { %1167 = vadd.xlane.f32.xlu2 %v1166_v62 }
 0x74a   :  { %v1159_v45 = vpop.f32.mrf.mxu3 }
 0x74b   :  { %v1160_v7 = vadd.f32 %v2634_v5, %v1159_v45 }
 0x74d   :  { %v1163_v9 = vadd.f32 %v1160_v7, %v3214_v52  ;;  %v2531_v52 = vld [vmem:[%s3755_s28 + $0x38] sm:$0xff] }
 0x74e   :  { %1248 = vmatpush.msrb.mxu0 %v2531_v52 }
 0x74f   :  { %v1169_v58 = vsel %vm78_vm0, %v1163_v9, 0.0 }
 0x750   :  { %1170 = vadd.xlane.f32.xlu0 %v1169_v58  ;;  %1249 = vmatpush.msrb.mxu0 %v2530_v19 }
 0x752   :  { %1250 = vmatpush.msrb.mxu0 %v2529_v20 }
 0x754   :  { %1251 = vmatpush.msrb.mxu0 %v2528_v56 }
 0x7b1   :  { %v1168_v12 = vpop.xlane.xlu2 %1167 }
 0x7b2   :  { %v1172_v13 = vmul.f32 %v1168_v12, %v3184_v33 }
 0x7b4   :  { %v1174_v14 = vsub.f32 %v1162_v4, %v1172_v13 }
 0x7b6   :  { %v1176_v15 = vmul.f32 %v1174_v14, %v1174_v14 }
 0x7b8   :  { %v1178_v16 = vsel %vm78_vm0, %v1176_v15, 0.0 }
 0x7b9   :  { %1179 = vadd.xlane.f32.xlu2 %v1178_v16 }
 0x7c3   :  { %v1171_v17 = vpop.xlane.xlu0 %1170 }
 0x7c4   :  { %v1173_v6 = vmul.f32 %v1171_v17, %v3184_v33 }
 0x7c6   :  { %v1175_v10 = vsub.f32 %v1163_v9, %v1173_v6 }
 0x7c8   :  { %v1177_v54 = vmul.f32 %v1175_v10, %v1175_v10 }
 0x7ca   :  { %v1181_v18 = vsel %vm78_vm0, %v1177_v54, 0.0 }
 0x7cb   :  { %1182 = vadd.xlane.f32.xlu0 %v1181_v18 }
 0x82c   :  { %v1180_v21 = vpop.xlane.xlu2 %1179 }
 0x82d   :  { %v1184_v23 = vmul.f32 %v1180_v21, %v3184_v33 }
 0x82f   :  { %v1186_v11 = vadd.f32 1e-12, %v1184_v23 }
 0x831   :  { %2696 = vrsqrt.f32 %v1186_v11  ;;  %vm1194_vm4 = vweird.f32 %v1186_v11 }
 0x837   :  { %v2697_v44 = vpop.eup %2696 }
 0x838   :  { %v1189_v24 = vmul.f32 %v2697_v44, %v1186_v11  ;;  %vm1195_vm3 = vweird.f32 %v2697_v44 }
 0x839   :  { %vm1196_vm5 = vmor %vm1194_vm4, %vm1195_vm3 }
 0x83a   :  { %v1190_v22 = vmul.f32 %v2697_v44, %v1189_v24 }
 0x83c   :  { %v1191_v27 = vmul.f32 0.5, %v1190_v22 }
 0x83e   :  { %v1192_v29 = vsub.f32 1.5, %v1191_v27  ;;  %v1183_v30 = vpop.xlane.xlu0 %1182 }
 0x83f   :  { %v1185_v40 = vmul.f32 %v1183_v30, %v3184_v33 }
 0x840   :  { %v1193_v31 = vmul.f32 %v2697_v44, %v1192_v29 }
 0x841   :  { %v1187_v34 = vadd.f32 1e-12, %v1185_v40 }
 0x842   :  { %v1197_v43 = vsel %vm1196_vm5, %v2697_v44, %v1193_v31 }
 0x843   :  { %v1208_v35 = vmul.f32 %v1197_v43, %v1174_v14  ;;  %2698 = vrsqrt.f32 %v1187_v34  ;;  %vm1204_vm8 = vweird.f32 %v1187_v34 }
 0x845   :  { %v1213_v49 = vmul.f32 %v2635_v32, %v1208_v35 }
 0x847   :  { %v3322_v37 = vadd.f32 %v2636_v36, %v1213_v49 }
 0x849   :  { %2533 = vmatmul.msk.f32.vlgmr.msrb.gmra.mxu0 %vm78_vm0, %v3322_v37  ;;  %v2699_v38 = vpop.eup %2698 }
 0x84a   :  { %v1199_v39 = vmul.f32 %v2699_v38, %v1187_v34  ;;  %vm1205_vm6 = vweird.f32 %v2699_v38 }
 0x84b   :  { %vm1206_vm9 = vmor %vm1204_vm8, %vm1205_vm6 }
 0x84c   :  { %v1200_v41 = vmul.f32 %v2699_v38, %v1199_v39 }
 0x84e   :  { %v1201_v42 = vmul.f32 0.5, %v1200_v41 }
 0x850   :  { %v1202_v46 = vsub.f32 1.5, %v1201_v42 }
 0x852   :  { %v1203_v47 = vmul.f32 %v2699_v38, %v1202_v46 }
 0x854   :  { %v1207_v48 = vsel %vm1206_vm9, %v2699_v38, %v1203_v47 }
 0x855   :  { %v1209_v28 = vmul.f32 %v1207_v48, %v1175_v10 }
 0x857   :  { %v1214_v50 = vmul.f32 %v2635_v32, %v1209_v28 }
 0x859   :  { %v3326_v53 = vadd.f32 %v2636_v36, %v1214_v50 }
 0x85b   :  { %2534 = vmatmul.msk.f32.gmra.mxu0 %vm78_vm0, %v3326_v53 }
 0x8c6   :  { %v1253_v57 = vpop.f32.mrf.mxu0 }
 0x8c7   :  { %v3333_v59 = vadd.f32 %v2637_v55, %v1253_v57 }
 0x8c9   :  { %1417 = vrot.lane.b32.xlu0 %v3333_v59, %s2783_s25  ;;  %1260 = vrot.lane.b32.xlu1 %v3333_v59, %s2782_s6 }
 0x8d1   :  { %1575 = vrot.lane.b32.xlu0 %v3333_v59, %s2780_s5  ;;  %1415 = vrot.lane.b32.xlu1 %v3333_v59, %s2781_s24 }
 0x8d8   :  { %v1256_v60 = vpop.f32.mrf.mxu0 }
 0x8d9   :  { %v3343_v26 = vadd.f32 %v2637_v55, %v1256_v60 }
 0x8db   :  { %1287 = vrot.lane.b32.xlu2 %v3343_v26, %s2782_s6  ;;  %1445 = vrot.lane.b32.xlu0 %v3343_v26, %s2783_s25  ;;  %v2622_v61 = vpack.i.bf16 %v3343_v26, %v3333_v59  ;;  %s3766_s6 = smov 56   ;;  %s3767_s25 = smov 72  }
 0x8dc   :  { %1443 = vrot.lane.b32.xlu1 %v3343_v26, %s2781_s24  ;;  %s3765_s24 = smov 112  }
 0x8e3   :  { %2623 = vrot.lane.b32.xlu2 %v2622_v61, %s3764_s1 }
 0x935   :  { %v1288_v63 = vpop.permute.xlu2 %1287 }
 0x936   :  { %2537 = vmatpush.xpose.msk.msrb.mxu2 %vm225_vm7, %v1288_v63 }
 0x939   :  { %2538 = vmatmul.msk.f32.vlgmr.msrb.gmra.mxu2 %vm225_vm7, %v3343_v26 }
 0x93b   :  { %v1418_v0 = vpop.permute.xlu0 %1417  ;;  %v1261_v8 = vpop.permute.xlu1 %1260 }
 0x93c   :  { %2535 = vmatpush.xpose.msk.msrb.mxu1 %vm225_vm7, %v1261_v8  ;;  %2541 = vmatpush.xpose.msk.msra.mxu2 %vm225_vm7, %v1418_v0 }
 0x93d   :  { %v2624_v1 = vpop.permute.xlu2 %2623 }
 0x93e   :  { %v2626_v2 = vunpack.i.h.bf16 %v2624_v1  ;;  %v2625_v5 = vunpack.i.l.bf16 %v2624_v1 }
 0x93f   :  { %2536 = vmatmul.msk.f32.vlgmr.msrb.gmra.mxu1 %vm225_vm7, %v3333_v59 }
 0x940   :  { %1384 = vmatpush.msra.mxu0 %v2625_v5  ;;  %1410 = vmatpush.msra.mxu1 %v2626_v2 }
 0x943   :  { %v1416_v51 = vpop.permute.xlu1 %1415  ;;  %v3362_v3 = vpop.permute.xlu0 %1575 }
 0x944   :  { %2542 = vmatmul.msk.f32.vlgmr.msra.gmra.mxu2 %vm225_vm7, %v1416_v51 }
 0x94d   :  { %v1446_v4 = vpop.permute.xlu0 %1445 }
 0x94e   :  { %2543 = vmatpush.xpose.msk.msrb.mxu0 %vm225_vm7, %v1446_v4  ;;  %v3374_v54 = vpop.permute.xlu1 %1443 }
 0x9bc   :  { %v1283_v62 = vpop.f32.mrf.mxu1  ;;  %v1310_v7 = vpop.f32.mrf.mxu2 }
 0x9bd   :  { %v1313_v45 = vmul.f32 0.35355338, %v1283_v62  ;;  %v1314_v9 = vmul.f32 0.35355338, %v1310_v7 }
 0x9bf   :  { %v1315_v58 = vsel %vm225_vm7, %v1313_v45, -inf  ;;  %v1318_v12 = vsel %vm225_vm7, %v1314_v9, -inf }
 0x9c0   :  { %1316 = vmax.xlane.f32.xlu2 %v1315_v58  ;;  %1319 = vmax.xlane.f32.xlu0 %v1318_v12 }
 0x9c7   :  { %v1440_v13 = vpop.f32.mrf.mxu2 }
 0x9c8   :  { %v1471_v14 = vmul.f32 0.35355338, %v1440_v13 }
 0x9ca   :  { %v1473_v15 = vsel %vm225_vm7, %v1471_v14, -inf }
 0x9cb   :  { %1474 = vmax.xlane.f32.xlu1 %v1473_v15 }
 0x9d4   :  { %1573 = vrot.lane.b32.xlu0 %v3333_v59, %s3765_s24 }
 0x9d8   :  { %1521 = vrot.lane.b32.xlu2 %v3333_v59, %s3766_s6 }
 0x9e4   :  { %1733 = vrot.lane.b32.xlu1 %v3333_v59, %s3767_s25 }
 0xa33   :  { %v1317_v16 = vpop.xlane.xlu2 %1316  ;;  %v1320_v17 = vpop.xlane.xlu0 %1319 }
 0xa34   :  { %v1321_v6 = vsub.f32 %v1313_v45, %v1317_v16  ;;  %v1322_v10 = vsub.f32 %v1314_v9, %v1320_v17 }
 0xa36   :  { %v1323_v18 = vmul.f32 1.442695, %v1321_v6  ;;  %v1325_v52 = vmul.f32 1.442695, %v1322_v10 }
 0xa38   :  { %2700 = vpow2.f32 %v1323_v18 }
 0xa39   :  { %2702 = vpow2.f32 %v1325_v52 }
 0xa3b   :  { %v1522_v19 = vpop.permute.xlu2 %1521 }
 0xa3c   :  { %1542 = vmatpush.msrb.mxu1 %v1522_v19 }
 0xa3e   :  { %v2701_v20 = vpop.eup %2700  ;;  %v1475_v56 = vpop.xlane.xlu1 %1474 }
 0xa3f   :  { %v2703_v21 = vpop.eup %2702  ;;  %v1479_v23 = vsub.f32 %v1471_v14, %v1475_v56  ;;  %v1327_v11 = vsel %vm225_vm7, %v2701_v20, 0.0 }
 0xa40   :  { %v1330_v44 = vsel %vm225_vm7, %v2703_v21, 0.0  ;;  %1328 = vadd.xlane.f32.xlu2 %v1327_v11 }
 0xa41   :  { %v1481_v24 = vmul.f32 1.442695, %v1479_v23  ;;  %1331 = vadd.xlane.f32.xlu0 %v1330_v44 }
 0xa43   :  { %2704 = vpow2.f32 %v1481_v24 }
 0xa46   :  { %v3392_v29 = vpop.permute.xlu0 %1573 }
 0xa49   :  { %v3378_v22 = vpop.eup %2704 }
 0xa4a   :  { %v1485_v27 = vsel %vm225_vm7, %v3378_v22, 0.0 }
 0xa4b   :  { %1486 = vadd.xlane.f32.xlu1 %v1485_v27 }
 0xa55   :  { %1601 = vrot.lane.b32.xlu0 %v3343_v26, %s3765_s24 }
 0xa56   :  { %v1734_v40 = vpop.permute.xlu1 %1733 }
 0xa58   :  { %1603 = vrot.lane.b32.xlu2 %v3343_v26, %s2780_s5  ;;  %s3769_s5 = smov 48  }
 0xa5d   :  { %1759 = vrot.lane.b32.xlu0 %v3343_v26, %s3768_s27 }
 0xa60   :  { %1731 = vrot.lane.b32.xlu2 %v3333_v59, %s3768_s27 }
 0xa64   :  { %1761 = vrot.lane.b32.xlu1 %v3343_v26, %s3767_s25 }
 0xab3   :  { %v1329_v30 = vpop.xlane.xlu2 %1328 }
 0xab4   :  { %v1332_v31 = vpop.xlane.xlu0 %1331  ;;  %2706 = vrcp.f32 %v1329_v30  ;;  %v1342_v38 = vand.u32 2147483647, %v1329_v30  ;;  %v1344_v39 = vand.u32 2147483648, %v1329_v30  ;;  %vm1338_vm14 = vweird.f32 %v1329_v30 }
 0xab5   :  { %2708 = vrcp.f32 %v1332_v31  ;;  %v1359_v42 = vand.u32 2147483648, %v1332_v31  ;;  %v1357_v48 = vand.u32 2147483647, %v1332_v31  ;;  %vm1353_vm15 = vweird.f32 %v1332_v31 }
 0xab6   :  { %v1345_v55 = vor.u32 1.1754944e-38, %v1344_v39  ;;  %vm1343_vm3 = vcmp.eq.f32.partialorder %v1342_v38, 8.507059e+37 }
 0xab7   :  { %v1360_v57 = vor.u32 1.1754944e-38, %v1359_v42  ;;  %vm1358_vm4 = vcmp.eq.f32.partialorder %v1357_v48, 8.507059e+37 }
 0xaba   :  { %v2707_v32 = vpop.eup %2706 }
 0xabb   :  { %v2709_v43 = vpop.eup %2708  ;;  %v1334_v34 = vmul.f32 %v2707_v32, %v1329_v30  ;;  %vm1339_vm10 = vweird.f32 %v2707_v32  ;;  %v1604_v51 = vpop.permute.xlu2 %1603 }
 0xabc   :  { %v1349_v35 = vmul.f32 %v2709_v43, %v1332_v31  ;;  %vm1354_vm11 = vweird.f32 %v2709_v43  ;;  %vm1340_vm1 = vmor %vm1338_vm14, %vm1339_vm10 }
 0xabd   :  { %v1335_v36 = vsub.f32 1.0, %v1334_v34  ;;  %vm1355_vm2 = vmor %vm1353_vm15, %vm1354_vm11 }
 0xabe   :  { %v1350_v49 = vsub.f32 1.0, %v1349_v35  ;;  %v1487_v41 = vpop.xlane.xlu1 %1486 }
 0xabf   :  { %v1336_v46 = vmul.f32 %v2707_v32, %v1335_v36  ;;  %2710 = vrcp.f32 %v1487_v41  ;;  %v1502_v62 = vand.u32 2147483648, %v1487_v41  ;;  %v1500_v7 = vand.u32 2147483647, %v1487_v41 }
 0xac0   :  { %v1351_v47 = vmul.f32 %v2709_v43, %v1350_v49  ;;  %vm1496_vm6 = vweird.f32 %v1487_v41 }
 0xac1   :  { %v1337_v28 = vadd.f32 %v2707_v32, %v1336_v46  ;;  %v1503_v58 = vor.u32 1.1754944e-38, %v1502_v62  ;;  %vm1501_vm9 = vcmp.eq.f32.partialorder %v1500_v7, 8.507059e+37 }
 0xac2   :  { %v1352_v50 = vadd.f32 %v2709_v43, %v1351_v47 }
 0xac3   :  { %v1341_v60 = vsel %vm1340_vm1, %v2707_v32, %v1337_v28  ;;  %v1732_v16 = vpop.permute.xlu2 %1731 }
 0xac4   :  { %v1356_v61 = vsel %vm1355_vm2, %v2709_v43, %v1352_v50  ;;  %v1346_v63 = vsel %vm1343_vm3, %v1345_v55, %v1341_v60 }
 0xac5   :  { %v2711_v0 = vpop.eup %2710  ;;  %v1361_v8 = vsel %vm1358_vm4, %v1360_v57, %v1356_v61  ;;  %v1347_v1 = vmul.f32 %v2701_v20, %v1346_v63 }
 0xac6   :  { %v1492_v2 = vmul.f32 %v2711_v0, %v1487_v41  ;;  %v1362_v5 = vmul.f32 %v2703_v21, %v1361_v8  ;;  %vm1497_vm5 = vweird.f32 %v2711_v0 }
 0xac7   :  { %2539 = vmatmul.msk.f32.vlgmr.msra.gmra.mxu0 %vm225_vm7, %v1347_v1  ;;  %vm1498_vm8 = vmor %vm1496_vm6, %vm1497_vm5  ;;  %v1602_v15 = vpop.permute.xlu0 %1601 }
 0xac8   :  { %v1493_v4 = vsub.f32 1.0, %v1492_v2  ;;  %2540 = vmatmul.msk.f32.vlgmr.msra.gmra.mxu1 %vm225_vm7, %v1362_v5  ;;  %2547 = vmatpush.xpose.msk.msra.mxu0 %vm225_vm7, %v3362_v3 }
 0xac9   :  { %2549 = vmatpush.xpose.msk.msra.mxu1 %vm225_vm7, %v1604_v51 }
 0xaca   :  { %v1494_v45 = vmul.f32 %v2711_v0, %v1493_v4 }
 0xacc   :  { %v1495_v9 = vadd.f32 %v2711_v0, %v1494_v45 }
 0xace   :  { %v1499_v12 = vsel %vm1498_vm8, %v2711_v0, %v1495_v9 }
 0xacf   :  { %v1504_v13 = vsel %vm1501_vm9, %v1503_v58, %v1499_v12  ;;  %2544 = vmatmul.msk.f32.vlgmr.msrb.gmra.mxu0 %vm225_vm7, %v3374_v54  ;;  %v1760_v17 = vpop.permute.xlu0 %1759 }
 0xad0   :  { %2553 = vmatpush.xpose.msk.msrb.mxu0 %vm225_vm7, %v1734_v40  ;;  %v1505_v3 = vmul.f32 %v3378_v22, %v1504_v13 }
 0xad2   :  { %2545 = vmatmul.msk.f32.vlgmr.msrb.gmra.mxu1 %vm225_vm7, %v1505_v3 }
 0xad6   :  { %v1762_v14 = vpop.permute.xlu1 %1761 }
 0xad7   :  { %2548 = vmatmul.msk.f32.vlgmr.msra.gmra.mxu0 %vm225_vm7, %v3392_v29  ;;  %2555 = vmatpush.xpose.msk.msrb.mxu1 %vm225_vm7, %v1762_v14 }
 0xada   :  { %2550 = vmatmul.msk.f32.vlgmr.msra.gmra.mxu1 %vm225_vm7, %v1602_v15 }
 0xadf   :  { %2554 = vmatmul.msk.f32.vlgmr.msrb.gmra.mxu0 %vm225_vm7, %v1732_v16 }
 0xae2   :  { %2556 = vmatmul.msk.f32.vlgmr.msrb.gmra.mxu1 %vm225_vm7, %v1760_v17 }
 0xb44   :  { %v3410_v6 = vpop.f32.mrf.mxu0 }
 0xb45   :  { %v3412_v10 = vpop.f32.mrf.mxu1 }
 0xb4c   :  { %v1468_v54 = vpop.f32.mrf.mxu0 }
 0xb4d   :  { %v1472_v18 = vmul.f32 0.35355338, %v1468_v54 }
 0xb4f   :  { %v1544_v52 = vpop.f32.mrf.mxu1  ;;  %v1476_v19 = vsel %vm225_vm7, %v1472_v18, -inf }
 0xb50   :  { %1477 = vmax.xlane.f32.xlu2 %v1476_v19 }
 0xb54   :  { %v1598_v20 = vpop.f32.mrf.mxu0 }
 0xb55   :  { %v1629_v56 = vmul.f32 0.35355338, %v1598_v20 }
 0xb57   :  { %v1626_v21 = vpop.f32.mrf.mxu1  ;;  %v1631_v23 = vsel %vm225_vm7, %v1629_v56, -inf }
 0xb58   :  { %v1630_v11 = vmul.f32 0.35355338, %v1626_v21  ;;  %1632 = vmax.xlane.f32.xlu1 %v1631_v23 }
 0xb5a   :  { %v1634_v44 = vsel %vm225_vm7, %v1630_v11, -inf }
 0xb5b   :  { %1635 = vmax.xlane.f32.xlu0 %v1634_v44 }
 0xb5c   :  { %v1756_v24 = vpop.f32.mrf.mxu0 }
 0xb5d   :  { %v1787_v22 = vmul.f32 0.35355338, %v1756_v24 }
 0xb5f   :  { %v1784_v27 = vpop.f32.mrf.mxu1  ;;  %v1789_v29 = vsel %vm225_vm7, %v1787_v22, -inf }
 0xb60   :  { %v1788_v30 = vmul.f32 0.35355338, %v1784_v27  ;;  %1790 = vmax.xlane.f32.xlu2 %v1789_v29 }
 0xb62   :  { %v1792_v31 = vsel %vm225_vm7, %v1788_v30, -inf }
 0xb63   :  { %1793 = vmax.xlane.f32.xlu1 %v1792_v31 }
 0xb6f   :  { %1679 = vrot.lane.b32.xlu0 %v3333_v59, %s3769_s5 }
 0xb78   :  { %1547 = vrot.lane.b32.xlu2 %v3343_v26, %s3766_s6 }
 0xbc3   :  { %v1478_v40 = vpop.xlane.xlu2 %1477 }
 0xbc4   :  { %v1480_v32 = vsub.f32 %v1472_v18, %v1478_v40 }
 0xbc6   :  { %v1483_v43 = vmul.f32 1.442695, %v1480_v32 }
 0xbc8   :  { %2712 = vpow2.f32 %v1483_v43 }
 0xbcb   :  { %v1633_v34 = vpop.xlane.xlu1 %1632 }
 0xbcc   :  { %v1637_v35 = vsub.f32 %v1629_v56, %v1633_v34 }
 0xbce   :  { %v3423_v36 = vpop.eup %2712  ;;  %v1639_v49 = vmul.f32 1.442695, %v1637_v35  ;;  %v1636_v38 = vpop.xlane.xlu0 %1635 }
 0xbcf   :  { %v1638_v39 = vsub.f32 %v1630_v11, %v1636_v38  ;;  %v1488_v41 = vsel %vm225_vm7, %v3423_v36, 0.0 }
 0xbd0   :  { %2714 = vpow2.f32 %v1639_v49  ;;  %1489 = vadd.xlane.f32.xlu0 %v1488_v41 }
 0xbd1   :  { %v1641_v42 = vmul.f32 1.442695, %v1638_v39 }
 0xbd3   :  { %2716 = vpow2.f32 %v1641_v42  ;;  %v1791_v46 = vpop.xlane.xlu2 %1790 }
 0xbd4   :  { %v1795_v47 = vsub.f32 %v1787_v22, %v1791_v46 }
 0xbd6   :  { %v3427_v48 = vpop.eup %2714  ;;  %v1797_v28 = vmul.f32 1.442695, %v1795_v47  ;;  %v1794_v50 = vpop.xlane.xlu1 %1793 }
 0xbd7   :  { %v1796_v55 = vsub.f32 %v1788_v30, %v1794_v50  ;;  %v1643_v57 = vsel %vm225_vm7, %v3427_v48, 0.0 }
 0xbd8   :  { %2718 = vpow2.f32 %v1797_v28  ;;  %1644 = vadd.xlane.f32.xlu2 %v1643_v57 }
 0xbd9   :  { %v3431_v60 = vpop.eup %2716  ;;  %v1799_v61 = vmul.f32 1.442695, %v1796_v55 }
 0xbda   :  { %v1646_v63 = vsel %vm225_vm7, %v3431_v60, 0.0 }
 0xbdb   :  { %2720 = vpow2.f32 %v1799_v61  ;;  %v1548_v0 = vpop.permute.xlu2 %1547  ;;  %1647 = vadd.xlane.f32.xlu1 %v1646_v63 }
 0xbdc   :  { %1568 = vmatpush.msrb.mxu2 %v1548_v0 }
 0xbde   :  { %v3435_v8 = vpop.eup %2718 }
 0xbdf   :  { %v1801_v1 = vsel %vm225_vm7, %v3435_v8, 0.0 }
 0xbe0   :  { %1802 = vadd.xlane.f32.xlu0 %v1801_v1 }
 0xbe1   :  { %v3439_v2 = vpop.eup %2720  ;;  %v1680_v5 = vpop.permute.xlu0 %1679 }
 0xbe2   :  { %1700 = vmatpush.msra.mxu2 %v1680_v5  ;;  %v1804_v51 = vsel %vm225_vm7, %v3439_v2, 0.0 }
 0xbe3   :  { %1805 = vadd.xlane.f32.xlu1 %v1804_v51 }
 0xbf0   :  { %1837 = vrot.lane.b32.xlu2 %v3333_v59, %s3770_s4 }
 0xbf4   :  { %1863 = vrot.lane.b32.xlu0 %v3343_v26, %s3770_s4 }
 0xbf8   :  { %1891 = vrot.lane.b32.xlu2 %v1544_v52, %s3771_s3 }
 0xbfc   :  { %1705 = vrot.lane.b32.xlu1 %v3343_v26, %s3769_s5 }
 0xc43   :  { %v1490_v4 = vpop.xlane.xlu0 %1489 }
 0xc44   :  { %2722 = vrcp.f32 %v1490_v4  ;;  %v1517_v58 = vand.u32 2147483648, %v1490_v4  ;;  %v1515_v59 = vand.u32 2147483647, %v1490_v4  ;;  %vm1511_vm11 = vweird.f32 %v1490_v4 }
 0xc46   :  { %v1518_v26 = vor.u32 1.1754944e-38, %v1517_v58  ;;  %vm1516_vm15 = vcmp.eq.f32.partialorder %v1515_v59, 8.507059e+37 }
 0xc4a   :  { %v2723_v62 = vpop.eup %2722 }
 0xc4b   :  { %v1507_v45 = vmul.f32 %v2723_v62, %v1490_v4  ;;  %v1645_v7 = vpop.xlane.xlu2 %1644  ;;  %vm1512_vm10 = vweird.f32 %v2723_v62 }
 0xc4c   :  { %2724 = vrcp.f32 %v1645_v7  ;;  %vm1513_vm14 = vmor %vm1511_vm11, %vm1512_vm10  ;;  %v1660_v20 = vand.u32 2147483648, %v1645_v7  ;;  %v1658_v23 = vand.u32 2147483647, %v1645_v7  ;;  %vm1654_vm2 = vweird.f32 %v1645_v7 }
 0xc4d   :  { %v1508_v9 = vsub.f32 1.0, %v1507_v45 }
 0xc4e   :  { %v3450_v12 = vpop.xlane.xlu1 %1647  ;;  %v1661_v27 = vor.u32 1.1754944e-38, %v1660_v20  ;;  %vm1659_vm4 = vcmp.eq.f32.partialorder %v1658_v23, 8.507059e+37 }
 0xc4f   :  { %v1509_v13 = vmul.f32 %v2723_v62, %v1508_v9  ;;  %2726 = vrcp.f32 %v3450_v12  ;;  %vm1669_vm11 = vweird.f32 %v3450_v12  ;;  %v1673_v57 = vand.u32 2147483647, %v3450_v12 }
 0xc51   :  { %v1510_v3 = vadd.f32 %v2723_v62, %v1509_v13 }
 0xc52   :  { %v2725_v14 = vpop.eup %2724 }
 0xc53   :  { %v1514_v15 = vsel %vm1513_vm14, %v2723_v62, %v1510_v3  ;;  %v1650_v16 = vmul.f32 %v2725_v14, %v1645_v7  ;;  %v1803_v17 = vpop.xlane.xlu0 %1802  ;;  %vm1655_vm1 = vweird.f32 %v2725_v14  ;;  %v1838_v11 = vpop.permute.xlu2 %1837 }
 0xc54   :  { %v1519_v54 = vsel %vm1516_vm15, %v1518_v26, %v1514_v15  ;;  %2728 = vrcp.f32 %v1803_v17  ;;  %vm1656_vm3 = vmor %vm1654_vm2, %vm1655_vm1  ;;  %v1818_v35 = vand.u32 2147483648, %v1803_v17  ;;  %v1816_v49 = vand.u32 2147483647, %v1803_v17  ;;  %v2561_v26 = vld [vmem:[%s3706_s7 + $0x30] sm:$0xff]  ;;  %v2560_v15 = vld [vmem:[%s3706_s7 + $0x28] sm:$0xff] }
 0xc55   :  { %v2727_v18 = vpop.eup %2726  ;;  %v1651_v52 = vsub.f32 1.0, %v1650_v16  ;;  %v1520_v19 = vmul.f32 %v3423_v36, %v1519_v54  ;;  %vm1812_vm6 = vweird.f32 %v1803_v17  ;;  %vm1674_vm15 = vcmp.eq.f32.partialorder %v1673_v57, 8.507059e+37  ;;  %v2559_v16 = vld [vmem:[%s3706_s7 + $0x20] sm:$0xff] }
 0xc56   :  { %v3454_v56 = vpop.xlane.xlu1 %1805  ;;  %v1665_v44 = vmul.f32 %v2727_v18, %v3450_v12  ;;  %v1819_v42 = vor.u32 1.1754944e-38, %v1818_v35  ;;  %vm1817_vm9 = vcmp.eq.f32.partialorder %v1816_v49, 8.507059e+37  ;;  %vm1670_vm10 = vweird.f32 %v2727_v18 }
 0xc57   :  { %v1652_v21 = vmul.f32 %v2725_v14, %v1651_v52  ;;  %2730 = vrcp.f32 %v3454_v56  ;;  %2546 = vmatmul.msk.f32.vlgmr.msrb.gmra.mxu2 %vm225_vm7, %v1520_v19  ;;  %vm1671_vm14 = vmor %vm1669_vm11, %vm1670_vm10  ;;  %v1833_v51 = vand.u32 2147483648, %v3454_v56  ;;  %vm1827_vm2 = vweird.f32 %v3454_v56 }
 0xc58   :  { %1858 = vmatpush.msrb.mxu2 %v1838_v11  ;;  %v1666_v40 = vsub.f32 1.0, %v1665_v44 }
 0xc59   :  { %v1653_v24 = vadd.f32 %v2725_v14, %v1652_v21  ;;  %v1834_v9 = vor.u32 1.1754944e-38, %v1833_v51 }
 0xc5a   :  { %v2729_v22 = vpop.eup %2728  ;;  %v1667_v38 = vmul.f32 %v2727_v18, %v1666_v40 }
 0xc5b   :  { %v1657_v29 = vsel %vm1656_vm3, %v2725_v14, %v1653_v24  ;;  %v1808_v30 = vmul.f32 %v2729_v22, %v1803_v17  ;;  %vm1813_vm5 = vweird.f32 %v2729_v22  ;;  %v1892_v17 = vpop.permute.xlu2 %1891 }
 0xc5c   :  { %v1662_v31 = vsel %vm1659_vm4, %v1661_v27, %v1657_v29  ;;  %vm1814_vm8 = vmor %vm1812_vm6, %vm1813_vm5  ;;  %v1668_v47 = vadd.f32 %v2727_v18, %v1667_v38 }
 0xc5d   :  { %v2731_v32 = vpop.eup %2730  ;;  %v1809_v43 = vsub.f32 1.0, %v1808_v30  ;;  %v1663_v34 = vmul.f32 %v3427_v48, %v1662_v31  ;;  %v1675_v48 = vand.u32 2147483648, %v3450_v12 }
 0xc5e   :  { %v1823_v39 = vmul.f32 %v2731_v32, %v3454_v56  ;;  %v1672_v61 = vsel %vm1671_vm14, %v2727_v18, %v1668_v47  ;;  %vm1828_vm1 = vweird.f32 %v2731_v32  ;;  %v1913_v18 = vsel %vm225_vm7, %v3410_v6, %v1892_v17  ;;  %v2638_v6 = vld [vmem:[%s3707_s8 + $0x1] ss:$0 sm:$0xff]  ;;  %v2569_v47 = vld [vmem:[%s3710_s11 + $0x28] sm:$0xff] }
 0xc5f   :  { %v1810_v36 = vmul.f32 %v2729_v22, %v1809_v43  ;;  %2551 = vmatmul.msk.f32.vlgmr.msra.gmra.mxu2 %vm225_vm7, %v1663_v34  ;;  %v1676_v0 = vor.u32 1.1754944e-38, %v1675_v48  ;;  %vm1829_vm3 = vmor %vm1827_vm2, %vm1828_vm1 }
 0xc60   :  { %v1824_v50 = vsub.f32 1.0, %v1823_v39 }
 0xc61   :  { %v1811_v41 = vadd.f32 %v2729_v22, %v1810_v36  ;;  %v1677_v1 = vsel %vm1674_vm15, %v1676_v0, %v1672_v61 }
 0xc62   :  { %v1825_v63 = vmul.f32 %v2731_v32, %v1824_v50  ;;  %v1678_v62 = vmul.f32 %v3431_v60, %v1677_v1 }
 0xc63   :  { %v1815_v46 = vsel %vm1814_vm8, %v2729_v22, %v1811_v41 }
 0xc64   :  { %v1820_v28 = vsel %vm1817_vm9, %v1819_v42, %v1815_v46  ;;  %v1826_v5 = vadd.f32 %v2731_v32, %v1825_v63  ;;  %v2570_v46 = vld [vmem:[%s3710_s11 + $0x30] sm:$0xff] }
 0xc65   :  { %v1821_v55 = vmul.f32 %v3435_v8, %v1820_v28  ;;  %v1831_v8 = vand.u32 2147483647, %v3454_v56  ;;  %v2568_v28 = vld [vmem:[%s3710_s11 + $0x20] sm:$0xff] }
 0xc66   :  { %v1830_v45 = vsel %vm1829_vm3, %v2731_v32, %v1826_v5  ;;  %v1864_v7 = vpop.permute.xlu0 %1863 }
 0xc67   :  { %2557 = vmatmul.msk.f32.vlgmr.msrb.gmra.mxu2 %vm225_vm7, %v1821_v55  ;;  %vm1832_vm4 = vcmp.eq.f32.partialorder %v1831_v8, 8.507059e+37 }
 0xc68   :  { %v1835_v58 = vsel %vm1832_vm4, %v1834_v9, %v1830_v45  ;;  %v2640_v9 = vld [vmem:[%s3709_s10 + $0x1] ss:$0 sm:$0xff] }
 0xc69   :  { %v1836_v12 = vmul.f32 %v3439_v2, %v1835_v58  ;;  %v2562_v2 = vld [vmem:[%s3706_s7 + $0x38] sm:$0xff] }
 0xc6a   :  { %1947 = vmatpush.msra.mxu0 %v2562_v2 }
 0xc6c   :  { %1948 = vmatpush.msra.mxu0 %v2561_v26 }
 0xc6e   :  { %v1706_v4 = vpop.permute.xlu1 %1705  ;;  %1949 = vmatpush.msra.mxu0 %v2560_v15 }
 0xc6f   :  { %1726 = vmatpush.msrb.mxu3 %v1706_v4 }
 0xc70   :  { %2552 = vmatmul.msk.f32.vlgmr.msrb.gmra.mxu3 %vm225_vm7, %v1678_v62  ;;  %1950 = vmatpush.msra.mxu0 %v2559_v16  ;;  %v2639_v62 = vld [vmem:[%s3708_s9 + $0x1] ss:$0 sm:$0xff] }
 0xc71   :  { %1884 = vmatpush.msra.mxu3 %v1864_v7 }
 0xc78   :  { %2558 = vmatmul.msk.f32.vlgmr.msra.gmra.mxu3 %vm225_vm7, %v1836_v12 }
 0xcda   :  { %v1570_v13 = vpop.f32.mrf.mxu2 }
 0xcdb   :  { %1893 = vrot.lane.b32.xlu2 %v1570_v13, %s3771_s3 }
 0xce2   :  { %v1702_v59 = vpop.f32.mrf.mxu2 }
 0xce3   :  { %1899 = vrot.lane.b32.xlu1 %v1702_v59, %s3772_s29 }
 0xcea   :  { %v1860_v60 = vpop.f32.mrf.mxu2 }
 0xceb   :  { %1907 = vrot.lane.b32.xlu0 %v1860_v60, %s3773_s30 }
 0xcf3   :  { %v1728_v3 = vpop.f32.mrf.mxu3 }
 0xcf4   :  { %1901 = vrot.lane.b32.xlu1 %v1728_v3, %s3772_s29 }
 0xcfb   :  { %v1886_v14 = vpop.f32.mrf.mxu3 }
 0xcfc   :  { %1909 = vrot.lane.b32.xlu0 %v1886_v14, %s3773_s30 }
 0xd35   :  { %v1894_v56 = vpop.permute.xlu2 %1893 }
 0xd36   :  { %v1914_v23 = vsel %vm225_vm7, %v3412_v10, %v1894_v56 }
 0xd55   :  { %v1900_v54 = vpop.permute.xlu1 %1899 }
 0xd56   :  { %v1915_v52 = vsel %vm879_vm12, %v1913_v18, %v1900_v54  ;;  %v2592_v54 = vld [vmem:[%s3712_s13 + $0xf8] sm:$0xff]  ;;  %v2591_v18 = vld [vmem:[%s3712_s13 + $0xf0] sm:$0xff] }
 0xd57   :  { %2167 = vmatpush.msra.mxu2 %v2592_v54 }
 0xd59   :  { %2168 = vmatpush.msra.mxu2 %v2591_v18 }
 0xd5d   :  { %v1908_v19 = vpop.permute.xlu0 %1907 }
 0xd5e   :  { %v1917_v20 = vsel %vm882_vm13, %v1915_v52, %v1908_v19  ;;  %v2641_v52 = vld [vmem:[%s3711_s12 + $0x1] ss:$0 sm:$0xff]  ;;  %v2590_v19 = vld [vmem:[%s3712_s13 + $0xe8] sm:$0xff] }
 0xd5f   :  { %2564 = vmatmul.msk.f32.vlgmr.msra.gmra.mxu0 %vm78_vm0, %v1917_v20  ;;  %2169 = vmatpush.msra.mxu2 %v2590_v19  ;;  %v2589_v20 = vld [vmem:[%s3712_s13 + $0xe0] sm:$0xff] }
 0xd61   :  { %2170 = vmatpush.msra.mxu2 %v2589_v20 }
 0xd66   :  { %v1902_v21 = vpop.permute.xlu1 %1901 }
 0xd67   :  { %v1916_v11 = vsel %vm879_vm12, %v1914_v23, %v1902_v21  ;;  %v2588_v23 = vld [vmem:[%s3712_s13 + $0xd8] sm:$0xff] }
 0xd68   :  { %2171 = vmatpush.msra.mxu2 %v2588_v23 }
 0xd6e   :  { %v1910_v44 = vpop.permute.xlu0 %1909 }
 0xd6f   :  { %v1918_v24 = vsel %vm882_vm13, %v1916_v11, %v1910_v44  ;;  %v2587_v44 = vld [vmem:[%s3712_s13 + $0xd0] sm:$0xff] }
 0xd70   :  { %2565 = vmatmul.msk.f32.gmra.mxu0 %vm78_vm0, %v1918_v24  ;;  %2172 = vmatpush.msra.mxu2 %v2587_v44 }
 0xddc   :  { %v1952_v22 = vpop.f32.mrf.mxu0 }
 0xddd   :  { %v1953_v27 = vadd.f32 %v2638_v6, %v1952_v22 }
 0xddf   :  { %v1958_v29 = vadd.f32 %v1953_v27, %v3322_v37  ;;  %v2585_v27 = vld [vmem:[%s3712_s13 + $0xc0] sm:$0xff] }
 0xde1   :  { %v1964_v30 = vsel %vm78_vm0, %v1958_v29, 0.0 }
 0xde2   :  { %1965 = vadd.xlane.f32.xlu2 %v1964_v30 }
 0xded   :  { %v1955_v31 = vpop.f32.mrf.mxu0 }
 0xdee   :  { %v1956_v10 = vadd.f32 %v2638_v6, %v1955_v31  ;;  %v2586_v6 = vld [vmem:[%s3712_s13 + $0xc8] sm:$0xff]  ;;  %v2584_v31 = vld [vmem:[%s3712_s13 + $0xb8] sm:$0xff] }
 0xdef   :  { %2173 = vmatpush.msra.mxu2 %v2586_v6 }
 0xdf0   :  { %v1959_v40 = vadd.f32 %v1956_v10, %v3326_v53  ;;  %v2571_v53 = vld [vmem:[%s3710_s11 + $0x38] sm:$0xff] }
 0xdf1   :  { %2046 = vmatpush.msra.mxu1 %v2571_v53  ;;  %2174 = vmatpush.msra.mxu2 %v2585_v27 }
 0xdf2   :  { %v1967_v32 = vsel %vm78_vm0, %v1959_v40, 0.0 }
 0xdf3   :  { %1968 = vadd.xlane.f32.xlu1 %v1967_v32  ;;  %2047 = vmatpush.msra.mxu1 %v2570_v46  ;;  %v2583_v32 = vld [vmem:[%s3712_s13 + $0xb0] sm:$0xff] }
 0xdf4   :  { %2175 = vmatpush.msra.mxu2 %v2584_v31 }
 0xdf5   :  { %2048 = vmatpush.msra.mxu1 %v2569_v47  ;;  %v2579_v47 = vld [vmem:[%s3712_s13 + $0x90] sm:$0xff] }
 0xdf6   :  { %2176 = vmatpush.msra.mxu2 %v2583_v32 }
 0xdf7   :  { %2049 = vmatpush.msra.mxu1 %v2568_v28 }
 0xe55   :  { %v1966_v43 = vpop.xlane.xlu2 %1965 }
 0xe56   :  { %v1970_v34 = vmul.f32 %v1966_v43, %v3184_v33 }
 0xe58   :  { %v1972_v35 = vsub.f32 %v1958_v29, %v1970_v34 }
 0xe5a   :  { %v1974_v36 = vmul.f32 %v1972_v35, %v1972_v35 }
 0xe5c   :  { %v1976_v49 = vsel %vm78_vm0, %v1974_v36, 0.0 }
 0xe5d   :  { %1977 = vadd.xlane.f32.xlu0 %v1976_v49 }
 0xe66   :  { %v1969_v38 = vpop.xlane.xlu1 %1968 }
 0xe67   :  { %v1971_v37 = vmul.f32 %v1969_v38, %v3184_v33  ;;  %v2581_v38 = vld [vmem:[%s3712_s13 + $0xa0] sm:$0xff] }
 0xe69   :  { %v1973_v39 = vsub.f32 %v1959_v40, %v1971_v37 }
 0xe6b   :  { %v1975_v41 = vmul.f32 %v1973_v39, %v1973_v39 }
 0xe6d   :  { %v1979_v42 = vsel %vm78_vm0, %v1975_v41, 0.0  ;;  %v2580_v41 = vld [vmem:[%s3712_s13 + $0x98] sm:$0xff] }
 0xe6e   :  { %1980 = vadd.xlane.f32.xlu2 %v1979_v42 }
 0xed0   :  { %v1978_v50 = vpop.xlane.xlu0 %1977 }
 0xed1   :  { %v1982_v48 = vmul.f32 %v1978_v50, %v3184_v33  ;;  %v2578_v50 = vld [vmem:[%s3712_s13 + $0x88] sm:$0xff] }
 0xed3   :  { %v1984_v55 = vadd.f32 1e-12, %v1982_v48 }
 0xed5   :  { %2732 = vrsqrt.f32 %v1984_v55  ;;  %vm1992_vm12 = vweird.f32 %v1984_v55 }
 0xedb   :  { %v2733_v57 = vpop.eup %2732 }
 0xedc   :  { %v1987_v61 = vmul.f32 %v2733_v57, %v1984_v55  ;;  %vm1993_vm7 = vweird.f32 %v2733_v57  ;;  %v2577_v55 = vld [vmem:[%s3712_s13 + $0x80] sm:$0xff] }
 0xedd   :  { %vm1994_vm13 = vmor %vm1992_vm12, %vm1993_vm7 }
 0xede   :  { %v1988_v63 = vmul.f32 %v2733_v57, %v1987_v61 }
 0xee0   :  { %v1989_v0 = vmul.f32 0.5, %v1988_v63 }
 0xee1   :  { %v1981_v1 = vpop.xlane.xlu2 %1980 }
 0xee2   :  { %v1990_v5 = vsub.f32 1.5, %v1989_v0  ;;  %v1983_v51 = vmul.f32 %v1981_v1, %v3184_v33 }
 0xee4   :  { %v1991_v8 = vmul.f32 %v2733_v57, %v1990_v5  ;;  %v1985_v4 = vadd.f32 1e-12, %v1983_v51 }
 0xee6   :  { %v1995_v45 = vsel %vm1994_vm13, %v2733_v57, %v1991_v8  ;;  %2734 = vrsqrt.f32 %v1985_v4  ;;  %vm2002_vm6 = vweird.f32 %v1985_v4 }
 0xee7   :  { %v2006_v7 = vmul.f32 %v1995_v45, %v1972_v35  ;;  %v2582_v35 = vld [vmem:[%s3712_s13 + $0xa8] sm:$0xff] }
 0xee8   :  { %2177 = vmatpush.msra.mxu2 %v2582_v35 }
 0xee9   :  { %v2011_v58 = vmul.f32 %v2639_v62, %v2006_v7 }
 0xeea   :  { %2178 = vmatpush.msra.mxu2 %v2581_v38 }
 0xeeb   :  { %v3532_v12 = vadd.f32 %v2640_v9, %v2011_v58 }
 0xeec   :  { %v2735_v13 = vpop.eup %2734  ;;  %2179 = vmatpush.msra.mxu2 %v2580_v41 }
 0xeed   :  { %v1997_v59 = vmul.f32 %v2735_v13, %v1985_v4  ;;  %2573 = vmatmul.msk.f32.vlgmr.msra.gmra.mxu1 %vm78_vm0, %v3532_v12  ;;  %vm2003_vm5 = vweird.f32 %v2735_v13 }
 0xeee   :  { %vm2004_vm8 = vmor %vm2002_vm6, %vm2003_vm5  ;;  %2180 = vmatpush.msra.mxu2 %v2579_v47 }
 0xeef   :  { %v1998_v60 = vmul.f32 %v2735_v13, %v1997_v59 }
 0xef0   :  { %2181 = vmatpush.msra.mxu2 %v2578_v50 }
 0xef1   :  { %v1999_v3 = vmul.f32 0.5, %v1998_v60 }
 0xef2   :  { %2182 = vmatpush.msra.mxu2 %v2577_v55 }
 0xef3   :  { %v2000_v14 = vsub.f32 1.5, %v1999_v3 }
 0xef5   :  { %v2001_v2 = vmul.f32 %v2735_v13, %v2000_v14 }
 0xef7   :  { %v2005_v26 = vsel %vm2004_vm8, %v2735_v13, %v2001_v2  ;;  %vm2354_vm8 = vcmask 1041409  }
 0xef8   :  { %v2007_v15 = vmul.f32 %v2005_v26, %v1973_v39 }
 0xefa   :  { %v2012_v16 = vmul.f32 %v2639_v62, %v2007_v15 }
 0xefc   :  { %v3536_v17 = vadd.f32 %v2640_v9, %v2012_v16 }
 0xefe   :  { %2574 = vmatmul.msk.f32.gmra.mxu1 %vm78_vm0, %v3536_v17 }
 0xf6a   :  { %v2051_v56 = vpop.f32.mrf.mxu1 }
 0xf6b   :  { %v3555_v21 = vadd.f32 %v2641_v52, %v2051_v56 }
 0xf6d   :  { %v3562_v11 = vmul.f32 %v3555_v21, %v3233_v25 }
 0xf6f   :  { %v2061_v24 = vmul.f32 %v3562_v11, %v3562_v11 }
 0xf71   :  { %v2062_v22 = vmin.f32 %v2061_v24, 16.0 }
 0xf73   :  { %v2063_v29 = vmul.f32 2.1237322e-06, %v2062_v22  ;;  %v2074_v30 = vmul.f32 3.8918573e-05, %v2062_v22 }
 0xf75   :  { %v2064_v10 = vadd.f32 0.00028619796, %v2063_v29  ;;  %v2075_v40 = vadd.f32 0.001143296, %v2074_v30 }
 0xf77   :  { %v2065_v43 = vmul.f32 %v2064_v10, %v2062_v22  ;;  %v2076_v34 = vmul.f32 %v2075_v40, %v2062_v22 }
 0xf79   :  { %v2066_v36 = vadd.f32 0.0036580483, %v2065_v43  ;;  %v2077_v49 = vadd.f32 0.014752088, %v2076_v34  ;;  %v2057_v43 = vmul.f32 0.5, %v3555_v21 }
 0xf7b   :  { %v2078_v37 = vmul.f32 %v2077_v49, %v2062_v22  ;;  %v2054_v39 = vpop.f32.mrf.mxu1  ;;  %v2067_v53 = vmul.f32 %v2066_v36, %v2062_v22 }
 0xf7c   :  { %v3590_v42 = vadd.f32 %v2641_v52, %v2054_v39 }
 0xf7d   :  { %v2079_v46 = vadd.f32 0.112945676, %v2078_v37  ;;  %v2068_v61 = vadd.f32 0.05243302, %v2067_v53 }
 0xf7e   :  { %v3597_v28 = vmul.f32 %v3590_v42, %v3233_v25 }
 0xf7f   :  { %v2080_v48 = vmul.f32 %v2079_v46, %v2062_v22  ;;  %v2069_v8 = vmul.f32 %v2068_v61, %v2062_v22  ;;  %v2058_v61 = vmul.f32 0.5, %v3590_v42 }
 0xf80   :  { %v2101_v57 = vmul.f32 %v3597_v28, %v3597_v28 }
 0xf81   :  { %v2081_v63 = vadd.f32 0.4994258, %v2080_v48  ;;  %v2070_v58 = vadd.f32 0.18741608, %v2069_v8 }
 0xf82   :  { %v2102_v0 = vmin.f32 %v2101_v57, 16.0 }
 0xf83   :  { %v2082_v1 = vmul.f32 %v2081_v63, %v2062_v22  ;;  %v2071_v14 = vmul.f32 %v2070_v58, %v2062_v22 }
 0xf84   :  { %v2103_v5 = vmul.f32 2.1237322e-06, %v2102_v0  ;;  %v2114_v51 = vmul.f32 3.8918573e-05, %v2102_v0 }
 0xf85   :  { %v2083_v4 = vadd.f32 1.0, %v2082_v1  ;;  %v2072_v18 = vadd.f32 1.1283791, %v2071_v14  ;;  %v2642_v1 = vld [vmem:[%s3713_s14 + $0x1] ss:$0 sm:$0xff] }
 0xf86   :  { %v2104_v62 = vadd.f32 0.00028619796, %v2103_v5  ;;  %v2115_v45 = vadd.f32 0.001143296, %v2114_v51 }
 0xf87   :  { %2736 = vrcp.f32 %v2083_v4  ;;  %v2095_v52 = vand.u32 2147483648, %v2083_v4  ;;  %v2093_v20 = vand.u32 2147483647, %v2083_v4  ;;  %vm2089_vm10 = vweird.f32 %v2083_v4 }
 0xf88   :  { %v2105_v7 = vmul.f32 %v2104_v62, %v2102_v0  ;;  %v2116_v9 = vmul.f32 %v2115_v45, %v2102_v0  ;;  %v2073_v27 = vmul.f32 %v2072_v18, %v3562_v11 }
 0xf89   :  { %v2096_v6 = vor.u32 1.1754944e-38, %v2095_v52  ;;  %vm2094_vm14 = vcmp.eq.f32.partialorder %v2093_v20, 8.507059e+37 }
 0xf8a   :  { %v2117_v13 = vadd.f32 0.014752088, %v2116_v9  ;;  %v2106_v59 = vadd.f32 0.0036580483, %v2105_v7 }
 0xf8c   :  { %v2118_v60 = vmul.f32 %v2117_v13, %v2102_v0  ;;  %v2107_v15 = vmul.f32 %v2106_v59, %v2102_v0 }
 0xf8d   :  { %v2737_v3 = vpop.eup %2736 }
 0xf8e   :  { %v2085_v2 = vmul.f32 %v2737_v3, %v2083_v4  ;;  %v2119_v26 = vadd.f32 0.112945676, %v2118_v60  ;;  %vm2090_vm9 = vweird.f32 %v2737_v3  ;;  %v2108_v23 = vadd.f32 0.05243302, %v2107_v15 }
 0xf8f   :  { %vm2091_vm11 = vmor %vm2089_vm10, %vm2090_vm9 }
 0xf90   :  { %v2086_v16 = vsub.f32 1.0, %v2085_v2  ;;  %v2120_v54 = vmul.f32 %v2119_v26, %v2102_v0  ;;  %v2109_v31 = vmul.f32 %v2108_v23, %v2102_v0 }
 0xf92   :  { %v2087_v19 = vmul.f32 %v2737_v3, %v2086_v16  ;;  %v2121_v56 = vadd.f32 0.4994258, %v2120_v54  ;;  %v2110_v32 = vadd.f32 0.18741608, %v2109_v31 }
 0xf94   :  { %v2088_v44 = vadd.f32 %v2737_v3, %v2087_v19  ;;  %v2122_v24 = vmul.f32 %v2121_v56, %v2102_v0  ;;  %v2111_v49 = vmul.f32 %v2110_v32, %v2102_v0 }
 0xf96   :  { %v2092_v22 = vsel %vm2091_vm11, %v2737_v3, %v2088_v44  ;;  %v2123_v29 = vadd.f32 1.0, %v2122_v24  ;;  %v2112_v11 = vadd.f32 1.1283791, %v2111_v49  ;;  %v2643_v24 = vld [vmem:[%s3714_s15 + $0x1] ss:$0 sm:$0xff]  ;;  %s2796_s15 = smov 32  }
 0xf97   :  { %v2097_v30 = vsel %vm2094_vm14, %v2096_v6, %v2092_v22  ;;  %v2644_v22 = vld [vmem:[%s3715_s16 + $0x1] ss:$0 sm:$0xff] }
 0xf98   :  { %v2098_v10 = vmul.f32 %v2097_v30, %v2073_v27  ;;  %2738 = vrcp.f32 %v2123_v29  ;;  %v2135_v39 = vand.u32 2147483648, %v2123_v29  ;;  %v2133_v53 = vand.u32 2147483647, %v2123_v29 }
 0xf99   :  { %vm2129_vm1 = vweird.f32 %v2123_v29  ;;  %v2113_v50 = vmul.f32 %v2112_v11, %v3597_v28 }
 0xf9a   :  { %v2575_v40 = vclamps-f32 %v2098_v10, 1.0  ;;  %v2136_v47 = vor.u32 1.1754944e-38, %v2135_v39  ;;  %vm2134_vm3 = vcmp.eq.f32.partialorder %v2133_v53, 8.507059e+37 }
 0xf9c   :  { %v2141_v34 = vadd.f32 1.0, %v2575_v40 }
 0xf9e   :  { %v2739_v35 = vpop.eup %2738  ;;  %v2143_v36 = vmul.f32 %v2141_v34, %v2057_v43 }
 0xf9f   :  { %v2125_v38 = vmul.f32 %v2739_v35, %v2123_v29  ;;  %vm2130_vm15 = vweird.f32 %v2739_v35 }
 0xfa0   :  { %2183 = vmatmul.f32.vlgmr.msra.gmra.mxu2 %v2143_v36  ;;  %vm2131_vm2 = vmor %vm2129_vm1, %vm2130_vm15 }
 0xfa1   :  { %v2126_v37 = vsub.f32 1.0, %v2125_v38 }
 0xfa3   :  { %v2127_v41 = vmul.f32 %v2739_v35, %v2126_v37 }
 0xfa5   :  { %v2128_v46 = vadd.f32 %v2739_v35, %v2127_v41 }
 0xfa7   :  { %v2132_v48 = vsel %vm2131_vm2, %v2739_v35, %v2128_v46 }
 0xfa8   :  { %v2137_v21 = vsel %vm2134_vm3, %v2136_v47, %v2132_v48 }
 0xfa9   :  { %v2138_v55 = vmul.f32 %v2137_v21, %v2113_v50 }
 0xfab   :  { %v2576_v57 = vclamps-f32 %v2138_v55, 1.0 }
 0xfad   :  { %v2142_v63 = vadd.f32 1.0, %v2576_v57 }
 0xfaf   :  { %v2144_v0 = vmul.f32 %v2142_v63, %v2058_v61 }
 0xfb1   :  { %2186 = vmatmul.f32.gmra.mxu2 %v2144_v0 }
0x1023   :  { %v2184_v5 = vpop.f32.mrf.mxu2 }
0x1024   :  { %v2185_v51 = vadd.f32 %v2642_v1, %v2184_v5 }
0x1026   :  { %v2190_v8 = vadd.f32 %v2185_v51, %v3532_v12 }
0x1028   :  { %v2196_v28 = vsel %vm78_vm0, %v2190_v8, 0.0 }
0x1029   :  { %2197 = vadd.xlane.f32.xlu1 %v2196_v28 }
0x1034   :  { %v2187_v4 = vpop.f32.mrf.mxu2 }
0x1035   :  { %v2188_v62 = vadd.f32 %v2642_v1, %v2187_v4 }
0x1037   :  { %v2191_v45 = vadd.f32 %v2188_v62, %v3536_v17 }
0x1039   :  { %v2199_v42 = vsel %vm78_vm0, %v2191_v45, 0.0 }
0x103a   :  { %2200 = vadd.xlane.f32.xlu0 %v2199_v42 }
0x109c   :  { %v2198_v7 = vpop.xlane.xlu1 %2197 }
0x109d   :  { %v2202_v9 = vmul.f32 %v2198_v7, %v3184_v33 }
0x109f   :  { %v2204_v58 = vsub.f32 %v2190_v8, %v2202_v9 }
0x10a1   :  { %v2206_v13 = vmul.f32 %v2204_v58, %v2204_v58 }
0x10a3   :  { %v2208_v59 = vsel %vm78_vm0, %v2206_v13, 0.0 }
0x10a4   :  { %2209 = vadd.xlane.f32.xlu2 %v2208_v59 }
0x10ad   :  { %v2201_v60 = vpop.xlane.xlu0 %2200 }
0x10ae   :  { %v2203_v12 = vmul.f32 %v2201_v60, %v3184_v33 }
0x10b0   :  { %v2205_v3 = vsub.f32 %v2191_v45, %v2203_v12 }
0x10b2   :  { %v2207_v14 = vmul.f32 %v2205_v3, %v2205_v3 }
0x10b4   :  { %v2211_v2 = vsel %vm78_vm0, %v2207_v14, 0.0 }
0x10b5   :  { %2212 = vadd.xlane.f32.xlu1 %v2211_v2 }
0x1117   :  { %v2210_v17 = vpop.xlane.xlu2 %2209 }
0x1118   :  { %v2214_v26 = vmul.f32 %v2210_v17, %v3184_v33 }
0x111a   :  { %v2216_v15 = vadd.f32 1e-12, %v2214_v26 }
0x111c   :  { %2740 = vrsqrt.f32 %v2216_v15  ;;  %vm2224_vm7 = vweird.f32 %v2216_v15 }
0x1122   :  { %v2741_v16 = vpop.eup %2740 }
0x1123   :  { %v2219_v54 = vmul.f32 %v2741_v16, %v2216_v15  ;;  %vm2225_vm4 = vweird.f32 %v2741_v16 }
0x1124   :  { %vm2226_vm12 = vmor %vm2224_vm7, %vm2225_vm4  ;;  %vm2376_vm4 = vcmask 523264  }
0x1125   :  { %v2220_v18 = vmul.f32 %v2741_v16, %v2219_v54 }
0x1127   :  { %v2221_v52 = vmul.f32 0.5, %v2220_v18 }
0x1128   :  { %v2213_v19 = vpop.xlane.xlu1 %2212 }
0x1129   :  { %v2222_v20 = vsub.f32 1.5, %v2221_v52  ;;  %v2215_v56 = vmul.f32 %v2213_v19, %v3184_v33  ;;  %v2645_v33 = vld [vmem:[%s3716_s17] ss:$0 sm:$0xff] }
0x112b   :  { %v2223_v23 = vmul.f32 %v2741_v16, %v2222_v20  ;;  %v2217_v44 = vadd.f32 1e-12, %v2215_v56 }
0x112d   :  { %v2227_v6 = vsel %vm2226_vm12, %v2741_v16, %v2223_v23  ;;  %2742 = vrsqrt.f32 %v2217_v44  ;;  %vm2234_vm5 = vweird.f32 %v2217_v44 }
0x112e   :  { %v2238_v27 = vmul.f32 %v2227_v6, %v2204_v58 }
0x1130   :  { %v2243_v29 = vmul.f32 %v2643_v24, %v2238_v27 }
0x1132   :  { %v3633_v30 = vadd.f32 %v2644_v22, %v2243_v29 }
0x1133   :  { %v2743_v31 = vpop.eup %2742 }
0x1134   :  { %v2229_v10 = vmul.f32 %v2743_v31, %v2217_v44  ;;  %v2254_v40 = vmul.f32 %v2645_v33, %v3633_v30  ;;  %v2338_v35 = vsel %vm78_vm0, %v3633_v30, -inf  ;;  %vm2235_vm13 = vweird.f32 %v2743_v31 }
0x1135   :  { %v2339_v38 = vrot.slane %v2338_v35, 4  ;;  %vm2236_vm6 = vmor %vm2234_vm5, %vm2235_vm13 }
0x1136   :  { %v2230_v32 = vmul.f32 %v2743_v31, %v2229_v10  ;;  %v2256_v43 = vsel %vm78_vm0, %v2254_v40, 0.0  ;;  %v2370_v10 = vld [vmem:[%s3717_s18 + $0x30] sm:$0xff] }
0x1137   :  { %2257 = vadd.xlane.f32.xlu0 %v2256_v43  ;;  %v2340_v11 = vmax.f32 %v2338_v35, %v2339_v38  ;;  %v2368_v38 = vld [vmem:[%s3717_s18 + $0x20] sm:$0xff] }
0x1138   :  { %v2231_v34 = vmul.f32 0.5, %v2230_v32 }
0x1139   :  { %v2341_v46 = vrot.slane %v2340_v11, 2 }
0x113a   :  { %v2232_v36 = vsub.f32 1.5, %v2231_v34  ;;  %v2369_v34 = vld [vmem:[%s3717_s18 + $0x28] sm:$0xff] }
0x113b   :  { %v2342_v55 = vmax.f32 %v2340_v11, %v2341_v46 }
0x113c   :  { %v2233_v49 = vmul.f32 %v2743_v31, %v2232_v36 }
0x113d   :  { %v2343_v63 = vrot.slane %v2342_v55, 1 }
0x113e   :  { %v2237_v37 = vsel %vm2236_vm6, %v2743_v31, %v2233_v49 }
0x113f   :  { %v2239_v39 = vmul.f32 %v2237_v37, %v2205_v3  ;;  %v2344_v5 = vmax.f32 %v2342_v55, %v2343_v63 }
0x1141   :  { %v2244_v41 = vmul.f32 %v2643_v24, %v2239_v39 }
0x1143   :  { %v3639_v53 = vadd.f32 %v2644_v22, %v2244_v41  ;;  %v2371_v22 = vld [vmem:[%s3717_s18 + $0x38] sm:$0xff] }
0x1144   :  { %2388 = vmatpush.msrb.mxu3 %v2371_v22  ;;  %v2367_v41 = vld [vmem:[%s3717_s18 + $0x18] sm:$0xff] }
0x1145   :  { %v2255_v47 = vmul.f32 %v2645_v33, %v3639_v53  ;;  %v2345_v50 = vsel %vm78_vm0, %v3639_v53, -inf }
0x1146   :  { %v2346_v48 = vrot.slane %v2345_v50, 4  ;;  %2389 = vmatpush.msrb.mxu3 %v2370_v10 }
0x1147   :  { %v2259_v21 = vsel %vm78_vm0, %v2255_v47, 0.0  ;;  %v2366_v47 = vld [vmem:[%s3717_s18 + $0x10] sm:$0xff] }
0x1148   :  { %2260 = vadd.xlane.f32.xlu2 %v2259_v21  ;;  %v2347_v57 = vmax.f32 %v2345_v50, %v2346_v48  ;;  %2390 = vmatpush.msrb.mxu3 %v2369_v34  ;;  %v2365_v50 = vld [vmem:[%s3717_s18 + $0x8] sm:$0xff]  ;;  %v2364_v48 = vld [vmem:[%s3717_s18] sm:$0xff] }
0x1149   :  { %v2444_v34 = vld [vmem:[%s3719_s20] sm:$0xff] }
0x114a   :  { %v2348_v61 = vrot.slane %v2347_v57, 2  ;;  %2391 = vmatpush.msrb.mxu3 %v2368_v38 }
0x114c   :  { %v2349_v0 = vmax.f32 %v2347_v57, %v2348_v61  ;;  %2392 = vmatpush.msrb.mxu3 %v2367_v41 }
0x114e   :  { %v2350_v1 = vrot.slane %v2349_v0, 1  ;;  %2393 = vmatpush.msrb.mxu3 %v2366_v47 }
0x1150   :  { %v2351_v51 = vmax.f32 %v2349_v0, %v2350_v1  ;;  %2394 = vmatpush.msrb.mxu3 %v2365_v50 }
0x1152   :  { %v2359_v8 = vsel %vm2354_vm8, %v2351_v51, %v2344_v5  ;;  %2395 = vmatpush.msrb.mxu3 %v2364_v48 }
0x1153   :  { %2360 = vrot.lane.b32.xlu1 %v2359_v8, %s2796_s15  ;;  %s2797_s15 = smov [#allocation2]  }
0x1154   :  { %s2481_s16 = sshll.u32 %s2797_s15, 4  ;;  %s2482_s16 = int_to_ptr.vmem [resolvable:$true] %s2481_s16 }
0x11aa   :  { %v2258_v28 = vpop.xlane.xlu0 %2257 }
0x11ab   :  { %v2262_v4 = vrot.slane %v2258_v28, 4 }
0x11ad   :  { %v2263_v62 = vmax.f32 %v2258_v28, %v2262_v4 }
0x11af   :  { %v2264_v45 = vrot.slane %v2263_v62, 2 }
0x11b1   :  { %v2265_v42 = vmax.f32 %v2263_v62, %v2264_v45 }
0x11b3   :  { %v2266_v7 = vrot.slane %v2265_v42, 1 }
0x11b5   :  { %v2267_v9 = vmax.f32 %v2265_v42, %v2266_v7 }
0x11b7   :  { %v2274_v58 = vsub.f32 %v2258_v28, %v2267_v9 }
0x11b9   :  { %v2276_v13 = vmul.f32 1.442695, %v2274_v58 }
0x11bb   :  { %2744 = vpow2.f32 %v2276_v13  ;;  %v2261_v59 = vpop.xlane.xlu2 %2260 }
0x11bc   :  { %v2268_v60 = vrot.slane %v2261_v59, 4 }
0x11be   :  { %v2269_v12 = vmax.f32 %v2261_v59, %v2268_v60 }
0x11c0   :  { %v2270_v3 = vrot.slane %v2269_v12, 2 }
0x11c1   :  { %v2745_v14 = vpop.eup %2744 }
0x11c2   :  { %v2280_v2 = vrot.slane %v2745_v14, 4  ;;  %v2271_v17 = vmax.f32 %v2269_v12, %v2270_v3 }
0x11c4   :  { %v2281_v26 = vadd.f32 %v2745_v14, %v2280_v2  ;;  %v2272_v15 = vrot.slane %v2271_v17, 1 }
0x11c6   :  { %v2282_v16 = vrot.slane %v2281_v26, 2  ;;  %v2273_v54 = vmax.f32 %v2271_v17, %v2272_v15 }
0x11c8   :  { %v2283_v18 = vadd.f32 %v2282_v16, %v2281_v26  ;;  %v2275_v52 = vsub.f32 %v2261_v59, %v2273_v54  ;;  %v2361_v26 = vpop.permute.xlu1 %2360 }
0x11ca   :  { %v2284_v19 = vrot.slane %v2283_v18, 1  ;;  %v2278_v20 = vmul.f32 1.442695, %v2275_v52 }
0x11cc   :  { %v2285_v56 = vadd.f32 %v2284_v19, %v2283_v18  ;;  %2746 = vpow2.f32 %v2278_v20 }
0x11ce   :  { %2748 = vrcp.f32 %v2285_v56  ;;  %v2303_v31 = vand.u32 2147483648, %v2285_v56  ;;  %v2301_v43 = vand.u32 2147483647, %v2285_v56  ;;  %vm2297_vm10 = vweird.f32 %v2285_v56 }
0x11d0   :  { %v2304_v49 = vor.u32 1.1754944e-38, %v2303_v31  ;;  %vm2302_vm14 = vcmp.eq.f32.partialorder %v2301_v43, 8.507059e+37  ;;  %v2447_v31 = vld [vmem:[%s3719_s20 + $0x18] sm:$0xff] }
0x11d1   :  { %2467 = vmatpush.msrb.mxu0 %v2447_v31 }
0x11d2   :  { %v2747_v23 = vpop.eup %2746 }
0x11d3   :  { %v2286_v44 = vrot.slane %v2747_v23, 4 }
0x11d4   :  { %v2749_v24 = vpop.eup %2748 }
0x11d5   :  { %v2287_v6 = vadd.f32 %v2747_v23, %v2286_v44  ;;  %v2293_v27 = vmul.f32 %v2749_v24, %v2285_v56  ;;  %vm2298_vm9 = vweird.f32 %v2749_v24 }
0x11d6   :  { %vm2299_vm11 = vmor %vm2297_vm10, %vm2298_vm9 }
0x11d7   :  { %v2288_v29 = vrot.slane %v2287_v6, 2  ;;  %v2294_v33 = vsub.f32 1.0, %v2293_v27 }
0x11d9   :  { %v2289_v40 = vadd.f32 %v2288_v29, %v2287_v6  ;;  %v2295_v32 = vmul.f32 %v2749_v24, %v2294_v33 }
0x11db   :  { %v2290_v35 = vrot.slane %v2289_v40, 1  ;;  %v2296_v36 = vadd.f32 %v2749_v24, %v2295_v32  ;;  %v2445_v32 = vld [vmem:[%s3719_s20 + $0x8] sm:$0xff] }
0x11dd   :  { %v2291_v37 = vadd.f32 %v2290_v35, %v2289_v40  ;;  %v2300_v39 = vsel %vm2299_vm11, %v2749_v24, %v2296_v36 }
0x11de   :  { %v2305_v11 = vsel %vm2302_vm14, %v2304_v49, %v2300_v39 }
0x11df   :  { %2750 = vrcp.f32 %v2291_v37  ;;  %v2306_v46 = vmul.f32 %v2745_v14, %v2305_v11  ;;  %v2318_v0 = vand.u32 2147483648, %v2291_v37  ;;  %v2316_v5 = vand.u32 2147483647, %v2291_v37 }
0x11e0   :  { %vm2312_vm1 = vweird.f32 %v2291_v37 }
0x11e1   :  { %v2322_v21 = vmul.f32 %v2306_v46, %v3633_v30  ;;  %v2319_v28 = vor.u32 1.1754944e-38, %v2318_v0  ;;  %vm2317_vm3 = vcmp.eq.f32.partialorder %v2316_v5, 8.507059e+37 }
0x11e3   :  { %v2324_v61 = vsel %vm78_vm0, %v2322_v21, 0.0 }
0x11e4   :  { %v2325_v51 = vrot.slane %v2324_v61, 4 }
0x11e5   :  { %v2751_v55 = vpop.eup %2750 }
0x11e6   :  { %v2308_v57 = vmul.f32 %v2751_v55, %v2291_v37  ;;  %vm2313_vm15 = vweird.f32 %v2751_v55  ;;  %v2326_v62 = vadd.f32 %v2325_v51, %v2324_v61 }
0x11e7   :  { %vm2314_vm2 = vmor %vm2312_vm1, %vm2313_vm15 }
0x11e8   :  { %v2309_v63 = vsub.f32 1.0, %v2308_v57  ;;  %v2327_v7 = vrot.slane %v2326_v62, 2 }
0x11ea   :  { %v2310_v1 = vmul.f32 %v2751_v55, %v2309_v63  ;;  %v2328_v13 = vadd.f32 %v2327_v7, %v2326_v62  ;;  %v2647_v62 = vld [vmem:[%s3720_s21] ss:$0 sm:$0xff] }
0x11ec   :  { %v2311_v8 = vadd.f32 %v2751_v55, %v2310_v1  ;;  %v2329_v12 = vrot.slane %v2328_v13, 1 }
0x11ee   :  { %v2315_v4 = vsel %vm2314_vm2, %v2751_v55, %v2311_v8  ;;  %v2330_v2 = vadd.f32 %v2329_v12, %v2328_v13 }
0x11ef   :  { %v2320_v45 = vsel %vm2317_vm3, %v2319_v28, %v2315_v4 }
0x11f0   :  { %v2321_v30 = vmul.f32 %v2747_v23, %v2320_v45 }
0x11f2   :  { %v2323_v42 = vmul.f32 %v2321_v30, %v3639_v53  ;;  %v2646_v53 = vld [vmem:[%s3718_s19] ss:$0 sm:$0xff] }
0x11f4   :  { %v2331_v9 = vsel %vm78_vm0, %v2323_v42, 0.0 }
0x11f5   :  { %v2332_v58 = vrot.slane %v2331_v9, 4 }
0x11f7   :  { %v2333_v59 = vadd.f32 %v2332_v58, %v2331_v9 }
0x11f9   :  { %v2334_v60 = vrot.slane %v2333_v59, 2 }
0x11fb   :  { %v2335_v3 = vadd.f32 %v2334_v60, %v2333_v59 }
0x11fd   :  { %v2336_v14 = vrot.slane %v2335_v3, 1 }
0x11ff   :  { %v2337_v17 = vadd.f32 %v2336_v14, %v2335_v3 }
0x1201   :  { %v2355_v15 = vsel %vm2354_vm8, %v2337_v17, %v2330_v2 }
0x1202   :  { %v2363_v16 = vsel %vm78_vm0, %v2355_v15, %v2361_v26 }
0x1203   :  { %2596 = vmatmul.msk.f32.vlgmr.msrb.gmra.mxu3 %vm2376_vm4, %v2363_v16 }
0x1286   :  { %v2397_v54 = vpop.f32.mrf.mxu3 }
0x1287   :  { %v2398_v18 = vadd.f32 %v2646_v53, %v2397_v54 }
0x1289   :  { %v2401_v52 = vmul.f32 %v2398_v18, %v3233_v25  ;;  %v2446_v25 = vld [vmem:[%s3719_s20 + $0x10] sm:$0xff]  ;;  %v2400_v8 = vmul.f32 0.5, %v2398_v18 }
0x128a   :  { %2468 = vmatpush.msrb.mxu0 %v2446_v25 }
0x128b   :  { %v2402_v19 = vmul.f32 %v2401_v52, %v2401_v52 }
0x128c   :  { %2469 = vmatpush.msrb.mxu0 %v2445_v32 }
0x128d   :  { %v2403_v20 = vmin.f32 %v2402_v19, 16.0 }
0x128e   :  { %2470 = vmatpush.msrb.mxu0 %v2444_v34 }
0x128f   :  { %v2404_v56 = vmul.f32 2.1237322e-06, %v2403_v20  ;;  %v2415_v23 = vmul.f32 3.8918573e-05, %v2403_v20 }
0x1291   :  { %v2405_v44 = vadd.f32 0.00028619796, %v2404_v56  ;;  %v2416_v24 = vadd.f32 0.001143296, %v2415_v23 }
0x1293   :  { %v2406_v6 = vmul.f32 %v2405_v44, %v2403_v20  ;;  %v2417_v27 = vmul.f32 %v2416_v24, %v2403_v20 }
0x1295   :  { %v2418_v22 = vadd.f32 0.014752088, %v2417_v27  ;;  %v2407_v29 = vadd.f32 0.0036580483, %v2406_v6 }
0x1297   :  { %v2419_v33 = vmul.f32 %v2418_v22, %v2403_v20  ;;  %v2408_v40 = vmul.f32 %v2407_v29, %v2403_v20 }
0x1299   :  { %v2420_v10 = vadd.f32 0.112945676, %v2419_v33  ;;  %v2409_v36 = vadd.f32 0.05243302, %v2408_v40 }
0x129b   :  { %v2421_v43 = vmul.f32 %v2420_v10, %v2403_v20  ;;  %v2410_v37 = vmul.f32 %v2409_v36, %v2403_v20 }
0x129d   :  { %v2422_v35 = vadd.f32 0.4994258, %v2421_v43  ;;  %v2411_v39 = vadd.f32 0.18741608, %v2410_v37 }
0x129f   :  { %v2423_v49 = vmul.f32 %v2422_v35, %v2403_v20  ;;  %v2412_v41 = vmul.f32 %v2411_v39, %v2403_v20 }
0x12a1   :  { %v2424_v38 = vadd.f32 1.0, %v2423_v49  ;;  %v2413_v48 = vadd.f32 1.1283791, %v2412_v41 }
0x12a3   :  { %2752 = vrcp.f32 %v2424_v38  ;;  %v2436_v50 = vand.u32 2147483648, %v2424_v38  ;;  %v2434_v55 = vand.u32 2147483647, %v2424_v38  ;;  %vm2430_vm12 = vweird.f32 %v2424_v38 }
0x12a4   :  { %v2414_v63 = vmul.f32 %v2413_v48, %v2401_v52 }
0x12a5   :  { %v2437_v61 = vor.u32 1.1754944e-38, %v2436_v50  ;;  %vm2435_vm5 = vcmp.eq.f32.partialorder %v2434_v55, 8.507059e+37 }
0x12a9   :  { %v2753_v11 = vpop.eup %2752 }
0x12aa   :  { %v2426_v46 = vmul.f32 %v2753_v11, %v2424_v38  ;;  %vm2431_vm7 = vweird.f32 %v2753_v11 }
0x12ab   :  { %vm2432_vm13 = vmor %vm2430_vm12, %vm2431_vm7 }
0x12ac   :  { %v2427_v47 = vsub.f32 1.0, %v2426_v46 }
0x12ae   :  { %v2428_v21 = vmul.f32 %v2753_v11, %v2427_v47 }
0x12b0   :  { %v2429_v57 = vadd.f32 %v2753_v11, %v2428_v21 }
0x12b2   :  { %v2433_v0 = vsel %vm2432_vm13, %v2753_v11, %v2429_v57 }
0x12b3   :  { %v2438_v1 = vsel %vm2435_vm5, %v2437_v61, %v2433_v0 }
0x12b4   :  { %v2439_v5 = vmul.f32 %v2438_v1, %v2414_v63 }
0x12b6   :  { %v2597_v51 = vclamps-f32 %v2439_v5, 1.0 }
0x12b8   :  { %v2442_v28 = vadd.f32 1.0, %v2597_v51 }
0x12ba   :  { %v2443_v4 = vmul.f32 %v2442_v28, %v2400_v8 }
0x12bc   :  { %2598 = vmatmul.msk.f32.vlgmr.msrb.gmra.mxu0 %vm78_vm0, %v2443_v4 }
0x1339   :  { %v2472_v45 = vpop.f32.mrf.mxu0 }
0x133a   :  { %v2473_v30 = vadd.f32 %v2647_v62, %v2472_v45 }
0x133c   :  { %2475 = vst [vmem:[#allocation2] sm:$0x3] %v2473_v30 }
0x133d   :  { %2486 = dma.vmem_to_hbm [thread:$0]  %s2482_s16, 32, %s2484_s26, [#allocation3]  }
0x133e   :  { %2778 = dma.done.wait [#allocation3], 32  }
0x133f   :  { %2779 = vsyncadd [#allocation3], 4294967264 }
0x1340   :  { %2491 = vsyncpa [#allocation3], 1 }

</bundles_post_ra>
